<compile_context>
chip_gen: v6e
topology: v6e:2x2x1
jax: 0.10.0
libtpu: 0.0.40
codegen_flags: <defaults>
</compile_context>

<pallas_src>
import math

import jax
import jax.numpy as jnp
from jax.experimental import pallas as pl
from jax.experimental.pallas import tpu as pltpu  # noqa: F401  (kept per template)


# ----------------------------------------------------------------------------
# Kernel
# ----------------------------------------------------------------------------
def _sum_all(a):
    """Full reduce to a (1, 1) array via a lane- then sublane-reduction."""
    return jnp.sum(jnp.sum(a, axis=-1, keepdims=True), axis=0, keepdims=True)


def fused_moe_kernel(patches1_ref, gates1_ref, we1_ref, be1_ref, wg2_ref,
                     k2_ref, bconv2_ref, w1_ref, b1_ref, w2_ref, b2_ref,
                     out_ref):
    """Fused forward: MoE conv layer 1 -> MoE conv layer 2 -> fc1/ReLU/fc2/log_softmax.

    Everything lives in VMEM; single grid step; batch is a static unroll.
    """
    batch = out_ref.shape[0]
    n_exp = gates1_ref.shape[1]
    c1 = we1_ref.shape[1] // n_exp          # layer-1 expert channels (16)
    p1 = patches1_ref.shape[0] // batch     # layer-1 spatial positions (16)
    h_out = w1_ref.shape[0]                 # layer-2 output spatial side (14)
    lanes2 = w1_ref.shape[1]                # 14 * 32 = 448 lane-dense conv row

    # ---- layer-1 experts: both batch rows and both experts in ONE matmul ----
    h1 = jnp.dot(patches1_ref[...], we1_ref[...],
                 preferred_element_type=jnp.float32)        # (B*P1, E*C1)
    h1 = jnp.maximum(h1 + be1_ref[...], 0.0)                # per-expert ReLU

    for b in range(batch):                                  # static unroll (B=2)
        hb = h1[b * p1:(b + 1) * p1, :]                     # (16, 32)

        # layer-1 gate combine (gates precomputed in the wrapper -> off the MXU)
        y1 = gates1_ref[b:b + 1, 0:1] * hb[:, :c1]
        for e in range(1, n_exp):
            y1 = y1 + gates1_ref[b:b + 1, e:e + 1] * hb[:, e * c1:(e + 1) * c1]
        # y1 (16, 16) is exactly the layer-2 input "image" (rows=p1, cols=c1).

        # ---- layer-2 gating: elementwise multiply + reduce (VPU/XLU only) ----
        logits2 = [_sum_all(y1 * wg2_ref[e]) for e in range(n_exp)]   # (1,1) each
        m = logits2[0]
        for l in logits2[1:]:
            m = jnp.maximum(m, l)
        exps = [jnp.exp(l - m) for l in logits2]
        denom = exps[0]
        for t in exps[1:]:
            denom = denom + t
        g2 = [t / denom for t in exps]                                # (1,1) gates

        # ---- layer-2 expert conv: banded matmuls == in-kernel im2col ---------
        y1b = y1.astype(jnp.bfloat16)
        y2 = jnp.zeros((h_out, lanes2), jnp.float32)
        for e in range(n_exp):                              # static unroll (E=2)
            conv = jnp.zeros((h_out, lanes2), jnp.float32)
            for dy in range(3):                             # 3 kernel-row shifts
                conv = conv + jnp.dot(y1b[dy:dy + h_out, :],
                                      k2_ref[dy * n_exp + e],
                                      preferred_element_type=jnp.float32)
            conv = jnp.maximum(conv + bconv2_ref[e], 0.0)   # (14, 448) lane-dense
            y2 = y2 + g2[e] * conv

        # ---- head: fc1 + ReLU + fc2 + log_softmax ----------------------------
        y2b = y2.astype(jnp.bfloat16)
        acc = jnp.zeros((1, w1_ref.shape[2]), jnp.float32)
        for i in range(h_out):                              # static unroll (14)
            acc = acc + jnp.dot(y2b[i:i + 1, :], w1_ref[i],
                                preferred_element_type=jnp.float32)
        hfc = jnp.maximum(acc + b1_ref[...], 0.0)           # (1, 128)
        logits = jnp.dot(hfc.astype(jnp.bfloat16), w2_ref[...],
                         preferred_element_type=jnp.float32) + b2_ref[...]
        z = logits - jnp.max(logits, axis=-1, keepdims=True)
        lse = jnp.log(jnp.sum(jnp.exp(z), axis=-1, keepdims=True))
        out_ref[b:b + 1, :] = z - lse


# ----------------------------------------------------------------------------
# Wrapper glue (tiny XLA ops on inputs / parameter repacking, outside the kernel)
# ----------------------------------------------------------------------------
def im2col_3x3(img):
    """(B, H, W) single-channel -> (B, (H-2)*(W-2), 9) valid 3x3 patches."""
    b, h, w = img.shape
    ho, wo = h - 2, w - 2
    cols = [img[:, dy:dy + ho, dx:dx + wo].reshape(b, ho * wo)
            for dy in range(3) for dx in range(3)]
    return jnp.stack(cols, axis=-1)


def _pack_banded_conv(we, h_in):
    """Pack (E, 9, C) 3x3 conv kernels into per-(kernel-row, expert) banded matrices.

    Returns k of shape (3*E, h_in, (h_in-2)*C) with
      k[dy*E + e, n, j*C + c] = we[e, 3*dy + (n - j), c]  if 0 <= n - j <= 2 else 0
    so that  sum_dy  img[dy:dy+h_out, :] @ k[dy*E+e]  equals the valid 3x3 conv of
    expert e with a channels-last (j, c) lane layout.
    """
    n_exp, _, c = we.shape
    ho = h_in - 2
    col = jnp.arange(h_in)[None, :, None]           # input column index n
    j = jnp.arange(ho)[None, None, :]               # output column index
    s = jnp.arange(3)[:, None, None]                # horizontal tap dx
    onehot = (col == j + s).astype(we.dtype)        # (3, h_in, ho)
    ks = []
    for dy in range(3):
        w_sub = we[:, 3 * dy:3 * dy + 3, :]         # (E, 3, C) taps of row dy
        k_dy = jnp.einsum('snj,esk->enjk', onehot, w_sub)   # (E, h_in, ho, C)
        ks.append(k_dy.reshape(n_exp, h_in, ho * c))
    return jnp.stack(ks, axis=0).reshape(3 * n_exp, h_in, ho * c)


def multi_level_expert_forward(x, params):
    wg1, wg2 = params["wg1"], params["wg2"]
    we1, be1 = params["we1"], params["be1"]
    we2, be2 = params["we2"], params["be2"]
    w1, b1, w2, b2 = params["w1"], params["b1"], params["w2"], params["b2"]

    batch, d_in = x.shape
    n_exp, _, c1 = we1.shape
    c2 = we2.shape[2]
    h0 = int(math.isqrt(d_in))                      # 6
    p1 = (h0 - 2) ** 2                              # 16 layer-1 spatial positions
    h1 = int(math.isqrt(p1 * c1))                   # 16 layer-2 image side
    ho = h1 - 2                                     # 14
    n_out = w2.shape[1]

    # The fused kernel relies on the layer-1 (P1, C1) activation matrix being
    # exactly the layer-2 (H1, H1) input image (holds for this module's sizes).
    assert p1 == h1 and c1 == h1

    gates1 = jax.nn.softmax(jnp.dot(x, wg1), axis=-1)                   # (B, E)
    patches1 = im2col_3x3(x.reshape(batch, h0, h0)).reshape(batch * p1, 9)
    we1_cat = jnp.transpose(we1, (1, 0, 2)).reshape(9, n_exp * c1)      # (9, 32)
    be1_cat = be1.reshape(1, n_exp * c1)                                # (1, 32)
    wg2e = wg2.T.reshape(n_exp, p1, c1)                                 # (E, 16, 16)
    k2 = _pack_banded_conv(we2, h1)                                     # (3E, 16, 448)
    bconv2 = jnp.broadcast_to(be2.reshape(n_exp, 1, c2),
                              (n_exp, ho, c2)).reshape(n_exp, 1, ho * c2)
    w1_3d = w1.reshape(ho, ho * c2, w1.shape[1])                        # (14, 448, 128)

    bf16 = jnp.bfloat16
    return pl.pallas_call(
        fused_moe_kernel,
        out_shape=jax.ShapeDtypeStruct((batch, n_out), jnp.float32),
    )(patches1.astype(bf16), gates1, we1_cat.astype(bf16), be1_cat,
      wg2e, k2.astype(bf16), bconv2, w1_3d.astype(bf16), b1,
      w2.astype(bf16), b2)


# ----------------------------------------------------------------------------
# Pure-JAX reference (same semantics as the unfused version) for a sanity check
# ----------------------------------------------------------------------------
def reference_forward(x, params):
    def moe_layer(xf, wg, we, be):
        b, d = xf.shape
        h = int(math.isqrt(d))
        gates = jax.nn.softmax(jnp.dot(xf, wg), axis=-1)                # (B, E)
        patches = im2col_3x3(xf.reshape(b, h, h))                       # (B, P, 9)
        y = jnp.zeros((b, patches.shape[1], we.shape[2]), jnp.float32)
        for e in range(we.shape[0]):
            he = jnp.maximum(jnp.einsum('bpt,tc->bpc', patches, we[e]) + be[e], 0.0)
            y = y + gates[:, e][:, None, None] * he
        return y.reshape(b, -1)

    y = moe_layer(x, params["wg1"], params["we1"], params["be1"])
    y = moe_layer(y, params["wg2"], params["we2"], params["be2"])
    h = jnp.maximum(jnp.dot(y, params["w1"]) + params["b1"], 0.0)
    logits = jnp.dot(h, params["w2"]) + params["b2"]
    return jax.nn.log_softmax(logits, axis=-1)


# ----------------------------------------------------------------------------
# Main
# ----------------------------------------------------------------------------
if __name__ == "__main__":
    B = 2
    in_size = 36          # 6x6 single-channel image, passed flattened
    out_size = 10
    num_experts = 2
    H0 = 6
    C1 = 2 ** 4           # level-1 expert output channels
    C2 = 2 ** 5           # level-2 expert output channels
    out_size_1 = (H0 - 2) ** 2 * C1                 # 256
    H1 = int(math.isqrt(out_size_1))                # 16
    out_size_2 = (H1 - 2) ** 2 * C2                 # 6272

    key = jax.random.PRNGKey(0)
    ks = jax.random.split(key, 10)
    x = jax.random.normal(ks[0], (B, in_size), jnp.float32)

    params = {
        "wg1": jax.random.normal(ks[1], (in_size, num_experts), jnp.float32) * 0.01,
        "wg2": jax.random.normal(ks[2], (out_size_1, num_experts), jnp.float32) * 0.01,
        "we1": jax.random.normal(ks[3], (num_experts, 9, C1), jnp.float32) / 3.0,
        "be1": jax.random.normal(ks[4], (num_experts, 1, C1), jnp.float32) * 0.1,
        "we2": jax.random.normal(ks[5], (num_experts, 9, C2), jnp.float32) / 3.0,
        "be2": jax.random.normal(ks[6], (num_experts, 1, C2), jnp.float32) * 0.1,
        "w1": jax.random.normal(ks[7], (out_size_2, 128), jnp.float32) / math.sqrt(out_size_2),
        "b1": jnp.zeros((1, 128), jnp.float32),
        "w2": jax.random.normal(ks[8], (128, out_size), jnp.float32) / math.sqrt(128),
        "b2": jnp.zeros((1, out_size), jnp.float32),
    }

    fwd = jax.jit(multi_level_expert_forward)
    out = jax.block_until_ready(fwd(x, params))
    ref = jax.block_until_ready(reference_forward(x, params))

    assert out.shape == (B, out_size)
    assert bool(jnp.all(jnp.isfinite(out)))
    # log_softmax rows exponentiate to probability simplices
    assert bool(jnp.allclose(jnp.sum(jnp.exp(out), axis=-1), 1.0, atol=1e-4))
    # matches the f32 reference up to bf16-matmul rounding
    assert bool(jnp.allclose(out, ref, atol=1e-1))
    print("KERNEL_OK")
</pallas_src>

<mosaic_0001>
module attributes {stable_mosaic.version = 11 : i64} {
  func.func @fused_moe_kernel(%arg0: memref<32x9xbf16, #tpu.memory_space<vmem>>, %arg1: memref<2x2xf32, #tpu.memory_space<vmem>>, %arg2: memref<9x32xbf16, #tpu.memory_space<vmem>>, %arg3: memref<1x32xf32, #tpu.memory_space<vmem>>, %arg4: memref<2x16x16xf32, #tpu.memory_space<vmem>>, %arg5: memref<6x16x448xbf16, #tpu.memory_space<vmem>>, %arg6: memref<2x1x448xf32, #tpu.memory_space<vmem>>, %arg7: memref<14x448x128xbf16, #tpu.memory_space<vmem>>, %arg8: memref<1x128xf32, #tpu.memory_space<vmem>>, %arg9: memref<128x10xbf16, #tpu.memory_space<vmem>>, %arg10: memref<1x10xf32, #tpu.memory_space<vmem>>, %arg11: memref<2x10xf32, #tpu.memory_space<vmem>>) attributes {dimension_semantics = [], scalar_prefetch = 0 : i64, scratch_operands = 0 : i64, tpu.core_type = #tpu.core_type<tc>} {
    %c0 = arith.constant 0 : index
    %c0_0 = arith.constant 0 : index
    %0 = vector.load %arg0[%c0, %c0_0] : memref<32x9xbf16, #tpu.memory_space<vmem>>, vector<32x9xbf16>
    %c0_1 = arith.constant 0 : index
    %c0_2 = arith.constant 0 : index
    %1 = vector.load %arg2[%c0_1, %c0_2] : memref<9x32xbf16, #tpu.memory_space<vmem>>, vector<9x32xbf16>
    %cst = arith.constant dense<0.000000e+00> : vector<32x32xf32>
    %2 = tpu.matmul %0, %1, %cst {dimension_numbers = #tpu.dot_dimension_numbers<[1], [0], [0], [1], [0, 0, 1, 1], [], []>} : vector<32x9xbf16>, vector<9x32xbf16>, vector<32x32xf32> -> vector<32x32xf32>
    %c0_3 = arith.constant 0 : index
    %c0_4 = arith.constant 0 : index
    %3 = vector.load %arg3[%c0_3, %c0_4] : memref<1x32xf32, #tpu.memory_space<vmem>>, vector<1x32xf32>
    %4 = vector.broadcast %3 : vector<1x32xf32> to vector<32x32xf32>
    %5 = arith.addf %2, %4 : vector<32x32xf32>
    %cst_5 = arith.constant 0.000000e+00 : f32
    %6 = vector.broadcast %cst_5 : f32 to vector<32x32xf32>
    %7 = arith.maximumf %5, %6 : vector<32x32xf32>
    %8 = vector.extract_strided_slice %7 {offsets = [0, 0], sizes = [16, 32], strides = [1, 1]} : vector<32x32xf32> to vector<16x32xf32>
    %c0_6 = arith.constant 0 : index
    %c0_7 = arith.constant 0 : index
    %9 = vector.load %arg1[%c0_6, %c0_7] : memref<2x2xf32, #tpu.memory_space<vmem>>, vector<1x1xf32>
    %10 = vector.extract_strided_slice %8 {offsets = [0, 0], sizes = [16, 16], strides = [1, 1]} : vector<16x32xf32> to vector<16x16xf32>
    %11 = vector.broadcast %9 : vector<1x1xf32> to vector<16x16xf32>
    %12 = arith.mulf %11, %10 : vector<16x16xf32>
    %c0_8 = arith.constant 0 : index
    %c1 = arith.constant 1 : index
    %13 = vector.load %arg1[%c0_8, %c1] : memref<2x2xf32, #tpu.memory_space<vmem>>, vector<1x1xf32>
    %14 = vector.extract_strided_slice %8 {offsets = [0, 16], sizes = [16, 16], strides = [1, 1]} : vector<16x32xf32> to vector<16x16xf32>
    %15 = vector.broadcast %13 : vector<1x1xf32> to vector<16x16xf32>
    %16 = arith.mulf %15, %14 : vector<16x16xf32>
    %17 = arith.addf %12, %16 : vector<16x16xf32>
    %c0_9 = arith.constant 0 : index
    %c0_10 = arith.constant 0 : index
    %c0_11 = arith.constant 0 : index
    %18 = vector.load %arg4[%c0_9, %c0_10, %c0_11] : memref<2x16x16xf32, #tpu.memory_space<vmem>>, vector<1x16x16xf32>
    %19 = vector.shape_cast %18 : vector<1x16x16xf32> to vector<16x16xf32>
    %20 = arith.mulf %17, %19 : vector<16x16xf32>
    %cst_12 = arith.constant dense<0.000000e+00> : vector<16xf32>
    %21 = vector.multi_reduction <add>, %20, %cst_12 [1] : vector<16x16xf32> to vector<16xf32>
    %22 = vector.shape_cast %21 : vector<16xf32> to vector<16x1xf32>
    %cst_13 = arith.constant dense<0.000000e+00> : vector<1xf32>
    %23 = vector.multi_reduction <add>, %22, %cst_13 [0] : vector<16x1xf32> to vector<1xf32>
    %24 = vector.shape_cast %23 : vector<1xf32> to vector<1x1xf32>
    %c1_14 = arith.constant 1 : index
    %c0_15 = arith.constant 0 : index
    %c0_16 = arith.constant 0 : index
    %25 = vector.load %arg4[%c1_14, %c0_15, %c0_16] : memref<2x16x16xf32, #tpu.memory_space<vmem>>, vector<1x16x16xf32>
    %26 = vector.shape_cast %25 : vector<1x16x16xf32> to vector<16x16xf32>
    %27 = arith.mulf %17, %26 : vector<16x16xf32>
    %cst_17 = arith.constant dense<0.000000e+00> : vector<16xf32>
    %28 = vector.multi_reduction <add>, %27, %cst_17 [1] : vector<16x16xf32> to vector<16xf32>
    %29 = vector.shape_cast %28 : vector<16xf32> to vector<16x1xf32>
    %cst_18 = arith.constant dense<0.000000e+00> : vector<1xf32>
    %30 = vector.multi_reduction <add>, %29, %cst_18 [0] : vector<16x1xf32> to vector<1xf32>
    %31 = vector.shape_cast %30 : vector<1xf32> to vector<1x1xf32>
    %32 = arith.maximumf %24, %31 : vector<1x1xf32>
    %33 = arith.subf %24, %32 : vector<1x1xf32>
    %34 = math.exp %33 : vector<1x1xf32>
    %35 = arith.subf %31, %32 : vector<1x1xf32>
    %36 = math.exp %35 : vector<1x1xf32>
    %37 = arith.addf %34, %36 : vector<1x1xf32>
    %38 = arith.divf %34, %37 : vector<1x1xf32>
    %39 = arith.divf %36, %37 : vector<1x1xf32>
    %40 = arith.truncf %17 : vector<16x16xf32> to vector<16x16xbf16>
    %cst_19 = arith.constant 0.000000e+00 : f32
    %41 = vector.broadcast %cst_19 : f32 to vector<14x448xf32>
    %cst_20 = arith.constant 0.000000e+00 : f32
    %42 = vector.broadcast %cst_20 : f32 to vector<14x448xf32>
    %43 = vector.extract_strided_slice %40 {offsets = [0, 0], sizes = [14, 16], strides = [1, 1]} : vector<16x16xbf16> to vector<14x16xbf16>
    %c0_21 = arith.constant 0 : index
    %c0_22 = arith.constant 0 : index
    %c0_23 = arith.constant 0 : index
    %44 = vector.load %arg5[%c0_21, %c0_22, %c0_23] : memref<6x16x448xbf16, #tpu.memory_space<vmem>>, vector<1x16x448xbf16>
    %45 = vector.shape_cast %44 : vector<1x16x448xbf16> to vector<16x448xbf16>
    %cst_24 = arith.constant dense<0.000000e+00> : vector<14x448xf32>
    %46 = tpu.matmul %43, %45, %cst_24 {dimension_numbers = #tpu.dot_dimension_numbers<[1], [0], [0], [1], [0, 0, 1, 1], [], []>} : vector<14x16xbf16>, vector<16x448xbf16>, vector<14x448xf32> -> vector<14x448xf32>
    %47 = arith.addf %42, %46 : vector<14x448xf32>
    %48 = vector.extract_strided_slice %40 {offsets = [1, 0], sizes = [14, 16], strides = [1, 1]} : vector<16x16xbf16> to vector<14x16xbf16>
    %c2 = arith.constant 2 : index
    %c0_25 = arith.constant 0 : index
    %c0_26 = arith.constant 0 : index
    %49 = vector.load %arg5[%c2, %c0_25, %c0_26] : memref<6x16x448xbf16, #tpu.memory_space<vmem>>, vector<1x16x448xbf16>
    %50 = vector.shape_cast %49 : vector<1x16x448xbf16> to vector<16x448xbf16>
    %cst_27 = arith.constant dense<0.000000e+00> : vector<14x448xf32>
    %51 = tpu.matmul %48, %50, %cst_27 {dimension_numbers = #tpu.dot_dimension_numbers<[1], [0], [0], [1], [0, 0, 1, 1], [], []>} : vector<14x16xbf16>, vector<16x448xbf16>, vector<14x448xf32> -> vector<14x448xf32>
    %52 = arith.addf %47, %51 : vector<14x448xf32>
    %53 = vector.extract_strided_slice %40 {offsets = [2, 0], sizes = [14, 16], strides = [1, 1]} : vector<16x16xbf16> to vector<14x16xbf16>
    %c4 = arith.constant 4 : index
    %c0_28 = arith.constant 0 : index
    %c0_29 = arith.constant 0 : index
    %54 = vector.load %arg5[%c4, %c0_28, %c0_29] : memref<6x16x448xbf16, #tpu.memory_space<vmem>>, vector<1x16x448xbf16>
    %55 = vector.shape_cast %54 : vector<1x16x448xbf16> to vector<16x448xbf16>
    %cst_30 = arith.constant dense<0.000000e+00> : vector<14x448xf32>
    %56 = tpu.matmul %53, %55, %cst_30 {dimension_numbers = #tpu.dot_dimension_numbers<[1], [0], [0], [1], [0, 0, 1, 1], [], []>} : vector<14x16xbf16>, vector<16x448xbf16>, vector<14x448xf32> -> vector<14x448xf32>
    %57 = arith.addf %52, %56 : vector<14x448xf32>
    %c0_31 = arith.constant 0 : index
    %c0_32 = arith.constant 0 : index
    %c0_33 = arith.constant 0 : index
    %58 = vector.load %arg6[%c0_31, %c0_32, %c0_33] : memref<2x1x448xf32, #tpu.memory_space<vmem>>, vector<1x1x448xf32>
    %59 = vector.shape_cast %58 : vector<1x1x448xf32> to vector<1x448xf32>
    %60 = vector.broadcast %59 : vector<1x448xf32> to vector<14x448xf32>
    %61 = arith.addf %57, %60 : vector<14x448xf32>
    %cst_34 = arith.constant 0.000000e+00 : f32
    %62 = vector.broadcast %cst_34 : f32 to vector<14x448xf32>
    %63 = arith.maximumf %61, %62 : vector<14x448xf32>
    %64 = vector.broadcast %38 : vector<1x1xf32> to vector<14x448xf32>
    %65 = arith.mulf %64, %63 : vector<14x448xf32>
    %66 = arith.addf %41, %65 : vector<14x448xf32>
    %cst_35 = arith.constant 0.000000e+00 : f32
    %67 = vector.broadcast %cst_35 : f32 to vector<14x448xf32>
    %68 = vector.extract_strided_slice %40 {offsets = [0, 0], sizes = [14, 16], strides = [1, 1]} : vector<16x16xbf16> to vector<14x16xbf16>
    %c1_36 = arith.constant 1 : index
    %c0_37 = arith.constant 0 : index
    %c0_38 = arith.constant 0 : index
    %69 = vector.load %arg5[%c1_36, %c0_37, %c0_38] : memref<6x16x448xbf16, #tpu.memory_space<vmem>>, vector<1x16x448xbf16>
    %70 = vector.shape_cast %69 : vector<1x16x448xbf16> to vector<16x448xbf16>
    %cst_39 = arith.constant dense<0.000000e+00> : vector<14x448xf32>
    %71 = tpu.matmul %68, %70, %cst_39 {dimension_numbers = #tpu.dot_dimension_numbers<[1], [0], [0], [1], [0, 0, 1, 1], [], []>} : vector<14x16xbf16>, vector<16x448xbf16>, vector<14x448xf32> -> vector<14x448xf32>
    %72 = arith.addf %67, %71 : vector<14x448xf32>
    %73 = vector.extract_strided_slice %40 {offsets = [1, 0], sizes = [14, 16], strides = [1, 1]} : vector<16x16xbf16> to vector<14x16xbf16>
    %c3 = arith.constant 3 : index
    %c0_40 = arith.constant 0 : index
    %c0_41 = arith.constant 0 : index
    %74 = vector.load %arg5[%c3, %c0_40, %c0_41] : memref<6x16x448xbf16, #tpu.memory_space<vmem>>, vector<1x16x448xbf16>
    %75 = vector.shape_cast %74 : vector<1x16x448xbf16> to vector<16x448xbf16>
    %cst_42 = arith.constant dense<0.000000e+00> : vector<14x448xf32>
    %76 = tpu.matmul %73, %75, %cst_42 {dimension_numbers = #tpu.dot_dimension_numbers<[1], [0], [0], [1], [0, 0, 1, 1], [], []>} : vector<14x16xbf16>, vector<16x448xbf16>, vector<14x448xf32> -> vector<14x448xf32>
    %77 = arith.addf %72, %76 : vector<14x448xf32>
    %78 = vector.extract_strided_slice %40 {offsets = [2, 0], sizes = [14, 16], strides = [1, 1]} : vector<16x16xbf16> to vector<14x16xbf16>
    %c5 = arith.constant 5 : index
    %c0_43 = arith.constant 0 : index
    %c0_44 = arith.constant 0 : index
    %79 = vector.load %arg5[%c5, %c0_43, %c0_44] : memref<6x16x448xbf16, #tpu.memory_space<vmem>>, vector<1x16x448xbf16>
    %80 = vector.shape_cast %79 : vector<1x16x448xbf16> to vector<16x448xbf16>
    %cst_45 = arith.constant dense<0.000000e+00> : vector<14x448xf32>
    %81 = tpu.matmul %78, %80, %cst_45 {dimension_numbers = #tpu.dot_dimension_numbers<[1], [0], [0], [1], [0, 0, 1, 1], [], []>} : vector<14x16xbf16>, vector<16x448xbf16>, vector<14x448xf32> -> vector<14x448xf32>
    %82 = arith.addf %77, %81 : vector<14x448xf32>
    %c1_46 = arith.constant 1 : index
    %c0_47 = arith.constant 0 : index
    %c0_48 = arith.constant 0 : index
    %83 = vector.load %arg6[%c1_46, %c0_47, %c0_48] : memref<2x1x448xf32, #tpu.memory_space<vmem>>, vector<1x1x448xf32>
    %84 = vector.shape_cast %83 : vector<1x1x448xf32> to vector<1x448xf32>
    %85 = vector.broadcast %84 : vector<1x448xf32> to vector<14x448xf32>
    %86 = arith.addf %82, %85 : vector<14x448xf32>
    %cst_49 = arith.constant 0.000000e+00 : f32
    %87 = vector.broadcast %cst_49 : f32 to vector<14x448xf32>
    %88 = arith.maximumf %86, %87 : vector<14x448xf32>
    %89 = vector.broadcast %39 : vector<1x1xf32> to vector<14x448xf32>
    %90 = arith.mulf %89, %88 : vector<14x448xf32>
    %91 = arith.addf %66, %90 : vector<14x448xf32>
    %92 = arith.truncf %91 : vector<14x448xf32> to vector<14x448xbf16>
    %cst_50 = arith.constant 0.000000e+00 : f32
    %93 = vector.broadcast %cst_50 : f32 to vector<1x128xf32>
    %94 = vector.extract_strided_slice %92 {offsets = [0, 0], sizes = [1, 448], strides = [1, 1]} : vector<14x448xbf16> to vector<1x448xbf16>
    %c0_51 = arith.constant 0 : index
    %c0_52 = arith.constant 0 : index
    %c0_53 = arith.constant 0 : index
    %95 = vector.load %arg7[%c0_51, %c0_52, %c0_53] : memref<14x448x128xbf16, #tpu.memory_space<vmem>>, vector<1x448x128xbf16>
    %96 = vector.shape_cast %95 : vector<1x448x128xbf16> to vector<448x128xbf16>
    %cst_54 = arith.constant dense<0.000000e+00> : vector<1x128xf32>
    %97 = tpu.matmul %94, %96, %cst_54 {dimension_numbers = #tpu.dot_dimension_numbers<[1], [0], [0], [1], [0, 0, 1, 1], [], []>} : vector<1x448xbf16>, vector<448x128xbf16>, vector<1x128xf32> -> vector<1x128xf32>
    %98 = arith.addf %93, %97 : vector<1x128xf32>
    %99 = vector.extract_strided_slice %92 {offsets = [1, 0], sizes = [1, 448], strides = [1, 1]} : vector<14x448xbf16> to vector<1x448xbf16>
    %c1_55 = arith.constant 1 : index
    %c0_56 = arith.constant 0 : index
    %c0_57 = arith.constant 0 : index
    %100 = vector.load %arg7[%c1_55, %c0_56, %c0_57] : memref<14x448x128xbf16, #tpu.memory_space<vmem>>, vector<1x448x128xbf16>
    %101 = vector.shape_cast %100 : vector<1x448x128xbf16> to vector<448x128xbf16>
    %cst_58 = arith.constant dense<0.000000e+00> : vector<1x128xf32>
    %102 = tpu.matmul %99, %101, %cst_58 {dimension_numbers = #tpu.dot_dimension_numbers<[1], [0], [0], [1], [0, 0, 1, 1], [], []>} : vector<1x448xbf16>, vector<448x128xbf16>, vector<1x128xf32> -> vector<1x128xf32>
    %103 = arith.addf %98, %102 : vector<1x128xf32>
    %104 = vector.extract_strided_slice %92 {offsets = [2, 0], sizes = [1, 448], strides = [1, 1]} : vector<14x448xbf16> to vector<1x448xbf16>
    %c2_59 = arith.constant 2 : index
    %c0_60 = arith.constant 0 : index
    %c0_61 = arith.constant 0 : index
    %105 = vector.load %arg7[%c2_59, %c0_60, %c0_61] : memref<14x448x128xbf16, #tpu.memory_space<vmem>>, vector<1x448x128xbf16>
    %106 = vector.shape_cast %105 : vector<1x448x128xbf16> to vector<448x128xbf16>
    %cst_62 = arith.constant dense<0.000000e+00> : vector<1x128xf32>
    %107 = tpu.matmul %104, %106, %cst_62 {dimension_numbers = #tpu.dot_dimension_numbers<[1], [0], [0], [1], [0, 0, 1, 1], [], []>} : vector<1x448xbf16>, vector<448x128xbf16>, vector<1x128xf32> -> vector<1x128xf32>
    %108 = arith.addf %103, %107 : vector<1x128xf32>
    %109 = vector.extract_strided_slice %92 {offsets = [3, 0], sizes = [1, 448], strides = [1, 1]} : vector<14x448xbf16> to vector<1x448xbf16>
    %c3_63 = arith.constant 3 : index
    %c0_64 = arith.constant 0 : index
    %c0_65 = arith.constant 0 : index
    %110 = vector.load %arg7[%c3_63, %c0_64, %c0_65] : memref<14x448x128xbf16, #tpu.memory_space<vmem>>, vector<1x448x128xbf16>
    %111 = vector.shape_cast %110 : vector<1x448x128xbf16> to vector<448x128xbf16>
    %cst_66 = arith.constant dense<0.000000e+00> : vector<1x128xf32>
    %112 = tpu.matmul %109, %111, %cst_66 {dimension_numbers = #tpu.dot_dimension_numbers<[1], [0], [0], [1], [0, 0, 1, 1], [], []>} : vector<1x448xbf16>, vector<448x128xbf16>, vector<1x128xf32> -> vector<1x128xf32>
    %113 = arith.addf %108, %112 : vector<1x128xf32>
    %114 = vector.extract_strided_slice %92 {offsets = [4, 0], sizes = [1, 448], strides = [1, 1]} : vector<14x448xbf16> to vector<1x448xbf16>
    %c4_67 = arith.constant 4 : index
    %c0_68 = arith.constant 0 : index
    %c0_69 = arith.constant 0 : index
    %115 = vector.load %arg7[%c4_67, %c0_68, %c0_69] : memref<14x448x128xbf16, #tpu.memory_space<vmem>>, vector<1x448x128xbf16>
    %116 = vector.shape_cast %115 : vector<1x448x128xbf16> to vector<448x128xbf16>
    %cst_70 = arith.constant dense<0.000000e+00> : vector<1x128xf32>
    %117 = tpu.matmul %114, %116, %cst_70 {dimension_numbers = #tpu.dot_dimension_numbers<[1], [0], [0], [1], [0, 0, 1, 1], [], []>} : vector<1x448xbf16>, vector<448x128xbf16>, vector<1x128xf32> -> vector<1x128xf32>
    %118 = arith.addf %113, %117 : vector<1x128xf32>
    %119 = vector.extract_strided_slice %92 {offsets = [5, 0], sizes = [1, 448], strides = [1, 1]} : vector<14x448xbf16> to vector<1x448xbf16>
    %c5_71 = arith.constant 5 : index
    %c0_72 = arith.constant 0 : index
    %c0_73 = arith.constant 0 : index
    %120 = vector.load %arg7[%c5_71, %c0_72, %c0_73] : memref<14x448x128xbf16, #tpu.memory_space<vmem>>, vector<1x448x128xbf16>
    %121 = vector.shape_cast %120 : vector<1x448x128xbf16> to vector<448x128xbf16>
    %cst_74 = arith.constant dense<0.000000e+00> : vector<1x128xf32>
    %122 = tpu.matmul %119, %121, %cst_74 {dimension_numbers = #tpu.dot_dimension_numbers<[1], [0], [0], [1], [0, 0, 1, 1], [], []>} : vector<1x448xbf16>, vector<448x128xbf16>, vector<1x128xf32> -> vector<1x128xf32>
    %123 = arith.addf %118, %122 : vector<1x128xf32>
    %124 = vector.extract_strided_slice %92 {offsets = [6, 0], sizes = [1, 448], strides = [1, 1]} : vector<14x448xbf16> to vector<1x448xbf16>
    %c6 = arith.constant 6 : index
    %c0_75 = arith.constant 0 : index
    %c0_76 = arith.constant 0 : index
    %125 = vector.load %arg7[%c6, %c0_75, %c0_76] : memref<14x448x128xbf16, #tpu.memory_space<vmem>>, vector<1x448x128xbf16>
    %126 = vector.shape_cast %125 : vector<1x448x128xbf16> to vector<448x128xbf16>
    %cst_77 = arith.constant dense<0.000000e+00> : vector<1x128xf32>
    %127 = tpu.matmul %124, %126, %cst_77 {dimension_numbers = #tpu.dot_dimension_numbers<[1], [0], [0], [1], [0, 0, 1, 1], [], []>} : vector<1x448xbf16>, vector<448x128xbf16>, vector<1x128xf32> -> vector<1x128xf32>
    %128 = arith.addf %123, %127 : vector<1x128xf32>
    %129 = vector.extract_strided_slice %92 {offsets = [7, 0], sizes = [1, 448], strides = [1, 1]} : vector<14x448xbf16> to vector<1x448xbf16>
    %c7 = arith.constant 7 : index
    %c0_78 = arith.constant 0 : index
    %c0_79 = arith.constant 0 : index
    %130 = vector.load %arg7[%c7, %c0_78, %c0_79] : memref<14x448x128xbf16, #tpu.memory_space<vmem>>, vector<1x448x128xbf16>
    %131 = vector.shape_cast %130 : vector<1x448x128xbf16> to vector<448x128xbf16>
    %cst_80 = arith.constant dense<0.000000e+00> : vector<1x128xf32>
    %132 = tpu.matmul %129, %131, %cst_80 {dimension_numbers = #tpu.dot_dimension_numbers<[1], [0], [0], [1], [0, 0, 1, 1], [], []>} : vector<1x448xbf16>, vector<448x128xbf16>, vector<1x128xf32> -> vector<1x128xf32>
    %133 = arith.addf %128, %132 : vector<1x128xf32>
    %134 = vector.extract_strided_slice %92 {offsets = [8, 0], sizes = [1, 448], strides = [1, 1]} : vector<14x448xbf16> to vector<1x448xbf16>
    %c8 = arith.constant 8 : index
    %c0_81 = arith.constant 0 : index
    %c0_82 = arith.constant 0 : index
    %135 = vector.load %arg7[%c8, %c0_81, %c0_82] : memref<14x448x128xbf16, #tpu.memory_space<vmem>>, vector<1x448x128xbf16>
    %136 = vector.shape_cast %135 : vector<1x448x128xbf16> to vector<448x128xbf16>
    %cst_83 = arith.constant dense<0.000000e+00> : vector<1x128xf32>
    %137 = tpu.matmul %134, %136, %cst_83 {dimension_numbers = #tpu.dot_dimension_numbers<[1], [0], [0], [1], [0, 0, 1, 1], [], []>} : vector<1x448xbf16>, vector<448x128xbf16>, vector<1x128xf32> -> vector<1x128xf32>
    %138 = arith.addf %133, %137 : vector<1x128xf32>
    %139 = vector.extract_strided_slice %92 {offsets = [9, 0], sizes = [1, 448], strides = [1, 1]} : vector<14x448xbf16> to vector<1x448xbf16>
    %c9 = arith.constant 9 : index
    %c0_84 = arith.constant 0 : index
    %c0_85 = arith.constant 0 : index
    %140 = vector.load %arg7[%c9, %c0_84, %c0_85] : memref<14x448x128xbf16, #tpu.memory_space<vmem>>, vector<1x448x128xbf16>
    %141 = vector.shape_cast %140 : vector<1x448x128xbf16> to vector<448x128xbf16>
    %cst_86 = arith.constant dense<0.000000e+00> : vector<1x128xf32>
    %142 = tpu.matmul %139, %141, %cst_86 {dimension_numbers = #tpu.dot_dimension_numbers<[1], [0], [0], [1], [0, 0, 1, 1], [], []>} : vector<1x448xbf16>, vector<448x128xbf16>, vector<1x128xf32> -> vector<1x128xf32>
    %143 = arith.addf %138, %142 : vector<1x128xf32>
    %144 = vector.extract_strided_slice %92 {offsets = [10, 0], sizes = [1, 448], strides = [1, 1]} : vector<14x448xbf16> to vector<1x448xbf16>
    %c10 = arith.constant 10 : index
    %c0_87 = arith.constant 0 : index
    %c0_88 = arith.constant 0 : index
    %145 = vector.load %arg7[%c10, %c0_87, %c0_88] : memref<14x448x128xbf16, #tpu.memory_space<vmem>>, vector<1x448x128xbf16>
    %146 = vector.shape_cast %145 : vector<1x448x128xbf16> to vector<448x128xbf16>
    %cst_89 = arith.constant dense<0.000000e+00> : vector<1x128xf32>
    %147 = tpu.matmul %144, %146, %cst_89 {dimension_numbers = #tpu.dot_dimension_numbers<[1], [0], [0], [1], [0, 0, 1, 1], [], []>} : vector<1x448xbf16>, vector<448x128xbf16>, vector<1x128xf32> -> vector<1x128xf32>
    %148 = arith.addf %143, %147 : vector<1x128xf32>
    %149 = vector.extract_strided_slice %92 {offsets = [11, 0], sizes = [1, 448], strides = [1, 1]} : vector<14x448xbf16> to vector<1x448xbf16>
    %c11 = arith.constant 11 : index
    %c0_90 = arith.constant 0 : index
    %c0_91 = arith.constant 0 : index
    %150 = vector.load %arg7[%c11, %c0_90, %c0_91] : memref<14x448x128xbf16, #tpu.memory_space<vmem>>, vector<1x448x128xbf16>
    %151 = vector.shape_cast %150 : vector<1x448x128xbf16> to vector<448x128xbf16>
    %cst_92 = arith.constant dense<0.000000e+00> : vector<1x128xf32>
    %152 = tpu.matmul %149, %151, %cst_92 {dimension_numbers = #tpu.dot_dimension_numbers<[1], [0], [0], [1], [0, 0, 1, 1], [], []>} : vector<1x448xbf16>, vector<448x128xbf16>, vector<1x128xf32> -> vector<1x128xf32>
    %153 = arith.addf %148, %152 : vector<1x128xf32>
    %154 = vector.extract_strided_slice %92 {offsets = [12, 0], sizes = [1, 448], strides = [1, 1]} : vector<14x448xbf16> to vector<1x448xbf16>
    %c12 = arith.constant 12 : index
    %c0_93 = arith.constant 0 : index
    %c0_94 = arith.constant 0 : index
    %155 = vector.load %arg7[%c12, %c0_93, %c0_94] : memref<14x448x128xbf16, #tpu.memory_space<vmem>>, vector<1x448x128xbf16>
    %156 = vector.shape_cast %155 : vector<1x448x128xbf16> to vector<448x128xbf16>
    %cst_95 = arith.constant dense<0.000000e+00> : vector<1x128xf32>
    %157 = tpu.matmul %154, %156, %cst_95 {dimension_numbers = #tpu.dot_dimension_numbers<[1], [0], [0], [1], [0, 0, 1, 1], [], []>} : vector<1x448xbf16>, vector<448x128xbf16>, vector<1x128xf32> -> vector<1x128xf32>
    %158 = arith.addf %153, %157 : vector<1x128xf32>
    %159 = vector.extract_strided_slice %92 {offsets = [13, 0], sizes = [1, 448], strides = [1, 1]} : vector<14x448xbf16> to vector<1x448xbf16>
    %c13 = arith.constant 13 : index
    %c0_96 = arith.constant 0 : index
    %c0_97 = arith.constant 0 : index
    %160 = vector.load %arg7[%c13, %c0_96, %c0_97] : memref<14x448x128xbf16, #tpu.memory_space<vmem>>, vector<1x448x128xbf16>
    %161 = vector.shape_cast %160 : vector<1x448x128xbf16> to vector<448x128xbf16>
    %cst_98 = arith.constant dense<0.000000e+00> : vector<1x128xf32>
    %162 = tpu.matmul %159, %161, %cst_98 {dimension_numbers = #tpu.dot_dimension_numbers<[1], [0], [0], [1], [0, 0, 1, 1], [], []>} : vector<1x448xbf16>, vector<448x128xbf16>, vector<1x128xf32> -> vector<1x128xf32>
    %163 = arith.addf %158, %162 : vector<1x128xf32>
    %c0_99 = arith.constant 0 : index
    %c0_100 = arith.constant 0 : index
    %164 = vector.load %arg8[%c0_99, %c0_100] : memref<1x128xf32, #tpu.memory_space<vmem>>, vector<1x128xf32>
    %165 = arith.addf %163, %164 : vector<1x128xf32>
    %cst_101 = arith.constant 0.000000e+00 : f32
    %166 = vector.broadcast %cst_101 : f32 to vector<1x128xf32>
    %167 = arith.maximumf %165, %166 : vector<1x128xf32>
    %168 = arith.truncf %167 : vector<1x128xf32> to vector<1x128xbf16>
    %c0_102 = arith.constant 0 : index
    %c0_103 = arith.constant 0 : index
    %169 = vector.load %arg9[%c0_102, %c0_103] : memref<128x10xbf16, #tpu.memory_space<vmem>>, vector<128x10xbf16>
    %cst_104 = arith.constant dense<0.000000e+00> : vector<1x10xf32>
    %170 = tpu.matmul %168, %169, %cst_104 {dimension_numbers = #tpu.dot_dimension_numbers<[1], [0], [0], [1], [0, 0, 1, 1], [], []>} : vector<1x128xbf16>, vector<128x10xbf16>, vector<1x10xf32> -> vector<1x10xf32>
    %c0_105 = arith.constant 0 : index
    %c0_106 = arith.constant 0 : index
    %171 = vector.load %arg10[%c0_105, %c0_106] : memref<1x10xf32, #tpu.memory_space<vmem>>, vector<1x10xf32>
    %172 = arith.addf %170, %171 : vector<1x10xf32>
    %cst_107 = arith.constant dense<0xFF800000> : vector<1xf32>
    %173 = vector.multi_reduction <maximumf>, %172, %cst_107 [1] : vector<1x10xf32> to vector<1xf32>
    %174 = vector.shape_cast %173 : vector<1xf32> to vector<1x1xf32>
    %175 = vector.broadcast %174 : vector<1x1xf32> to vector<1x10xf32>
    %176 = arith.subf %172, %175 : vector<1x10xf32>
    %177 = math.exp %176 : vector<1x10xf32>
    %cst_108 = arith.constant dense<0.000000e+00> : vector<1xf32>
    %178 = vector.multi_reduction <add>, %177, %cst_108 [1] : vector<1x10xf32> to vector<1xf32>
    %179 = vector.shape_cast %178 : vector<1xf32> to vector<1x1xf32>
    %180 = math.log %179 : vector<1x1xf32>
    %181 = vector.broadcast %180 : vector<1x1xf32> to vector<1x10xf32>
    %182 = arith.subf %176, %181 : vector<1x10xf32>
    %c0_109 = arith.constant 0 : index
    %c0_110 = arith.constant 0 : index
    %183 = vector.load %arg11[%c0_109, %c0_110] : memref<2x10xf32, #tpu.memory_space<vmem>>, vector<1x10xf32>
    tpu.vector_store %arg11[%c0_109, %c0_110], %182 {strides = array<i32>} : memref<2x10xf32, #tpu.memory_space<vmem>>, vector<1x10xf32>,
    %184 = vector.extract_strided_slice %7 {offsets = [16, 0], sizes = [16, 32], strides = [1, 1]} : vector<32x32xf32> to vector<16x32xf32>
    %c1_111 = arith.constant 1 : index
    %c0_112 = arith.constant 0 : index
    %185 = vector.load %arg1[%c1_111, %c0_112] : memref<2x2xf32, #tpu.memory_space<vmem>>, vector<1x1xf32>
    %186 = vector.extract_strided_slice %184 {offsets = [0, 0], sizes = [16, 16], strides = [1, 1]} : vector<16x32xf32> to vector<16x16xf32>
    %187 = vector.broadcast %185 : vector<1x1xf32> to vector<16x16xf32>
    %188 = arith.mulf %187, %186 : vector<16x16xf32>
    %c1_113 = arith.constant 1 : index
    %c1_114 = arith.constant 1 : index
    %189 = vector.load %arg1[%c1_113, %c1_114] : memref<2x2xf32, #tpu.memory_space<vmem>>, vector<1x1xf32>
    %190 = vector.extract_strided_slice %184 {offsets = [0, 16], sizes = [16, 16], strides = [1, 1]} : vector<16x32xf32> to vector<16x16xf32>
    %191 = vector.broadcast %189 : vector<1x1xf32> to vector<16x16xf32>
    %192 = arith.mulf %191, %190 : vector<16x16xf32>
    %193 = arith.addf %188, %192 : vector<16x16xf32>
    %c0_115 = arith.constant 0 : index
    %c0_116 = arith.constant 0 : index
    %c0_117 = arith.constant 0 : index
    %194 = vector.load %arg4[%c0_115, %c0_116, %c0_117] : memref<2x16x16xf32, #tpu.memory_space<vmem>>, vector<1x16x16xf32>
    %195 = vector.shape_cast %194 : vector<1x16x16xf32> to vector<16x16xf32>
    %196 = arith.mulf %193, %195 : vector<16x16xf32>
    %cst_118 = arith.constant dense<0.000000e+00> : vector<16xf32>
    %197 = vector.multi_reduction <add>, %196, %cst_118 [1] : vector<16x16xf32> to vector<16xf32>
    %198 = vector.shape_cast %197 : vector<16xf32> to vector<16x1xf32>
    %cst_119 = arith.constant dense<0.000000e+00> : vector<1xf32>
    %199 = vector.multi_reduction <add>, %198, %cst_119 [0] : vector<16x1xf32> to vector<1xf32>
    %200 = vector.shape_cast %199 : vector<1xf32> to vector<1x1xf32>
    %c1_120 = arith.constant 1 : index
    %c0_121 = arith.constant 0 : index
    %c0_122 = arith.constant 0 : index
    %201 = vector.load %arg4[%c1_120, %c0_121, %c0_122] : memref<2x16x16xf32, #tpu.memory_space<vmem>>, vector<1x16x16xf32>
    %202 = vector.shape_cast %201 : vector<1x16x16xf32> to vector<16x16xf32>
    %203 = arith.mulf %193, %202 : vector<16x16xf32>
    %cst_123 = arith.constant dense<0.000000e+00> : vector<16xf32>
    %204 = vector.multi_reduction <add>, %203, %cst_123 [1] : vector<16x16xf32> to vector<16xf32>
    %205 = vector.shape_cast %204 : vector<16xf32> to vector<16x1xf32>
    %cst_124 = arith.constant dense<0.000000e+00> : vector<1xf32>
    %206 = vector.multi_reduction <add>, %205, %cst_124 [0] : vector<16x1xf32> to vector<1xf32>
    %207 = vector.shape_cast %206 : vector<1xf32> to vector<1x1xf32>
    %208 = arith.maximumf %200, %207 : vector<1x1xf32>
    %209 = arith.subf %200, %208 : vector<1x1xf32>
    %210 = math.exp %209 : vector<1x1xf32>
    %211 = arith.subf %207, %208 : vector<1x1xf32>
    %212 = math.exp %211 : vector<1x1xf32>
    %213 = arith.addf %210, %212 : vector<1x1xf32>
    %214 = arith.divf %210, %213 : vector<1x1xf32>
    %215 = arith.divf %212, %213 : vector<1x1xf32>
    %216 = arith.truncf %193 : vector<16x16xf32> to vector<16x16xbf16>
    %cst_125 = arith.constant 0.000000e+00 : f32
    %217 = vector.broadcast %cst_125 : f32 to vector<14x448xf32>
    %cst_126 = arith.constant 0.000000e+00 : f32
    %218 = vector.broadcast %cst_126 : f32 to vector<14x448xf32>
    %219 = vector.extract_strided_slice %216 {offsets = [0, 0], sizes = [14, 16], strides = [1, 1]} : vector<16x16xbf16> to vector<14x16xbf16>
    %c0_127 = arith.constant 0 : index
    %c0_128 = arith.constant 0 : index
    %c0_129 = arith.constant 0 : index
    %220 = vector.load %arg5[%c0_127, %c0_128, %c0_129] : memref<6x16x448xbf16, #tpu.memory_space<vmem>>, vector<1x16x448xbf16>
    %221 = vector.shape_cast %220 : vector<1x16x448xbf16> to vector<16x448xbf16>
    %cst_130 = arith.constant dense<0.000000e+00> : vector<14x448xf32>
    %222 = tpu.matmul %219, %221, %cst_130 {dimension_numbers = #tpu.dot_dimension_numbers<[1], [0], [0], [1], [0, 0, 1, 1], [], []>} : vector<14x16xbf16>, vector<16x448xbf16>, vector<14x448xf32> -> vector<14x448xf32>
    %223 = arith.addf %218, %222 : vector<14x448xf32>
    %224 = vector.extract_strided_slice %216 {offsets = [1, 0], sizes = [14, 16], strides = [1, 1]} : vector<16x16xbf16> to vector<14x16xbf16>
    %c2_131 = arith.constant 2 : index
    %c0_132 = arith.constant 0 : index
    %c0_133 = arith.constant 0 : index
    %225 = vector.load %arg5[%c2_131, %c0_132, %c0_133] : memref<6x16x448xbf16, #tpu.memory_space<vmem>>, vector<1x16x448xbf16>
    %226 = vector.shape_cast %225 : vector<1x16x448xbf16> to vector<16x448xbf16>
    %cst_134 = arith.constant dense<0.000000e+00> : vector<14x448xf32>
    %227 = tpu.matmul %224, %226, %cst_134 {dimension_numbers = #tpu.dot_dimension_numbers<[1], [0], [0], [1], [0, 0, 1, 1], [], []>} : vector<14x16xbf16>, vector<16x448xbf16>, vector<14x448xf32> -> vector<14x448xf32>
    %228 = arith.addf %223, %227 : vector<14x448xf32>
    %229 = vector.extract_strided_slice %216 {offsets = [2, 0], sizes = [14, 16], strides = [1, 1]} : vector<16x16xbf16> to vector<14x16xbf16>
    %c4_135 = arith.constant 4 : index
    %c0_136 = arith.constant 0 : index
    %c0_137 = arith.constant 0 : index
    %230 = vector.load %arg5[%c4_135, %c0_136, %c0_137] : memref<6x16x448xbf16, #tpu.memory_space<vmem>>, vector<1x16x448xbf16>
    %231 = vector.shape_cast %230 : vector<1x16x448xbf16> to vector<16x448xbf16>
    %cst_138 = arith.constant dense<0.000000e+00> : vector<14x448xf32>
    %232 = tpu.matmul %229, %231, %cst_138 {dimension_numbers = #tpu.dot_dimension_numbers<[1], [0], [0], [1], [0, 0, 1, 1], [], []>} : vector<14x16xbf16>, vector<16x448xbf16>, vector<14x448xf32> -> vector<14x448xf32>
    %233 = arith.addf %228, %232 : vector<14x448xf32>
    %c0_139 = arith.constant 0 : index
    %c0_140 = arith.constant 0 : index
    %c0_141 = arith.constant 0 : index
    %234 = vector.load %arg6[%c0_139, %c0_140, %c0_141] : memref<2x1x448xf32, #tpu.memory_space<vmem>>, vector<1x1x448xf32>
    %235 = vector.shape_cast %234 : vector<1x1x448xf32> to vector<1x448xf32>
    %236 = vector.broadcast %235 : vector<1x448xf32> to vector<14x448xf32>
    %237 = arith.addf %233, %236 : vector<14x448xf32>
    %cst_142 = arith.constant 0.000000e+00 : f32
    %238 = vector.broadcast %cst_142 : f32 to vector<14x448xf32>
    %239 = arith.maximumf %237, %238 : vector<14x448xf32>
    %240 = vector.broadcast %214 : vector<1x1xf32> to vector<14x448xf32>
    %241 = arith.mulf %240, %239 : vector<14x448xf32>
    %242 = arith.addf %217, %241 : vector<14x448xf32>
    %cst_143 = arith.constant 0.000000e+00 : f32
    %243 = vector.broadcast %cst_143 : f32 to vector<14x448xf32>
    %244 = vector.extract_strided_slice %216 {offsets = [0, 0], sizes = [14, 16], strides = [1, 1]} : vector<16x16xbf16> to vector<14x16xbf16>
    %c1_144 = arith.constant 1 : index
    %c0_145 = arith.constant 0 : index
    %c0_146 = arith.constant 0 : index
    %245 = vector.load %arg5[%c1_144, %c0_145, %c0_146] : memref<6x16x448xbf16, #tpu.memory_space<vmem>>, vector<1x16x448xbf16>
    %246 = vector.shape_cast %245 : vector<1x16x448xbf16> to vector<16x448xbf16>
    %cst_147 = arith.constant dense<0.000000e+00> : vector<14x448xf32>
    %247 = tpu.matmul %244, %246, %cst_147 {dimension_numbers = #tpu.dot_dimension_numbers<[1], [0], [0], [1], [0, 0, 1, 1], [], []>} : vector<14x16xbf16>, vector<16x448xbf16>, vector<14x448xf32> -> vector<14x448xf32>
    %248 = arith.addf %243, %247 : vector<14x448xf32>
    %249 = vector.extract_strided_slice %216 {offsets = [1, 0], sizes = [14, 16], strides = [1, 1]} : vector<16x16xbf16> to vector<14x16xbf16>
    %c3_148 = arith.constant 3 : index
    %c0_149 = arith.constant 0 : index
    %c0_150 = arith.constant 0 : index
    %250 = vector.load %arg5[%c3_148, %c0_149, %c0_150] : memref<6x16x448xbf16, #tpu.memory_space<vmem>>, vector<1x16x448xbf16>
    %251 = vector.shape_cast %250 : vector<1x16x448xbf16> to vector<16x448xbf16>
    %cst_151 = arith.constant dense<0.000000e+00> : vector<14x448xf32>
    %252 = tpu.matmul %249, %251, %cst_151 {dimension_numbers = #tpu.dot_dimension_numbers<[1], [0], [0], [1], [0, 0, 1, 1], [], []>} : vector<14x16xbf16>, vector<16x448xbf16>, vector<14x448xf32> -> vector<14x448xf32>
    %253 = arith.addf %248, %252 : vector<14x448xf32>
    %254 = vector.extract_strided_slice %216 {offsets = [2, 0], sizes = [14, 16], strides = [1, 1]} : vector<16x16xbf16> to vector<14x16xbf16>
    %c5_152 = arith.constant 5 : index
    %c0_153 = arith.constant 0 : index
    %c0_154 = arith.constant 0 : index
    %255 = vector.load %arg5[%c5_152, %c0_153, %c0_154] : memref<6x16x448xbf16, #tpu.memory_space<vmem>>, vector<1x16x448xbf16>
    %256 = vector.shape_cast %255 : vector<1x16x448xbf16> to vector<16x448xbf16>
    %cst_155 = arith.constant dense<0.000000e+00> : vector<14x448xf32>
    %257 = tpu.matmul %254, %256, %cst_155 {dimension_numbers = #tpu.dot_dimension_numbers<[1], [0], [0], [1], [0, 0, 1, 1], [], []>} : vector<14x16xbf16>, vector<16x448xbf16>, vector<14x448xf32> -> vector<14x448xf32>
    %258 = arith.addf %253, %257 : vector<14x448xf32>
    %c1_156 = arith.constant 1 : index
    %c0_157 = arith.constant 0 : index
    %c0_158 = arith.constant 0 : index
    %259 = vector.load %arg6[%c1_156, %c0_157, %c0_158] : memref<2x1x448xf32, #tpu.memory_space<vmem>>, vector<1x1x448xf32>
    %260 = vector.shape_cast %259 : vector<1x1x448xf32> to vector<1x448xf32>
    %261 = vector.broadcast %260 : vector<1x448xf32> to vector<14x448xf32>
    %262 = arith.addf %258, %261 : vector<14x448xf32>
    %cst_159 = arith.constant 0.000000e+00 : f32
    %263 = vector.broadcast %cst_159 : f32 to vector<14x448xf32>
    %264 = arith.maximumf %262, %263 : vector<14x448xf32>
    %265 = vector.broadcast %215 : vector<1x1xf32> to vector<14x448xf32>
    %266 = arith.mulf %265, %264 : vector<14x448xf32>
    %267 = arith.addf %242, %266 : vector<14x448xf32>
    %268 = arith.truncf %267 : vector<14x448xf32> to vector<14x448xbf16>
    %cst_160 = arith.constant 0.000000e+00 : f32
    %269 = vector.broadcast %cst_160 : f32 to vector<1x128xf32>
    %270 = vector.extract_strided_slice %268 {offsets = [0, 0], sizes = [1, 448], strides = [1, 1]} : vector<14x448xbf16> to vector<1x448xbf16>
    %c0_161 = arith.constant 0 : index
    %c0_162 = arith.constant 0 : index
    %c0_163 = arith.constant 0 : index
    %271 = vector.load %arg7[%c0_161, %c0_162, %c0_163] : memref<14x448x128xbf16, #tpu.memory_space<vmem>>, vector<1x448x128xbf16>
    %272 = vector.shape_cast %271 : vector<1x448x128xbf16> to vector<448x128xbf16>
    %cst_164 = arith.constant dense<0.000000e+00> : vector<1x128xf32>
    %273 = tpu.matmul %270, %272, %cst_164 {dimension_numbers = #tpu.dot_dimension_numbers<[1], [0], [0], [1], [0, 0, 1, 1], [], []>} : vector<1x448xbf16>, vector<448x128xbf16>, vector<1x128xf32> -> vector<1x128xf32>
    %274 = arith.addf %269, %273 : vector<1x128xf32>
    %275 = vector.extract_strided_slice %268 {offsets = [1, 0], sizes = [1, 448], strides = [1, 1]} : vector<14x448xbf16> to vector<1x448xbf16>
    %c1_165 = arith.constant 1 : index
    %c0_166 = arith.constant 0 : index
    %c0_167 = arith.constant 0 : index
    %276 = vector.load %arg7[%c1_165, %c0_166, %c0_167] : memref<14x448x128xbf16, #tpu.memory_space<vmem>>, vector<1x448x128xbf16>
    %277 = vector.shape_cast %276 : vector<1x448x128xbf16> to vector<448x128xbf16>
    %cst_168 = arith.constant dense<0.000000e+00> : vector<1x128xf32>
    %278 = tpu.matmul %275, %277, %cst_168 {dimension_numbers = #tpu.dot_dimension_numbers<[1], [0], [0], [1], [0, 0, 1, 1], [], []>} : vector<1x448xbf16>, vector<448x128xbf16>, vector<1x128xf32> -> vector<1x128xf32>
    %279 = arith.addf %274, %278 : vector<1x128xf32>
    %280 = vector.extract_strided_slice %268 {offsets = [2, 0], sizes = [1, 448], strides = [1, 1]} : vector<14x448xbf16> to vector<1x448xbf16>
    %c2_169 = arith.constant 2 : index
    %c0_170 = arith.constant 0 : index
    %c0_171 = arith.constant 0 : index
    %281 = vector.load %arg7[%c2_169, %c0_170, %c0_171] : memref<14x448x128xbf16, #tpu.memory_space<vmem>>, vector<1x448x128xbf16>
    %282 = vector.shape_cast %281 : vector<1x448x128xbf16> to vector<448x128xbf16>
    %cst_172 = arith.constant dense<0.000000e+00> : vector<1x128xf32>
    %283 = tpu.matmul %280, %282, %cst_172 {dimension_numbers = #tpu.dot_dimension_numbers<[1], [0], [0], [1], [0, 0, 1, 1], [], []>} : vector<1x448xbf16>, vector<448x128xbf16>, vector<1x128xf32> -> vector<1x128xf32>
    %284 = arith.addf %279, %283 : vector<1x128xf32>
    %285 = vector.extract_strided_slice %268 {offsets = [3, 0], sizes = [1, 448], strides = [1, 1]} : vector<14x448xbf16> to vector<1x448xbf16>
    %c3_173 = arith.constant 3 : index
    %c0_174 = arith.constant 0 : index
    %c0_175 = arith.constant 0 : index
    %286 = vector.load %arg7[%c3_173, %c0_174, %c0_175] : memref<14x448x128xbf16, #tpu.memory_space<vmem>>, vector<1x448x128xbf16>
    %287 = vector.shape_cast %286 : vector<1x448x128xbf16> to vector<448x128xbf16>
    %cst_176 = arith.constant dense<0.000000e+00> : vector<1x128xf32>
    %288 = tpu.matmul %285, %287, %cst_176 {dimension_numbers = #tpu.dot_dimension_numbers<[1], [0], [0], [1], [0, 0, 1, 1], [], []>} : vector<1x448xbf16>, vector<448x128xbf16>, vector<1x128xf32> -> vector<1x128xf32>
    %289 = arith.addf %284, %288 : vector<1x128xf32>
    %290 = vector.extract_strided_slice %268 {offsets = [4, 0], sizes = [1, 448], strides = [1, 1]} : vector<14x448xbf16> to vector<1x448xbf16>
    %c4_177 = arith.constant 4 : index
    %c0_178 = arith.constant 0 : index
    %c0_179 = arith.constant 0 : index
    %291 = vector.load %arg7[%c4_177, %c0_178, %c0_179] : memref<14x448x128xbf16, #tpu.memory_space<vmem>>, vector<1x448x128xbf16>
    %292 = vector.shape_cast %291 : vector<1x448x128xbf16> to vector<448x128xbf16>
    %cst_180 = arith.constant dense<0.000000e+00> : vector<1x128xf32>
    %293 = tpu.matmul %290, %292, %cst_180 {dimension_numbers = #tpu.dot_dimension_numbers<[1], [0], [0], [1], [0, 0, 1, 1], [], []>} : vector<1x448xbf16>, vector<448x128xbf16>, vector<1x128xf32> -> vector<1x128xf32>
    %294 = arith.addf %289, %293 : vector<1x128xf32>
    %295 = vector.extract_strided_slice %268 {offsets = [5, 0], sizes = [1, 448], strides = [1, 1]} : vector<14x448xbf16> to vector<1x448xbf16>
    %c5_181 = arith.constant 5 : index
    %c0_182 = arith.constant 0 : index
    %c0_183 = arith.constant 0 : index
    %296 = vector.load %arg7[%c5_181, %c0_182, %c0_183] : memref<14x448x128xbf16, #tpu.memory_space<vmem>>, vector<1x448x128xbf16>
    %297 = vector.shape_cast %296 : vector<1x448x128xbf16> to vector<448x128xbf16>
    %cst_184 = arith.constant dense<0.000000e+00> : vector<1x128xf32>
    %298 = tpu.matmul %295, %297, %cst_184 {dimension_numbers = #tpu.dot_dimension_numbers<[1], [0], [0], [1], [0, 0, 1, 1], [], []>} : vector<1x448xbf16>, vector<448x128xbf16>, vector<1x128xf32> -> vector<1x128xf32>
    %299 = arith.addf %294, %298 : vector<1x128xf32>
    %300 = vector.extract_strided_slice %268 {offsets = [6, 0], sizes = [1, 448], strides = [1, 1]} : vector<14x448xbf16> to vector<1x448xbf16>
    %c6_185 = arith.constant 6 : index
    %c0_186 = arith.constant 0 : index
    %c0_187 = arith.constant 0 : index
    %301 = vector.load %arg7[%c6_185, %c0_186, %c0_187] : memref<14x448x128xbf16, #tpu.memory_space<vmem>>, vector<1x448x128xbf16>
    %302 = vector.shape_cast %301 : vector<1x448x128xbf16> to vector<448x128xbf16>
    %cst_188 = arith.constant dense<0.000000e+00> : vector<1x128xf32>
    %303 = tpu.matmul %300, %302, %cst_188 {dimension_numbers = #tpu.dot_dimension_numbers<[1], [0], [0], [1], [0, 0, 1, 1], [], []>} : vector<1x448xbf16>, vector<448x128xbf16>, vector<1x128xf32> -> vector<1x128xf32>
    %304 = arith.addf %299, %303 : vector<1x128xf32>
    %305 = vector.extract_strided_slice %268 {offsets = [7, 0], sizes = [1, 448], strides = [1, 1]} : vector<14x448xbf16> to vector<1x448xbf16>
    %c7_189 = arith.constant 7 : index
    %c0_190 = arith.constant 0 : index
    %c0_191 = arith.constant 0 : index
    %306 = vector.load %arg7[%c7_189, %c0_190, %c0_191] : memref<14x448x128xbf16, #tpu.memory_space<vmem>>, vector<1x448x128xbf16>
    %307 = vector.shape_cast %306 : vector<1x448x128xbf16> to vector<448x128xbf16>
    %cst_192 = arith.constant dense<0.000000e+00> : vector<1x128xf32>
    %308 = tpu.matmul %305, %307, %cst_192 {dimension_numbers = #tpu.dot_dimension_numbers<[1], [0], [0], [1], [0, 0, 1, 1], [], []>} : vector<1x448xbf16>, vector<448x128xbf16>, vector<1x128xf32> -> vector<1x128xf32>
    %309 = arith.addf %304, %308 : vector<1x128xf32>
    %310 = vector.extract_strided_slice %268 {offsets = [8, 0], sizes = [1, 448], strides = [1, 1]} : vector<14x448xbf16> to vector<1x448xbf16>
    %c8_193 = arith.constant 8 : index
    %c0_194 = arith.constant 0 : index
    %c0_195 = arith.constant 0 : index
    %311 = vector.load %arg7[%c8_193, %c0_194, %c0_195] : memref<14x448x128xbf16, #tpu.memory_space<vmem>>, vector<1x448x128xbf16>
    %312 = vector.shape_cast %311 : vector<1x448x128xbf16> to vector<448x128xbf16>
    %cst_196 = arith.constant dense<0.000000e+00> : vector<1x128xf32>
    %313 = tpu.matmul %310, %312, %cst_196 {dimension_numbers = #tpu.dot_dimension_numbers<[1], [0], [0], [1], [0, 0, 1, 1], [], []>} : vector<1x448xbf16>, vector<448x128xbf16>, vector<1x128xf32> -> vector<1x128xf32>
    %314 = arith.addf %309, %313 : vector<1x128xf32>
    %315 = vector.extract_strided_slice %268 {offsets = [9, 0], sizes = [1, 448], strides = [1, 1]} : vector<14x448xbf16> to vector<1x448xbf16>
    %c9_197 = arith.constant 9 : index
    %c0_198 = arith.constant 0 : index
    %c0_199 = arith.constant 0 : index
    %316 = vector.load %arg7[%c9_197, %c0_198, %c0_199] : memref<14x448x128xbf16, #tpu.memory_space<vmem>>, vector<1x448x128xbf16>
    %317 = vector.shape_cast %316 : vector<1x448x128xbf16> to vector<448x128xbf16>
    %cst_200 = arith.constant dense<0.000000e+00> : vector<1x128xf32>
    %318 = tpu.matmul %315, %317, %cst_200 {dimension_numbers = #tpu.dot_dimension_numbers<[1], [0], [0], [1], [0, 0, 1, 1], [], []>} : vector<1x448xbf16>, vector<448x128xbf16>, vector<1x128xf32> -> vector<1x128xf32>
    %319 = arith.addf %314, %318 : vector<1x128xf32>
    %320 = vector.extract_strided_slice %268 {offsets = [10, 0], sizes = [1, 448], strides = [1, 1]} : vector<14x448xbf16> to vector<1x448xbf16>
    %c10_201 = arith.constant 10 : index
    %c0_202 = arith.constant 0 : index
    %c0_203 = arith.constant 0 : index
    %321 = vector.load %arg7[%c10_201, %c0_202, %c0_203] : memref<14x448x128xbf16, #tpu.memory_space<vmem>>, vector<1x448x128xbf16>
    %322 = vector.shape_cast %321 : vector<1x448x128xbf16> to vector<448x128xbf16>
    %cst_204 = arith.constant dense<0.000000e+00> : vector<1x128xf32>
    %323 = tpu.matmul %320, %322, %cst_204 {dimension_numbers = #tpu.dot_dimension_numbers<[1], [0], [0], [1], [0, 0, 1, 1], [], []>} : vector<1x448xbf16>, vector<448x128xbf16>, vector<1x128xf32> -> vector<1x128xf32>
    %324 = arith.addf %319, %323 : vector<1x128xf32>
    %325 = vector.extract_strided_slice %268 {offsets = [11, 0], sizes = [1, 448], strides = [1, 1]} : vector<14x448xbf16> to vector<1x448xbf16>
    %c11_205 = arith.constant 11 : index
    %c0_206 = arith.constant 0 : index
    %c0_207 = arith.constant 0 : index
    %326 = vector.load %arg7[%c11_205, %c0_206, %c0_207] : memref<14x448x128xbf16, #tpu.memory_space<vmem>>, vector<1x448x128xbf16>
    %327 = vector.shape_cast %326 : vector<1x448x128xbf16> to vector<448x128xbf16>
    %cst_208 = arith.constant dense<0.000000e+00> : vector<1x128xf32>
    %328 = tpu.matmul %325, %327, %cst_208 {dimension_numbers = #tpu.dot_dimension_numbers<[1], [0], [0], [1], [0, 0, 1, 1], [], []>} : vector<1x448xbf16>, vector<448x128xbf16>, vector<1x128xf32> -> vector<1x128xf32>
    %329 = arith.addf %324, %328 : vector<1x128xf32>
    %330 = vector.extract_strided_slice %268 {offsets = [12, 0], sizes = [1, 448], strides = [1, 1]} : vector<14x448xbf16> to vector<1x448xbf16>
    %c12_209 = arith.constant 12 : index
    %c0_210 = arith.constant 0 : index
    %c0_211 = arith.constant 0 : index
    %331 = vector.load %arg7[%c12_209, %c0_210, %c0_211] : memref<14x448x128xbf16, #tpu.memory_space<vmem>>, vector<1x448x128xbf16>
    %332 = vector.shape_cast %331 : vector<1x448x128xbf16> to vector<448x128xbf16>
    %cst_212 = arith.constant dense<0.000000e+00> : vector<1x128xf32>
    %333 = tpu.matmul %330, %332, %cst_212 {dimension_numbers = #tpu.dot_dimension_numbers<[1], [0], [0], [1], [0, 0, 1, 1], [], []>} : vector<1x448xbf16>, vector<448x128xbf16>, vector<1x128xf32> -> vector<1x128xf32>
    %334 = arith.addf %329, %333 : vector<1x128xf32>
    %335 = vector.extract_strided_slice %268 {offsets = [13, 0], sizes = [1, 448], strides = [1, 1]} : vector<14x448xbf16> to vector<1x448xbf16>
    %c13_213 = arith.constant 13 : index
    %c0_214 = arith.constant 0 : index
    %c0_215 = arith.constant 0 : index
    %336 = vector.load %arg7[%c13_213, %c0_214, %c0_215] : memref<14x448x128xbf16, #tpu.memory_space<vmem>>, vector<1x448x128xbf16>
    %337 = vector.shape_cast %336 : vector<1x448x128xbf16> to vector<448x128xbf16>
    %cst_216 = arith.constant dense<0.000000e+00> : vector<1x128xf32>
    %338 = tpu.matmul %335, %337, %cst_216 {dimension_numbers = #tpu.dot_dimension_numbers<[1], [0], [0], [1], [0, 0, 1, 1], [], []>} : vector<1x448xbf16>, vector<448x128xbf16>, vector<1x128xf32> -> vector<1x128xf32>
    %339 = arith.addf %334, %338 : vector<1x128xf32>
    %c0_217 = arith.constant 0 : index
    %c0_218 = arith.constant 0 : index
    %340 = vector.load %arg8[%c0_217, %c0_218] : memref<1x128xf32, #tpu.memory_space<vmem>>, vector<1x128xf32>
    %341 = arith.addf %339, %340 : vector<1x128xf32>
    %cst_219 = arith.constant 0.000000e+00 : f32
    %342 = vector.broadcast %cst_219 : f32 to vector<1x128xf32>
    %343 = arith.maximumf %341, %342 : vector<1x128xf32>
    %344 = arith.truncf %343 : vector<1x128xf32> to vector<1x128xbf16>
    %c0_220 = arith.constant 0 : index
    %c0_221 = arith.constant 0 : index
    %345 = vector.load %arg9[%c0_220, %c0_221] : memref<128x10xbf16, #tpu.memory_space<vmem>>, vector<128x10xbf16>
    %cst_222 = arith.constant dense<0.000000e+00> : vector<1x10xf32>
    %346 = tpu.matmul %344, %345, %cst_222 {dimension_numbers = #tpu.dot_dimension_numbers<[1], [0], [0], [1], [0, 0, 1, 1], [], []>} : vector<1x128xbf16>, vector<128x10xbf16>, vector<1x10xf32> -> vector<1x10xf32>
    %c0_223 = arith.constant 0 : index
    %c0_224 = arith.constant 0 : index
    %347 = vector.load %arg10[%c0_223, %c0_224] : memref<1x10xf32, #tpu.memory_space<vmem>>, vector<1x10xf32>
    %348 = arith.addf %346, %347 : vector<1x10xf32>
    %cst_225 = arith.constant dense<0xFF800000> : vector<1xf32>
    %349 = vector.multi_reduction <maximumf>, %348, %cst_225 [1] : vector<1x10xf32> to vector<1xf32>
    %350 = vector.shape_cast %349 : vector<1xf32> to vector<1x1xf32>
    %351 = vector.broadcast %350 : vector<1x1xf32> to vector<1x10xf32>
    %352 = arith.subf %348, %351 : vector<1x10xf32>
    %353 = math.exp %352 : vector<1x10xf32>
    %cst_226 = arith.constant dense<0.000000e+00> : vector<1xf32>
    %354 = vector.multi_reduction <add>, %353, %cst_226 [1] : vector<1x10xf32> to vector<1xf32>
    %355 = vector.shape_cast %354 : vector<1xf32> to vector<1x1xf32>
    %356 = math.log %355 : vector<1x1xf32>
    %357 = vector.broadcast %356 : vector<1x1xf32> to vector<1x10xf32>
    %358 = arith.subf %352, %357 : vector<1x10xf32>
    %c1_227 = arith.constant 1 : index
    %c0_228 = arith.constant 0 : index
    %359 = vector.load %arg11[%c1_227, %c0_228] : memref<2x10xf32, #tpu.memory_space<vmem>>, vector<1x10xf32>
    tpu.vector_store %arg11[%c1_227, %c0_228], %358 {strides = array<i32>} : memref<2x10xf32, #tpu.memory_space<vmem>>, vector<1x10xf32>,
    return
  }
}

</mosaic_0001>

<bundles_post_ra>
// kernel: multi_level_expert_forward.1
= control target key start
LH: loop header
LB: loop body
LE: loop exit
PB: predicated region body
PF: predicated region fallthrough
CT: control target
= control target key end

     0   :  { %vm75_vm0 = vcmask 1043456   ;;  %vm76_vm1 = vcmask 1044480   ;;  %v15014_v2 = vmov 65535   ;;  %vm68_vm2 = vcmask 72704   ;;  %s15017_s20 = smov 112   ;;  %s18546_s0 = inlined_call_operand.vmem [shape: bf16[32,9], index: 0, kind: input, shape index: {}]   ;;  %s18547_s1 = inlined_call_operand.vmem [shape: f32[2,2], index: 1, kind: input, shape index: {}]   ;;  %s18548_s2 = inlined_call_operand.vmem [shape: bf16[9,32], index: 2, kind: input, shape index: {}]   ;;  %s18549_s3 = inlined_call_operand.vmem [shape: f32[1,32], index: 3, kind: input, shape index: {}]   ;;  %s18550_s4 = inlined_call_operand.vmem [shape: f32[2,16,16], index: 4, kind: input, shape index: {}]   ;;  %s18551_s5 = inlined_call_operand.vmem [shape: bf16[6,16,448], index: 5, kind: input, shape index: {}]   ;;  %s18552_s6 = inlined_call_operand.vmem [shape: f32[2,1,448], index: 6, kind: input, shape index: {}]   ;;  %s18553_s7 = inlined_call_operand.vmem [shape: bf16[14,448,128], index: 7, kind: input, shape index: {}]   ;;  %s18554_s8 = inlined_call_operand.vmem [shape: f32[1,128], index: 8, kind: input, shape index: {}]   ;;  %s18555_s9 = inlined_call_operand.vmem [shape: bf16[128,10], index: 9, kind: input, shape index: {}]   ;;  %s18556_s10 = inlined_call_operand.vmem [shape: f32[1,10], index: 10, kind: input, shape index: {}]   ;;  %s18557_s11 = inlined_call_operand.hbm [shape: f32[2,10], index: 11, kind: output, shape index: {}]  }
   0x1   :  { %v14096_v0 = vld [vmem:[%s18548_s2] sm:$0x1f]   ;;  %v77_v3 = vsel %vm75_vm0, 4294967295, %v15014_v2  ;;  %v14098_v7 = vld [vmem:[%s18546_s0 + $0x8] sm:$0xff]   ;;  %s15015_s2 = smov 127   ;;  %v15016_v24 = vmov 0  }
   0x2   :  { %v14097_v1 = vld [vmem:[%s18546_s0] sm:$0xff]   ;;  %v78_v4 = vsel %vm76_vm1, %v77_v3, 0  ;;  %v14099_v14 = vld [vmem:[%s18551_s5 + $0x48] ss:$16 sps:$4 sm:$0xff]   ;;  %v14101_v15 = vld [vmem:[%s18551_s5 + $0x4c] ss:$16 sps:$4 sm:$0xff]   ;;  %278 = vmatprep.mubr.bf16.mxu1 %v15016_v24 }
   0x3   :  { %14037 = vmatprep.mubr.msk.bf16.mxu0 %vm68_vm2, %v14097_v1  ;;  %v135_v5 = vld [vmem:[%s18547_s1] sm:$0x1]  ;;  %v80_v6 = vand.u32 %v14096_v0, %v78_v4  ;;  %v5567_v8 = vld [vmem:[%s18547_s1 + $0x1] sm:$0x1]  ;;  %v14102_v19 = vld [vmem:[%s18551_s5 + $0x44] ss:$16 sps:$4 sm:$0xff]  }
   0x4   :  { %14081 = vpush %v135_v5  ;;  %142 = vrot.lane.b32.xlu0 %v135_v5, %s15015_s2  ;;  %v10990_v10 = vld [vmem:[%s18549_s3] ss:$0 sm:$0xff]  ;;  %260 = vmatprep.subr.bf16.mxu1 %v14102_v19  ;;  %v14107_v25 = vld [vmem:[%s18551_s5 + $0xc] ss:$16 sps:$4 sm:$0xff]   ;;  %v14110_v30 = vld [vmem:[%s18551_s5 + $0x4] ss:$16 sps:$4 sm:$0xff]  }
   0x5   :  { %14035 = vmatprep.subr.bf16.mxu0 %v80_v6  ;;  %v14104_v22 = vld [vmem:[%s18551_s5 + $0x40] ss:$16 sps:$4 sm:$0xff]   ;;  %vm163_vm3 = vcmask 130048   ;;  %v160_v37 = vld [vmem:[%s18550_s4 + $0x8] sm:$0xff]  ;;  %v10997_v38 = vld [vmem:[%s18550_s4 + $0x18] sm:$0xff]  ;;  %vm1314_vm4 = vcmask 523264  }
   0x6   :  { %14036 = vmatpush3.bf16.msra.mxu0 %v80_v6  ;;  %261 = vmatpush1.bf16.msra.mxu1 %v14104_v22  ;;  %v159_v32 = vld [vmem:[%s18550_s4] sm:$0xff]  ;;  %v10996_v36 = vld [vmem:[%s18550_s4 + $0x10] sm:$0xff]  ;;  %v14105_v51 = vld [vmem:[%s18551_s5 + $0x8] ss:$16 sps:$4 sm:$0xff]  }
   0x7   :  { %303 = vmatprep.subr.bf16.mxu0 %v14101_v15  ;;  %368 = vmatprep.subr.bf16.mxu1 %v14110_v30  ;;  %v14108_v54 = vld [vmem:[%s18551_s5] ss:$16 sps:$4 sm:$0xff]   ;;  %v14113_v57 = vld [vmem:[%s18551_s5 + $0x8c] ss:$16 sps:$4 sm:$0xff]   ;;  %v14116_v58 = vld [vmem:[%s18551_s5 + $0x84] ss:$16 sps:$4 sm:$0xff]  }
   0x8   :  { %v14111_v60 = vld [vmem:[%s18551_s5 + $0x88] ss:$16 sps:$4 sm:$0xff]   ;;  %v14114_v61 = vld [vmem:[%s18551_s5 + $0x80] ss:$16 sps:$4 sm:$0xff]   ;;  %v14119_v62 = vld [vmem:[%s18551_s5 + $0x6c] ss:$16 sps:$4 sm:$0xff]  }
   0x9   :  { %14038 = vmatmul.mubr.msk.bf16.vlgmr.msra.gmra.mxu0 %vm68_vm2, %v14098_v7  ;;  %v14122_v63 = vld [vmem:[%s18551_s5 + $0x64] ss:$16 sps:$4 sm:$0xff]   ;;  %v14117_v0 = vld [vmem:[%s18551_s5 + $0x68] ss:$16 sps:$4 sm:$0xff]   ;;  %v14120_v1 = vld [vmem:[%s18551_s5 + $0x60] ss:$16 sps:$4 sm:$0xff]  }
   0xa   :  { %304 = vmatpush1.bf16.msra.mxu0 %v14099_v14  ;;  %321 = vmatprep.mubr.bf16.mxu0 %v15016_v24  ;;  %v14125_v2 = vld [vmem:[%s18551_s5 + $0x2c] ss:$16 sps:$4 sm:$0xff]   ;;  %v14128_v3 = vld [vmem:[%s18551_s5 + $0x24] ss:$16 sps:$4 sm:$0xff]   ;;  %v14123_v4 = vld [vmem:[%s18551_s5 + $0x28] ss:$16 sps:$4 sm:$0xff]  }
   0xb   :  { %411 = vmatprep.subr.bf16.mxu0 %v14107_v25  ;;  %v14126_v5 = vld [vmem:[%s18551_s5 + $0x20] ss:$16 sps:$4 sm:$0xff]   ;;  %v14131_v7 = vld [vmem:[%s18551_s5 + $0xac] ss:$16 sps:$4 sm:$0xff]  }
   0xc   :  { %v14991_v6 = vld [vmem:[%s18547_s1 + $0x1] sm:$0x1]  ;;  %v14137_v14 = vld [vmem:[%s18553_s7 + $0x188] sm:$0xff]   ;;  %v14142_v19 = vld [vmem:[%s18553_s7 + $0x150] sm:$0xff]  }
   0xd   :  { %v14138_v15 = vld [vmem:[%s18553_s7 + $0x180] sm:$0xff]   ;;  %v14144_v22 = vld [vmem:[%s18553_s7 + $0x170] sm:$0xff]   ;;  %v14146_v25 = vld [vmem:[%s18553_s7 + $0x108] sm:$0xff]  }
   0xe   :  { %v14151_v30 = vld [vmem:[%s18553_s7 + $0x138] sm:$0xff]  }
  0x35   :  { %s15102_s0 = spop %14081 }
  0x36   :  { %v138_v31 = vstv %s15102_s0 }
  0x76   :  { %v143_v9 = vpop.permute.xlu0 %142 }
  0x77   :  { %14083 = vpush %v143_v9  ;;  %v14129_v9 = vld [vmem:[%s18551_s5 + $0xa8] ss:$16 sps:$4 sm:$0xff]  }
  0x78   :  { %14085 = vpush %v5567_v8  ;;  %v14134_v8 = vld [vmem:[%s18551_s5 + $0xa4] ss:$16 sps:$4 sm:$0xff]  }
  0xa8   :  { %s14084_s14 = spop %14083 }
  0xa9   :  { %v145_v17 = vstv %s14084_s14  ;;  %s15334_s21 = spop %14085 }
  0xc9   :  { %v14039_v11 = vpop.f32.mrf.mxu0 }
  0xca   :  { %v15100_v12 = vadd.f32 %v14039_v11, %v10990_v10  ;;  %v14135_v11 = vld [vmem:[%s18553_s7 + $0x198] sm:$0xff]  }
  0xcb   :  { %v116_v13 = vpop.f32.mrf.mxu0 }
  0xcc   :  { %v117_v16 = vadd.f32 %v10990_v10, %v116_v13  ;;  %v14136_v13 = vld [vmem:[%s18553_s7 + $0x190] sm:$0xff]  }
  0xcd   :  { %v14040_v18 = vpop.f32.mrf.mxu0 }
  0xce   :  { %v131_v20 = vmax.f32 %v117_v16, 0.0  ;;  %v15113_v21 = vadd.f32 %v14040_v18, %v10990_v10  ;;  %v14139_v16 = vld [vmem:[%s18553_s7 + $0x158] sm:$0xff]  }
  0xcf   :  { %v119_v23 = vpop.f32.mrf.mxu0  ;;  %v14141_v18 = vld [vmem:[%s18553_s7 + $0x178] sm:$0xff]  }
  0xd0   :  { %v147_v26 = vmul.f32 %v145_v17, %v131_v20  ;;  %v120_v27 = vadd.f32 %v10990_v10, %v119_v23  ;;  %v140_v33 = vmul.f32 %v138_v31, %v131_v20  ;;  %v14132_v10 = vld [vmem:[%s18551_s5 + $0xa0] ss:$16 sps:$4 sm:$0xff]   ;;  %v14145_v23 = vld [vmem:[%s18553_s7 + $0x148] sm:$0xff]  }
  0xd1   :  { %v14143_v20 = vld [vmem:[%s18553_s7 + $0x110] sm:$0xff]  }
  0xd2   :  { %v132_v28 = vmax.f32 %v120_v27, 0.0  ;;  %151 = vrot.lane.b32.xlu0 %v147_v26, %s15017_s20  ;;  %v14147_v26 = vld [vmem:[%s18553_s7 + $0x168] sm:$0xff]   ;;  %v14148_v27 = vld [vmem:[%s18553_s7 + $0x140] sm:$0xff]  }
  0xd4   :  { %v148_v29 = vmul.f32 %v145_v17, %v132_v28  ;;  %v141_v39 = vmul.f32 %v138_v31, %v132_v28  ;;  %v14140_v17 = vld [vmem:[%s18553_s7 + $0x118] sm:$0xff]   ;;  %v14149_v28 = vld [vmem:[%s18553_s7 + $0x100] sm:$0xff]  }
  0xd5   :  { %v14152_v31 = vld [vmem:[%s18553_s7 + $0xf8] sm:$0xff]  }
  0xd6   :  { %153 = vrot.lane.b32.xlu1 %v148_v29, %s15017_s20  ;;  %v14150_v29 = vld [vmem:[%s18553_s7 + $0x160] sm:$0xff]  }
 0x144   :  { %v152_v34 = vpop.permute.xlu0 %151 }
 0x145   :  { %v157_v35 = vadd.f32 %v152_v34, %v140_v33  ;;  %v14154_v33 = vld [vmem:[%s18553_s7 + $0x130] sm:$0xff]  }
 0x146   :  { %v14155_v34 = vld [vmem:[%s18553_s7 + $0xf0] sm:$0xff]  }
 0x147   :  { %v161_v40 = vmul.f32 %v159_v32, %v157_v35  ;;  %v180_v44 = vmul.f32 %v10996_v36, %v157_v35  ;;  %v14153_v32 = vld [vmem:[%s18553_s7 + $0x1b8] sm:$0xff]   ;;  %v14157_v36 = vld [vmem:[%s18553_s7 + $0x128] sm:$0xff]  }
 0x148   :  { %v154_v41 = vpop.permute.xlu1 %153 }
 0x149   :  { %v158_v42 = vadd.f32 %v154_v41, %v141_v39  ;;  %v164_v43 = vsel %vm163_vm3, %v161_v40, 0.0  ;;  %v182_v52 = vsel %vm163_vm3, %v180_v44, 0.0  ;;  %v14160_v39 = vld [vmem:[%s18553_s7 + $0x120] sm:$0xff]  }
 0x14a   :  { %165 = vadd.xlane.f32.xlu1 %v164_v43  ;;  %v14161_v40 = vld [vmem:[%s18553_s7 + $0xe0] sm:$0xff]  }
 0x14b   :  { %v15142_v45 = vpack.c.bf16 %v158_v42, %v157_v35  ;;  %v162_v46 = vmul.f32 %v160_v37, %v158_v42  ;;  %v181_v47 = vmul.f32 %v10997_v38, %v158_v42  ;;  %v14156_v35 = vld [vmem:[%s18553_s7 + $0x1b0] sm:$0xff]   ;;  %v14158_v37 = vld [vmem:[%s18553_s7 + $0xe8] sm:$0xff]   ;;  %v14162_v41 = vld [vmem:[%s18553_s7 + $0x1a0] sm:$0xff]  }
 0x14c   :  { %v14159_v38 = vld [vmem:[%s18553_s7 + $0x1a8] sm:$0xff]   ;;  %v14163_v42 = vld [vmem:[%s18553_s7 + $0x78] sm:$0xff]  }
 0x14d   :  { %v167_v48 = vsel %vm163_vm3, %v162_v46, 0.0  ;;  %v185_v49 = vsel %vm163_vm3, %v181_v47, 0.0  ;;  %v219_v50 = vshll.u32 %v15142_v45, 16  ;;  %v217_v53 = vshrl.u32 %v15142_v45, 16 }
 0x14e   :  { %168 = vadd.xlane.f32.xlu0 %v167_v48  ;;  %186 = vadd.xlane.f32.xlu1 %v185_v49  ;;  %v446_v56 = vrot.slane %v15142_v45, 1 }
 0x14f   :  { %v221_v55 = vrot.slane %v219_v50, 1 }
 0x151   :  { %v222_v59 = vor.u32 %v221_v55, %v217_v53 }
 0x152   :  { %183 = vadd.xlane.f32.xlu0 %v182_v52 }
 0x153   :  { %11006 = vmatmul.mubr.msk.bf16.vlgmr.msra.gmra.mxu1 %vm163_vm3, %v222_v59  ;;  %11007 = vmatmul.mubr.msk.bf16.vlgmr.msra.gmra.mxu0 %vm163_vm3, %v222_v59 }
 0x154   :  { %412 = vmatpush1.bf16.msra.mxu0 %v14105_v51  ;;  %369 = vmatpush1.bf16.msra.mxu1 %v14108_v54 }
 0x155   :  { %386 = vmatprep.mubr.bf16.mxu1 %v15016_v24  ;;  %429 = vmatprep.mubr.bf16.mxu0 %v15016_v24 }
 0x156   :  { %527 = vmatprep.subr.bf16.mxu0 %v14113_v57  ;;  %484 = vmatprep.subr.bf16.mxu1 %v14116_v58 }
 0x15b   :  { %11012 = vmatmul.mubr.msk.bf16.vlgmr.msra.gmra.mxu1 %vm163_vm3, %v15142_v45  ;;  %11013 = vmatmul.mubr.msk.bf16.vlgmr.msra.gmra.mxu0 %vm163_vm3, %v15142_v45 }
 0x15c   :  { %528 = vmatpush1.bf16.msra.mxu0 %v14111_v60  ;;  %485 = vmatpush1.bf16.msra.mxu1 %v14114_v61 }
 0x15d   :  { %502 = vmatprep.mubr.bf16.mxu1 %v15016_v24  ;;  %545 = vmatprep.mubr.bf16.mxu0 %v15016_v24 }
 0x15e   :  { %705 = vmatprep.subr.bf16.mxu0 %v14119_v62  ;;  %662 = vmatprep.subr.bf16.mxu1 %v14122_v63  ;;  %v133_v63 = vmax.f32 %v15100_v12, 0.0 }
 0x163   :  { %11022 = vmatmul.mubr.msk.bf16.vlgmr.msra.gmra.mxu1 %vm163_vm3, %v446_v56  ;;  %11023 = vmatmul.mubr.msk.bf16.vlgmr.msra.gmra.mxu0 %vm163_vm3, %v446_v56 }
 0x164   :  { %706 = vmatpush1.bf16.msra.mxu0 %v14117_v0  ;;  %663 = vmatpush1.bf16.msra.mxu1 %v14120_v1 }
 0x165   :  { %680 = vmatprep.mubr.bf16.mxu1 %v15016_v24  ;;  %723 = vmatprep.mubr.bf16.mxu0 %v15016_v24 }
 0x166   :  { %811 = vmatprep.subr.bf16.mxu0 %v14125_v2  ;;  %768 = vmatprep.subr.bf16.mxu1 %v14128_v3 }
 0x168   :  { %5574 = vrot.lane.b32.xlu0 %v14991_v6, %s15015_s2  ;;  %v134_v6 = vmax.f32 %v15113_v21, 0.0 }
 0x16b   :  { %11036 = vmatmul.mubr.msk.bf16.vlgmr.msra.gmra.mxu1 %vm163_vm3, %v222_v59  ;;  %11037 = vmatmul.mubr.msk.bf16.vlgmr.msra.gmra.mxu0 %vm163_vm3, %v222_v59 }
 0x16c   :  { %812 = vmatpush1.bf16.msra.mxu0 %v14123_v4  ;;  %769 = vmatpush1.bf16.msra.mxu1 %v14126_v5 }
 0x16d   :  { %786 = vmatprep.mubr.bf16.mxu1 %v15016_v24  ;;  %829 = vmatprep.mubr.bf16.mxu0 %v15016_v24 }
 0x16e   :  { %922 = vmatprep.subr.bf16.mxu0 %v14131_v7  ;;  %879 = vmatprep.subr.bf16.mxu1 %v14134_v8 }
 0x173   :  { %11042 = vmatmul.mubr.msk.bf16.vlgmr.msra.gmra.mxu1 %vm163_vm3, %v15142_v45  ;;  %11043 = vmatmul.mubr.msk.bf16.vlgmr.msra.gmra.mxu0 %vm163_vm3, %v15142_v45 }
 0x174   :  { %923 = vmatpush1.bf16.msra.mxu0 %v14129_v9  ;;  %880 = vmatpush1.bf16.msra.mxu1 %v14132_v10 }
 0x175   :  { %897 = vmatprep.mubr.bf16.mxu1 %v15016_v24  ;;  %940 = vmatprep.mubr.bf16.mxu0 %v15016_v24 }
 0x176   :  { %1358 = vmatprep.subr.bf16.mxu0 %v15016_v24  ;;  %13401 = vmatprep.subr.bf16.mxu1 %v14139_v16 }
 0x17b   :  { %11052 = vmatmul.mubr.msk.bf16.vlgmr.msra.gmra.mxu1 %vm163_vm3, %v446_v56  ;;  %11053 = vmatmul.mubr.msk.bf16.vlgmr.msra.gmra.mxu0 %vm163_vm3, %v446_v56 }
 0x17c   :  { %1359 = vmatpush1.bf16.msra.mxu0 %v14135_v11  ;;  %13402 = vmatpush3.bf16.msra.mxu1 %v14140_v17 }
 0x17d   :  { %1360 = vmatprep.subr.bf16.mxu0 %v15016_v24  ;;  %13403 = vmatprep.subr.bf16.mxu1 %v14142_v19 }
 0x180   :  { %1361 = vmatpush1.bf16.msra.mxu0 %v14136_v13  ;;  %13404 = vmatpush3.bf16.msra.mxu1 %v14143_v20 }
 0x181   :  { %1362 = vmatprep.subr.bf16.mxu0 %v15016_v24  ;;  %13405 = vmatprep.subr.bf16.mxu1 %v14145_v23 }
 0x184   :  { %1363 = vmatpush1.bf16.msra.mxu0 %v14137_v14  ;;  %13406 = vmatpush3.bf16.msra.mxu1 %v14146_v25 }
 0x185   :  { %1364 = vmatprep.subr.bf16.mxu0 %v15016_v24  ;;  %13407 = vmatprep.subr.bf16.mxu1 %v14148_v27 }
 0x188   :  { %1365 = vmatpush1.bf16.msra.mxu0 %v14138_v15  ;;  %13408 = vmatpush3.bf16.msra.mxu1 %v14149_v28 }
 0x189   :  { %1366 = vmatprep.subr.bf16.mxu0 %v15016_v24  ;;  %13409 = vmatprep.subr.bf16.mxu1 %v14151_v30 }
 0x18c   :  { %1367 = vmatpush1.bf16.msra.mxu0 %v14141_v18  ;;  %13410 = vmatpush3.bf16.msra.mxu1 %v14152_v31 }
 0x18d   :  { %1368 = vmatprep.subr.bf16.mxu0 %v15016_v24  ;;  %13411 = vmatprep.subr.bf16.mxu1 %v14154_v33 }
 0x190   :  { %1369 = vmatpush1.bf16.msra.mxu0 %v14144_v22  ;;  %13412 = vmatpush3.bf16.msra.mxu1 %v14155_v34 }
 0x191   :  { %1370 = vmatprep.subr.bf16.mxu0 %v15016_v24  ;;  %13413 = vmatprep.subr.bf16.mxu1 %v14157_v36 }
 0x194   :  { %1371 = vmatpush1.bf16.msra.mxu0 %v14147_v26  ;;  %13414 = vmatpush3.bf16.msra.mxu1 %v14158_v37 }
 0x195   :  { %1372 = vmatprep.subr.bf16.mxu0 %v15016_v24  ;;  %13415 = vmatprep.subr.bf16.mxu1 %v14160_v39 }
 0x198   :  { %1373 = vmatpush1.bf16.msra.mxu0 %v14150_v29  ;;  %13416 = vmatpush3.bf16.msra.mxu1 %v14161_v40  ;;  %v566_v29 = vlaneseq }
 0x199   :  { %1382 = vmatprep.subr.bf16.mxu0 %v15016_v24  ;;  %13423 = vmatprep.subr.bf16.mxu1 %v14163_v42  ;;  %v564_v42 = vld [vmem:[%s18552_s6] sm:$0xf] }
 0x19a   :  { %v567_v36 = vshrl.u32 %v566_v29, 7 }
 0x19c   :  { %1383 = vmatpush2.bf16.msra.mxu0 %v14153_v32 }
 0x19d   :  { %1384 = vmatprep.subr.bf16.mxu0 %v15016_v24 }
 0x1a0   :  { %1385 = vmatpush2.bf16.msra.mxu0 %v14156_v35 }
 0x1a1   :  { %1386 = vmatprep.subr.bf16.mxu0 %v15016_v24 }
 0x1a4   :  { %1387 = vmatpush2.bf16.msra.mxu0 %v14159_v38 }
 0x1a5   :  { %1388 = vmatprep.subr.bf16.mxu0 %v15016_v24 }
 0x1a8   :  { %1389 = vmatpush2.bf16.msra.mxu0 %v14162_v41 }
 0x1a9   :  { %1608 = vmatprep.subr.bf16.mxu0 %v15016_v24 }
 0x1d3   :  { %v166_v46 = vpop.xlane.xlu1 %165 }
 0x1d7   :  { %v169_v43 = vpop.xlane.xlu0 %168  ;;  %v187_v47 = vpop.xlane.xlu1 %186 }
 0x1d8   :  { %v170_v49 = vadd.f32 %v169_v43, %v166_v46  ;;  %v15353_v43 = vsub.s32 0, %v567_v36 }
 0x1da   :  { %v171_v51 = vrot.slane %v170_v49, 4 }
 0x1db   :  { %v184_v44 = vpop.xlane.xlu0 %183 }
 0x1dc   :  { %v188_v48 = vadd.f32 %v187_v47, %v184_v44  ;;  %v172_v53 = vadd.f32 %v171_v51, %v170_v49  ;;  %v15355_v44 = vsub.s32 2, %v567_v36  ;;  %v15357_v47 = vsub.s32 1, %v567_v36 }
 0x1de   :  { %v189_v50 = vrot.slane %v188_v48, 4  ;;  %v173_v55 = vrot.slane %v172_v53, 2 }
 0x1df   :  { %v5575_v45 = vpop.permute.xlu0 %5574 }
 0x1e0   :  { %14087 = vpush %v5575_v45  ;;  %v190_v52 = vadd.f32 %v189_v50, %v188_v48  ;;  %v174_v57 = vadd.f32 %v173_v55, %v172_v53  ;;  %v15359_v48 = vsub.s32 3, %v567_v36 }
 0x1e2   :  { %v191_v54 = vrot.slane %v190_v52, 2  ;;  %v175_v59 = vrot.slane %v174_v57, 1 }
 0x1e4   :  { %v192_v56 = vadd.f32 %v191_v54, %v190_v52  ;;  %v176_v61 = vadd.f32 %v175_v59, %v174_v57 }
 0x1e6   :  { %v193_v58 = vrot.slane %v192_v56, 1 }
 0x1e8   :  { %v194_v60 = vadd.f32 %v193_v58, %v192_v56  ;;  %v569_v56 = vrot.slane %v564_v42, %v15353_v43  ;;  %v577_v58 = vrot.slane %v564_v42, %v15355_v44 }
 0x1ea   :  { %v195_v62 = vmax.f32 %v176_v61, %v194_v60 }
 0x1ec   :  { %v196_v0 = vsub.f32 %v176_v61, %v195_v62  ;;  %v199_v1 = vsub.f32 %v194_v60, %v195_v62  ;;  %v573_v62 = vrot.slane %v564_v42, %v15357_v47 }
 0x1ee   :  { %v197_v7 = vmul.f32 1.442695, %v196_v0  ;;  %v200_v10 = vmul.f32 1.442695, %v199_v1  ;;  %v581_v1 = vrot.slane %v564_v42, %v15359_v48 }
 0x1f0   :  { %14971 = vpow2.f32 %v197_v7 }
 0x1f1   :  { %14973 = vpow2.f32 %v200_v10 }
 0x1fd   :  { %v15344_v32 = vpop.eup %14971 }
 0x1fe   :  { %v15346_v35 = vpop.eup %14973 }
 0x1ff   :  { %v202_v39 = vadd.f32 %v15346_v35, %v15344_v32 }
 0x201   :  { %14975 = vrcp.f32 %v202_v39 }
 0x211   :  { %s14088_s22 = spop %14087 }
 0x212   :  { %v5577_v2 = vstv %s14088_s22 }
 0x213   :  { %v5579_v3 = vmul.f32 %v5577_v2, %v133_v63  ;;  %v280_v4 = vpop.f32.mrf.mxu1  ;;  %v323_v5 = vpop.f32.mrf.mxu0  ;;  %v5580_v11 = vmul.f32 %v5577_v2, %v134_v6 }
 0x215   :  { %v282_v8 = vpop.f32.mrf.mxu1  ;;  %v325_v9 = vpop.f32.mrf.mxu0  ;;  %5583 = vrot.lane.b32.xlu1 %v5579_v3, %s15017_s20 }
 0x217   :  { %v284_v13 = vpop.f32.mrf.mxu1  ;;  %v327_v14 = vpop.f32.mrf.mxu0 }
 0x219   :  { %v286_v15 = vpop.f32.mrf.mxu1  ;;  %v329_v16 = vpop.f32.mrf.mxu0  ;;  %5585 = vrot.lane.b32.xlu1 %v5580_v11, %s15017_s20 }
 0x21b   :  { %v388_v17 = vpop.f32.mrf.mxu1  ;;  %v431_v18 = vpop.f32.mrf.mxu0 }
 0x21c   :  { %v389_v49 = vadd.f32 %v388_v17, %v280_v4  ;;  %v432_v50 = vadd.f32 %v431_v18, %v323_v5 }
 0x21d   :  { %v390_v19 = vpop.f32.mrf.mxu1  ;;  %v433_v20 = vpop.f32.mrf.mxu0 }
 0x21e   :  { %v391_v53 = vadd.f32 %v390_v19, %v282_v8  ;;  %v434_v54 = vadd.f32 %v433_v20, %v325_v9  ;;  %v11054_v20 = vld [vmem:[%s18552_s6 + $0x4] sm:$0xf] }
 0x21f   :  { %v392_v22 = vpop.f32.mrf.mxu1  ;;  %v435_v23 = vpop.f32.mrf.mxu0 }
 0x220   :  { %v393_v2 = vadd.f32 %v392_v22, %v284_v13  ;;  %v436_v3 = vadd.f32 %v435_v23, %v327_v14  ;;  %v965_v23 = vrot.slane %v11054_v20, %v15353_v43 }
 0x221   :  { %v394_v25 = vpop.f32.mrf.mxu1  ;;  %v437_v26 = vpop.f32.mrf.mxu0 }
 0x222   :  { %v395_v7 = vadd.f32 %v394_v25, %v286_v15  ;;  %v438_v8 = vadd.f32 %v437_v26, %v329_v16  ;;  %v973_v25 = vrot.slane %v11054_v20, %v15355_v44 }
 0x223   :  { %v504_v27 = vpop.f32.mrf.mxu1  ;;  %v547_v28 = vpop.f32.mrf.mxu0 }
 0x224   :  { %v556_v55 = vadd.f32 %v504_v27, %v389_v49  ;;  %v558_v57 = vadd.f32 %v547_v28, %v432_v50 }
 0x225   :  { %v506_v30 = vpop.f32.mrf.mxu1  ;;  %v549_v31 = vpop.f32.mrf.mxu0 }
 0x226   :  { %v557_v61 = vadd.f32 %v506_v30, %v391_v53  ;;  %v559_v0 = vadd.f32 %v549_v31, %v434_v54  ;;  %v15373_v9 = vadd.f32 %v569_v56, %v556_v55  ;;  %v15375_v10 = vadd.f32 %v577_v58, %v558_v57  ;;  %v14976_v55 = vpop.eup %14975 }
 0x227   :  { %v508_v33 = vpop.f32.mrf.mxu1  ;;  %v551_v34 = vpop.f32.mrf.mxu0  ;;  %v969_v53 = vrot.slane %v11054_v20, %v15357_v47  ;;  %v977_v54 = vrot.slane %v11054_v20, %v15359_v48 }
 0x228   :  { %v560_v11 = vadd.f32 %v508_v33, %v393_v2  ;;  %v562_v17 = vadd.f32 %v551_v34, %v436_v3  ;;  %v15380_v27 = vadd.f32 %v573_v62, %v557_v61  ;;  %v15382_v13 = vadd.f32 %v581_v1, %v559_v0 }
 0x229   :  { %v510_v37 = vpop.f32.mrf.mxu1  ;;  %v553_v38 = vpop.f32.mrf.mxu0  ;;  %v594_v26 = vmax.f32 %v15373_v9, 0.0  ;;  %v596_v28 = vmax.f32 %v15375_v10, 0.0 }
 0x22a   :  { %v561_v14 = vadd.f32 %v510_v37, %v395_v7  ;;  %v563_v22 = vadd.f32 %v553_v38, %v438_v8  ;;  %v590_v29 = vadd.f32 %v569_v56, %v560_v11  ;;  %v592_v30 = vadd.f32 %v577_v58, %v562_v17 }
 0x22b   :  { %v682_v40 = vpop.f32.mrf.mxu1  ;;  %v725_v41 = vpop.f32.mrf.mxu0  ;;  %v595_v34 = vmax.f32 %v15380_v27, 0.0  ;;  %v597_v36 = vmax.f32 %v15382_v13, 0.0 }
 0x22c   :  { %v591_v39 = vadd.f32 %v573_v62, %v561_v14  ;;  %v593_v42 = vadd.f32 %v581_v1, %v563_v22  ;;  %v598_v0 = vmax.f32 %v590_v29, 0.0  ;;  %v600_v2 = vmax.f32 %v592_v30, 0.0 }
 0x22d   :  { %v684_v45 = vpop.f32.mrf.mxu1  ;;  %v727_v46 = vpop.f32.mrf.mxu0  ;;  %v204_v1 = vmul.f32 %v14976_v55, %v15344_v32 }
 0x22e   :  { %v599_v10 = vmax.f32 %v591_v39, 0.0  ;;  %v601_v11 = vmax.f32 %v593_v42, 0.0 }
 0x22f   :  { %v15361_v51 = vpop.f32.mrf.mxu1  ;;  %v15363_v52 = vpop.f32.mrf.mxu0  ;;  %v602_v39 = vmul.f32 %v594_v26, %v204_v1  ;;  %v604_v42 = vmul.f32 %v596_v28, %v204_v1 }
 0x230   :  { %v607_v26 = vmul.f32 %v599_v10, %v204_v1  ;;  %v609_v28 = vmul.f32 %v601_v11, %v204_v1 }
 0x231   :  { %v15367_v59 = vpop.f32.mrf.mxu1  ;;  %v15369_v60 = vpop.f32.mrf.mxu0 }
 0x233   :  { %v788_v4 = vpop.f32.mrf.mxu1  ;;  %v831_v5 = vpop.f32.mrf.mxu0 }
 0x234   :  { %v789_v37 = vadd.f32 %v788_v4, %v682_v40  ;;  %v832_v38 = vadd.f32 %v831_v5, %v725_v41  ;;  %v205_v4 = vmul.f32 %v14976_v55, %v15346_v35 }
 0x235   :  { %v790_v18 = vpop.f32.mrf.mxu1  ;;  %v833_v19 = vpop.f32.mrf.mxu0 }
 0x236   :  { %v791_v57 = vadd.f32 %v790_v18, %v684_v45  ;;  %v834_v56 = vadd.f32 %v833_v19, %v727_v46 }
 0x237   :  { %v792_v15 = vpop.f32.mrf.mxu1  ;;  %v835_v16 = vpop.f32.mrf.mxu0 }
 0x238   :  { %v793_v5 = vadd.f32 %v792_v15, %v15361_v51  ;;  %v836_v9 = vadd.f32 %v835_v16, %v15363_v52 }
 0x239   :  { %v794_v31 = vpop.f32.mrf.mxu1  ;;  %v837_v33 = vpop.f32.mrf.mxu0 }
 0x23a   :  { %v795_v19 = vadd.f32 %v794_v31, %v15367_v59  ;;  %v838_v20 = vadd.f32 %v837_v33, %v15369_v60 }
 0x23b   :  { %v899_v49 = vpop.f32.mrf.mxu1  ;;  %v942_v50 = vpop.f32.mrf.mxu0 }
 0x23c   :  { %v951_v58 = vadd.f32 %v899_v49, %v789_v37  ;;  %v953_v61 = vadd.f32 %v942_v50, %v832_v38  ;;  %v606_v49 = vmul.f32 %v598_v0, %v204_v1  ;;  %v608_v50 = vmul.f32 %v600_v2, %v204_v1 }
 0x23d   :  { %v901_v3 = vpop.f32.mrf.mxu1  ;;  %v944_v7 = vpop.f32.mrf.mxu0 }
 0x23e   :  { %v982_v8 = vadd.f32 %v965_v23, %v951_v58  ;;  %v984_v40 = vadd.f32 %v973_v25, %v953_v61  ;;  %v952_v41 = vadd.f32 %v901_v3, %v791_v57  ;;  %v954_v62 = vadd.f32 %v944_v7, %v834_v56 }
 0x23f   :  { %v903_v45 = vpop.f32.mrf.mxu1  ;;  %v946_v46 = vpop.f32.mrf.mxu0 }
 0x240   :  { %v983_v17 = vadd.f32 %v969_v53, %v952_v41  ;;  %v985_v18 = vadd.f32 %v977_v54, %v954_v62  ;;  %v955_v14 = vadd.f32 %v903_v45, %v793_v5  ;;  %v957_v22 = vadd.f32 %v946_v46, %v836_v9 }
 0x241   :  { %v905_v29 = vpop.f32.mrf.mxu1  ;;  %v948_v32 = vpop.f32.mrf.mxu0  ;;  %v990_v30 = vmax.f32 %v982_v8, 0.0  ;;  %v992_v35 = vmax.f32 %v984_v40, 0.0 }
 0x242   :  { %v991_v37 = vmax.f32 %v983_v17, 0.0  ;;  %v993_v51 = vmax.f32 %v985_v18, 0.0  ;;  %v986_v15 = vadd.f32 %v965_v23, %v955_v14  ;;  %v988_v52 = vadd.f32 %v973_v25, %v957_v22  ;;  %v14166_v18 = vld [vmem:[%s18553_s7 + $0x70] sm:$0xff]   ;;  %v14169_v14 = vld [vmem:[%s18553_s7 + $0x68] sm:$0xff]  }
 0x243   :  { %v956_v16 = vadd.f32 %v905_v29, %v795_v19  ;;  %v958_v38 = vadd.f32 %v948_v32, %v838_v20  ;;  %v998_v33 = vmul.f32 %v990_v30, %v205_v4  ;;  %v1000_v57 = vmul.f32 %v992_v35, %v205_v4  ;;  %v14167_v19 = vld [vmem:[%s18553_s7 + $0x30] sm:$0xff]   ;;  %v14170_v22 = vld [vmem:[%s18553_s7 + $0x28] sm:$0xff]   ;;  %v14172_v32 = vld [vmem:[%s18553_s7 + $0x60] sm:$0xff]  }
 0x244   :  { %v994_v55 = vmax.f32 %v986_v15, 0.0  ;;  %v996_v59 = vmax.f32 %v988_v52, 0.0  ;;  %v999_v56 = vmul.f32 %v991_v37, %v205_v4  ;;  %v1001_v58 = vmul.f32 %v993_v51, %v205_v4  ;;  %v14168_v20 = vld [vmem:[%s18553_s7 + $0xb0] sm:$0xff]   ;;  %v14171_v29 = vld [vmem:[%s18553_s7 + $0xa8] sm:$0xff]   ;;  %v14173_v30 = vld [vmem:[%s18553_s7 + $0x20] sm:$0xff]  }
 0x245   :  { %v987_v31 = vadd.f32 %v969_v53, %v956_v16  ;;  %v989_v60 = vadd.f32 %v977_v54, %v958_v38  ;;  %v603_v23 = vmul.f32 %v595_v34, %v204_v1  ;;  %v605_v25 = vmul.f32 %v597_v36, %v204_v1  ;;  %v14164_v1 = vld [vmem:[%s18553_s7 + $0x38] sm:$0xff]   ;;  %v14174_v35 = vld [vmem:[%s18553_s7 + $0xa0] sm:$0xff]   ;;  %v14178_v52 = vld [vmem:[%s18553_s7 + $0x50] sm:$0xff]  }
 0x246   :  { %v1002_v61 = vmul.f32 %v994_v55, %v205_v4  ;;  %v1004_v3 = vmul.f32 %v996_v59, %v205_v4  ;;  %v1006_v40 = vadd.f32 %v998_v33, %v602_v39  ;;  %v1008_v41 = vadd.f32 %v1000_v57, %v604_v42  ;;  %v14175_v37 = vld [vmem:[%s18553_s7 + $0x58] sm:$0xff]   ;;  %v14179_v16 = vld [vmem:[%s18553_s7 + $0x10] sm:$0xff]   ;;  %v14181_v39 = vld [vmem:[%s18553_s7 + $0x48] sm:$0xff]  }
 0x247   :  { %v995_v7 = vmax.f32 %v987_v31, 0.0  ;;  %v997_v8 = vmax.f32 %v989_v60, 0.0  ;;  %v1007_v62 = vadd.f32 %v999_v56, %v603_v23  ;;  %v1009_v5 = vadd.f32 %v1001_v58, %v605_v25  ;;  %v14176_v51 = vld [vmem:[%s18553_s7 + $0x18] sm:$0xff]   ;;  %v14180_v38 = vld [vmem:[%s18553_s7 + $0x90] sm:$0xff]   ;;  %v14182_v42 = vld [vmem:[%s18553_s7 + $0x8] sm:$0xff]  }
 0x248   :  { %v1010_v0 = vadd.f32 %v1002_v61, %v606_v49  ;;  %v1012_v2 = vadd.f32 %v1004_v3, %v608_v50  ;;  %v14177_v15 = vld [vmem:[%s18553_s7 + $0x98] sm:$0xff]   ;;  %v14183_v49 = vld [vmem:[%s18553_s7 + $0x88] sm:$0xff]   ;;  %v14184_v50 = vld [vmem:[%s18553_s7 + $0x40] sm:$0xff]  }
 0x249   :  { %v1003_v53 = vmul.f32 %v995_v7, %v205_v4  ;;  %v1005_v54 = vmul.f32 %v997_v8, %v205_v4  ;;  %v14165_v4 = vld [vmem:[%s18553_s7 + $0xb8] sm:$0xff]   ;;  %v14185_v55 = vld [vmem:[%s18553_s7] sm:$0xff]   ;;  %v14190_v57 = vld [vmem:[%s18553_s7 + $0x230] sm:$0xff]  }
 0x24a   :  { %v15402_v46 = vpack.c.bf16 %v1010_v0, %v1006_v40  ;;  %v15404_v17 = vpack.c.bf16 %v1012_v2, %v1008_v41  ;;  %v14186_v59 = vld [vmem:[%s18553_s7 + $0x80] sm:$0xff]   ;;  %v14187_v31 = vld [vmem:[%s18553_s7 + $0x238] sm:$0xff]   ;;  %v14191_v58 = vld [vmem:[%s18553_s7 + $0xd0] sm:$0xff]  }
 0x24b   :  { %v1011_v9 = vadd.f32 %v1003_v53, %v607_v26  ;;  %v1013_v45 = vadd.f32 %v1005_v54, %v609_v28  ;;  %v14188_v60 = vld [vmem:[%s18553_s7 + $0xd8] sm:$0xff]   ;;  %v14192_v61 = vld [vmem:[%s18553_s7 + $0x1f0] sm:$0xff]   ;;  %v14193_v3 = vld [vmem:[%s18553_s7 + $0x228] sm:$0xff]  }
 0x24c   :  { %v15423_v10 = vshrl.u32 %v15402_v46, 16  ;;  %v15426_v11 = vshrl.u32 %v15404_v17, 16  ;;  %v14189_v33 = vld [vmem:[%s18553_s7 + $0x1f8] sm:$0xff]  }
 0x24d   :  { %v15406_v27 = vpack.c.bf16 %v1011_v9, %v1007_v62  ;;  %v15408_v13 = vpack.c.bf16 %v1013_v45, %v1009_v5 }
 0x24f   :  { %v15411_v34 = vshrl.u32 %v15406_v27, 16  ;;  %v15414_v36 = vshrl.u32 %v15408_v13, 16  ;;  %v1710_v56 = vrot.slane %v15406_v27, 1 }
 0x251   :  { %1350 = vmatprep.mubr.bf16.mxu1 %v15411_v34  ;;  %11139 = vmatprep.mubr.msk.bf16.mxu0 %vm1314_vm4, %v15414_v36 }
 0x252   :  { %1351 = vmatmul.mubr.bf16.vlgmr.msra.gmra.mxu1 %v15423_v10  ;;  %1391 = vmatmul.mubr.bf16.vlgmr.msra.gmra.mxu0 %v15426_v11 }
 0x253   :  { %13424 = vmatpush3.bf16.msra.mxu1 %v14164_v1  ;;  %1609 = vmatpush1.bf16.msra.mxu0 %v14165_v4 }
 0x254   :  { %1600 = vmatprep.mubr.bf16.mxu1 %v15406_v27  ;;  %11168 = vmatprep.mubr.msk.bf16.mxu0 %vm1314_vm4, %v15408_v13 }
 0x255   :  { %13425 = vmatprep.subr.bf16.mxu1 %v14166_v18  ;;  %1610 = vmatprep.subr.bf16.mxu0 %v15016_v24 }
 0x257   :  { %13426 = vmatpush3.bf16.msra.mxu1 %v14167_v19  ;;  %1611 = vmatpush1.bf16.msra.mxu0 %v14168_v20 }
 0x258   :  { %13427 = vmatprep.subr.bf16.mxu1 %v14169_v14  ;;  %1612 = vmatprep.subr.bf16.mxu0 %v15016_v24 }
 0x25b   :  { %13428 = vmatpush3.bf16.msra.mxu1 %v14170_v22  ;;  %1613 = vmatpush1.bf16.msra.mxu0 %v14171_v29 }
 0x25c   :  { %13429 = vmatprep.subr.bf16.mxu1 %v14172_v32  ;;  %1614 = vmatprep.subr.bf16.mxu0 %v15016_v24 }
 0x25f   :  { %13430 = vmatpush3.bf16.msra.mxu1 %v14173_v30  ;;  %1615 = vmatpush1.bf16.msra.mxu0 %v14174_v35 }
 0x260   :  { %13431 = vmatprep.subr.bf16.mxu1 %v14175_v37  ;;  %1616 = vmatprep.subr.bf16.mxu0 %v15016_v24 }
 0x263   :  { %13432 = vmatpush3.bf16.msra.mxu1 %v14176_v51  ;;  %1617 = vmatpush1.bf16.msra.mxu0 %v14177_v15 }
 0x264   :  { %13433 = vmatprep.subr.bf16.mxu1 %v14178_v52  ;;  %1618 = vmatprep.subr.bf16.mxu0 %v15016_v24 }
 0x267   :  { %13434 = vmatpush3.bf16.msra.mxu1 %v14179_v16  ;;  %1619 = vmatpush1.bf16.msra.mxu0 %v14180_v38 }
 0x268   :  { %13435 = vmatprep.subr.bf16.mxu1 %v14181_v39  ;;  %1620 = vmatprep.subr.bf16.mxu0 %v15016_v24 }
 0x26b   :  { %13436 = vmatpush3.bf16.msra.mxu1 %v14182_v42  ;;  %1621 = vmatpush1.bf16.msra.mxu0 %v14183_v49 }
 0x26c   :  { %13437 = vmatprep.subr.bf16.mxu1 %v14184_v50  ;;  %1622 = vmatprep.subr.bf16.mxu0 %v15016_v24 }
 0x26f   :  { %13438 = vmatpush3.bf16.msra.mxu1 %v14185_v55  ;;  %1623 = vmatpush1.bf16.msra.mxu0 %v14186_v59 }
 0x270   :  { %1632 = vmatprep.subr.bf16.mxu0 %v15016_v24  ;;  %13445 = vmatprep.subr.bf16.mxu1 %v14187_v31 }
 0x272   :  { %1601 = vmatmul.mubr.bf16.vlgmr.msra.gmra.mxu1 %v15402_v46 }
 0x273   :  { %1633 = vmatpush2.bf16.msra.mxu0 %v14188_v60  ;;  %13446 = vmatpush3.bf16.msra.mxu1 %v14189_v33 }
 0x274   :  { %1919 = vmatprep.mubr.bf16.mxu1 %v1710_v56  ;;  %1634 = vmatprep.subr.bf16.mxu0 %v15016_v24 }
 0x275   :  { %16 = vsyncpa [#allocation3], 0  ;;  %13447 = vmatprep.subr.bf16.mxu1 %v14190_v57  ;;  %v14194_v7 = vld [vmem:[%s18553_s7 + $0xc8] sm:$0xff]   ;;  %v14196_v23 = vld [vmem:[%s18553_s7 + $0x220] sm:$0xff]   ;;  %v2026_v41 = vrot.slane %v15411_v34, 1  ;;  %v5570_v62 = vstv %s15334_s21  ;;  %v1709_v50 = vrot.slane %v15402_v46, 1 }
 0x276   :  { %v14195_v8 = vld [vmem:[%s18553_s7 + $0x1e8] sm:$0xff]   ;;  %v14197_v25 = vld [vmem:[%s18553_s7 + $0xc0] sm:$0xff]   ;;  %v14199_v28 = vld [vmem:[%s18553_s7 + $0x218] sm:$0xff]   ;;  %v5572_v4 = vmul.f32 %v5570_v62, %v133_v63  ;;  %v5573_v32 = vmul.f32 %v5570_v62, %v134_v6  ;;  %v1712_v33 = vrot.slane %v15408_v13, 1  ;;  %vm15019_vm5 = vmmov 0  }
 0x277   :  { %1635 = vmatpush2.bf16.msra.mxu0 %v14191_v58  ;;  %13448 = vmatpush3.bf16.msra.mxu1 %v14192_v61  ;;  %v14198_v26 = vld [vmem:[%s18553_s7 + $0x1e0] sm:$0xff]   ;;  %v14200_v0 = vld [vmem:[%s18553_s7 + $0x318] sm:$0xff]   ;;  %v14203_v54 = vld [vmem:[%s18553_s7 + $0x210] sm:$0xff]   ;;  %vm5553_vm6 = vcmask 73728  }
 0x278   :  { %1636 = vmatprep.subr.bf16.mxu0 %v15016_v24  ;;  %13449 = vmatprep.subr.bf16.mxu1 %v14193_v3  ;;  %v14201_v2 = vld [vmem:[%s18553_s7 + $0x1d8] sm:$0xff]   ;;  %v14204_v40 = vld [vmem:[%s18553_s7 + $0x310] sm:$0xff]   ;;  %v14207_v45 = vld [vmem:[%s18553_s7 + $0x208] sm:$0xff]  }
 0x279   :  { %v14202_v53 = vld [vmem:[%s18553_s7 + $0x2d8] sm:$0xff]   ;;  %v14205_v5 = vld [vmem:[%s18553_s7 + $0x1d0] sm:$0xff]   ;;  %v14208_v1 = vld [vmem:[%s18553_s7 + $0x308] sm:$0xff]  }
 0x27a   :  { %v14206_v9 = vld [vmem:[%s18553_s7 + $0x2d0] sm:$0xff]   ;;  %v14209_v19 = vld [vmem:[%s18553_s7 + $0x1c8] sm:$0xff]   ;;  %v5591_v14 = vld [vmem:[%s18550_s4] sm:$0xff] }
 0x27b   :  { %1637 = vmatpush2.bf16.msra.mxu0 %v14194_v7  ;;  %13450 = vmatpush3.bf16.msra.mxu1 %v14195_v8  ;;  %v14210_v20 = vld [vmem:[%s18553_s7 + $0x2c8] sm:$0xff]   ;;  %v14211_v12 = vld [vmem:[%s18553_s7 + $0x200] sm:$0xff]   ;;  %v12197_v29 = vld [vmem:[%s18550_s4 + $0x10] sm:$0xff] }
 0x27c   :  { %1638 = vmatprep.subr.bf16.mxu0 %v15016_v24  ;;  %13451 = vmatprep.subr.bf16.mxu1 %v14196_v23  ;;  %v14212_v63 = vld [vmem:[%s18553_s7 + $0x300] sm:$0xff]   ;;  %v5592_v15 = vld [vmem:[%s18550_s4 + $0x8] sm:$0xff]  ;;  %v14215_v6 = vld [vmem:[%s18553_s7 + $0x2f8] sm:$0xff]  }
 0x27d   :  { %v14213_v37 = vld [vmem:[%s18553_s7 + $0x1c0] sm:$0xff]   ;;  %v12198_v38 = vld [vmem:[%s18550_s4 + $0x18] sm:$0xff]  ;;  %v14218_v57 = vld [vmem:[%s18553_s7 + $0x2f0] sm:$0xff]  }
 0x27e   :  { %v14214_v51 = vld [vmem:[%s18553_s7 + $0x2c0] sm:$0xff]   ;;  %v14216_v49 = vld [vmem:[%s18553_s7 + $0x278] sm:$0xff]   ;;  %v14219_v56 = vld [vmem:[%s18553_s7 + $0x270] sm:$0xff]  }
 0x27f   :  { %1639 = vmatpush2.bf16.msra.mxu0 %v14197_v25  ;;  %13452 = vmatpush3.bf16.msra.mxu1 %v14198_v26  ;;  %v14217_v55 = vld [vmem:[%s18553_s7 + $0x2b8] sm:$0xff]   ;;  %v14220_v58 = vld [vmem:[%s18553_s7 + $0x2b0] sm:$0xff]   ;;  %v14221_v3 = vld [vmem:[%s18553_s7 + $0x2e8] sm:$0xff]  }
 0x280   :  { %13453 = vmatprep.subr.bf16.mxu1 %v14199_v28  ;;  %13467 = vmatprep.subr.bf16.mxu0 %v14200_v0  ;;  %v14222_v7 = vld [vmem:[%s18553_s7 + $0x268] sm:$0xff]   ;;  %v14224_v23 = vld [vmem:[%s18553_s7 + $0x2e0] sm:$0xff]   ;;  %v14227_v28 = vld [vmem:[%s18553_s7 + $0x258] sm:$0xff]  }
 0x281   :  { %v14223_v8 = vld [vmem:[%s18553_s7 + $0x2a8] sm:$0xff]   ;;  %v14225_v25 = vld [vmem:[%s18553_s7 + $0x260] sm:$0xff]   ;;  %v14228_v0 = vld [vmem:[%s18553_s7 + $0x358] sm:$0xff]  }
 0x282   :  { %1641 = vmatmul.mubr.bf16.vlgmr.msra.gmra.mxu0 %v15404_v17  ;;  %v14226_v26 = vld [vmem:[%s18553_s7 + $0x2a0] sm:$0xff]   ;;  %v14232_v62 = vld [vmem:[%s18553_s7 + $0x348] sm:$0xff]  }
 0x283   :  { %13454 = vmatpush3.bf16.msra.mxu1 %v14201_v2  ;;  %13468 = vmatpush3.bf16.msra.mxu0 %v14202_v53  ;;  %v2025_v2 = vrot.slane %v15423_v10, 1  ;;  %v2028_v53 = vrot.slane %v15414_v36, 1 }
 0x284   :  { %2235 = vmatprep.mubr.bf16.mxu0 %v2026_v41  ;;  %13455 = vmatprep.subr.bf16.mxu1 %v14203_v54  ;;  %v14229_v54 = vld [vmem:[%s18553_s7 + $0x250] sm:$0xff]   ;;  %v14231_v41 = vld [vmem:[%s18553_s7 + $0x248] sm:$0xff]  }
 0x285   :  { %13469 = vmatprep.subr.bf16.mxu0 %v14204_v40  ;;  %v14230_v40 = vld [vmem:[%s18553_s7 + $0x350] sm:$0xff]  }
 0x287   :  { %13456 = vmatpush3.bf16.msra.mxu1 %v14205_v5  ;;  %13470 = vmatpush3.bf16.msra.mxu0 %v14206_v9  ;;  %v5584_v18 = vpop.permute.xlu1 %5583  ;;  %v14233_v5 = vld [vmem:[%s18553_s7 + $0x240] sm:$0xff]  }
 0x288   :  { %v5589_v22 = vadd.f32 %v5584_v18, %v5572_v4  ;;  %13457 = vmatprep.subr.bf16.mxu1 %v14207_v45  ;;  %13471 = vmatprep.subr.bf16.mxu0 %v14208_v1  ;;  %v14234_v9 = vld [vmem:[%s18553_s7 + $0x340] sm:$0xff]   ;;  %v14235_v45 = vld [vmem:[%s18553_s7 + $0x298] sm:$0xff]   ;;  %v14237_v4 = vld [vmem:[%s18553_s7 + $0x290] sm:$0xff]  }
 0x289   :  { %v14236_v1 = vld [vmem:[%s18553_s7 + $0x338] sm:$0xff]   ;;  %v14238_v18 = vld [vmem:[%s18553_s7 + $0x330] sm:$0xff]  }
 0x28a   :  { %v5593_v30 = vmul.f32 %v5591_v14, %v5589_v22  ;;  %v5610_v16 = vmul.f32 %v12197_v29, %v5589_v22  ;;  %v14241_v14 = vld [vmem:[%s18553_s7 + $0x280] sm:$0xff]   ;;  %v1711_v29 = vrot.slane %v15404_v17, 1 }
 0x28b   :  { %13458 = vmatpush3.bf16.msra.mxu1 %v14209_v19  ;;  %13472 = vmatpush3.bf16.msra.mxu0 %v14210_v20  ;;  %v5586_v35 = vpop.permute.xlu1 %5585  ;;  %v14239_v19 = vld [vmem:[%s18553_s7 + $0x288] sm:$0xff]  }
 0x28c   :  { %v5590_v52 = vadd.f32 %v5586_v35, %v5573_v32  ;;  %13459 = vmatprep.subr.bf16.mxu1 %v14211_v12  ;;  %13473 = vmatprep.subr.bf16.mxu0 %v14212_v63  ;;  %v5595_v21 = vsel %vm163_vm3, %v5593_v30, 0.0  ;;  %v5612_v59 = vsel %vm163_vm3, %v5610_v16, 0.0  ;;  %v14240_v20 = vld [vmem:[%s18553_s7 + $0x328] sm:$0xff]   ;;  %v14243_v12 = vld [vmem:[%s18553_s7 + $0x3f8] sm:$0xff]   ;;  %v14246_v30 = vld [vmem:[%s18553_s7 + $0x3f0] sm:$0xff]   ;;  %v2342_v35 = vrot.slane %v15406_v27, 2 }
 0x28d   :  { %5596 = vadd.xlane.f32.xlu0 %v5595_v21  ;;  %v14245_v63 = vld [vmem:[%s18553_s7 + $0x3b8] sm:$0xff]   ;;  %v14250_v21 = vld [vmem:[%s18553_s7 + $0x368] sm:$0xff]   ;;  %v14254_v16 = vld [vmem:[%s18553_s7 + $0x3a0] sm:$0xff]  }
 0x28e   :  { %v15619_v39 = vpack.c.bf16 %v5590_v52, %v5589_v22  ;;  %v5594_v42 = vmul.f32 %v5592_v15, %v5590_v52  ;;  %v5611_v60 = vmul.f32 %v12198_v38, %v5590_v52  ;;  %v14242_v22 = vld [vmem:[%s18553_s7 + $0x320] sm:$0xff]   ;;  %v14244_v32 = vld [vmem:[%s18553_s7 + $0x378] sm:$0xff]   ;;  %v14249_v15 = vld [vmem:[%s18553_s7 + $0x3e8] sm:$0xff]  }
 0x28f   :  { %13460 = vmatpush3.bf16.msra.mxu1 %v14213_v37  ;;  %13474 = vmatpush3.bf16.msra.mxu0 %v14214_v51  ;;  %v14248_v37 = vld [vmem:[%s18553_s7 + $0x3b0] sm:$0xff]   ;;  %v14251_v52 = vld [vmem:[%s18553_s7 + $0x3a8] sm:$0xff]   ;;  %v14253_v38 = vld [vmem:[%s18553_s7 + $0x360] sm:$0xff]  }
 0x290   :  { %1927 = vmatprep.subr.bf16.mxu1 %v15016_v24  ;;  %13475 = vmatprep.subr.bf16.mxu0 %v14215_v6  ;;  %v5598_v31 = vsel %vm163_vm3, %v5594_v42, 0.0  ;;  %v5615_v61 = vsel %vm163_vm3, %v5611_v60, 0.0  ;;  %v14247_v51 = vld [vmem:[%s18553_s7 + $0x370] sm:$0xff]   ;;  %v14252_v6 = vld [vmem:[%s18553_s7 + $0x3e0] sm:$0xff]   ;;  %v14255_v42 = vld [vmem:[%s18553_s7 + $0x3d8] sm:$0xff]  }
 0x291   :  { %5613 = vadd.xlane.f32.xlu0 %v5612_v59  ;;  %5599 = vadd.xlane.f32.xlu1 %v5598_v31  ;;  %v2027_v59 = vrot.slane %v15426_v11, 1  ;;  %v14259_v31 = vld [vmem:[%s18553_s7 + $0x3d0] sm:$0xff]  }
 0x292   :  { %1920 = vmatmul.mubr.bf16.vlgmr.msra.gmra.mxu1 %v1709_v50  ;;  %v14257_v50 = vld [vmem:[%s18553_s7 + $0x398] sm:$0xff]   ;;  %v14260_v60 = vld [vmem:[%s18553_s7 + $0x4d0] sm:$0xff]  }
 0x293   :  { %1928 = vmatpush1.bf16.msra.mxu1 %v14216_v49  ;;  %11253 = vmatprep.mubr.msk.bf16.mxu1 %vm1314_vm4, %v1712_v33  ;;  %v14256_v49 = vld [vmem:[%s18553_s7 + $0x4d8] sm:$0xff]   ;;  %v2658_v33 = vrot.slane %v15411_v34, 2 }
 0x294   :  { %13476 = vmatpush3.bf16.msra.mxu0 %v14217_v55  ;;  %1929 = vmatprep.subr.bf16.mxu1 %v15016_v24  ;;  %v14258_v55 = vld [vmem:[%s18553_s7 + $0x498] sm:$0xff]  }
 0x295   :  { %13477 = vmatprep.subr.bf16.mxu0 %v14218_v57  ;;  %5616 = vadd.xlane.f32.xlu0 %v5615_v61  ;;  %v14261_v57 = vld [vmem:[%s18553_s7 + $0x390] sm:$0xff]   ;;  %v14264_v61 = vld [vmem:[%s18553_s7 + $0x4c8] sm:$0xff]  }
 0x297   :  { %1930 = vmatpush1.bf16.msra.mxu1 %v14219_v56  ;;  %v14262_v56 = vld [vmem:[%s18553_s7 + $0x490] sm:$0xff]  }
 0x298   :  { %13478 = vmatpush3.bf16.msra.mxu0 %v14220_v58  ;;  %1931 = vmatprep.subr.bf16.mxu1 %v15016_v24  ;;  %v14263_v58 = vld [vmem:[%s18553_s7 + $0x3c8] sm:$0xff]  }
 0x299   :  { %13479 = vmatprep.subr.bf16.mxu0 %v14221_v3  ;;  %v14265_v3 = vld [vmem:[%s18553_s7 + $0x388] sm:$0xff]  }
 0x29b   :  { %1932 = vmatpush1.bf16.msra.mxu1 %v14222_v7  ;;  %v14266_v7 = vld [vmem:[%s18553_s7 + $0x488] sm:$0xff]  }
 0x29c   :  { %13480 = vmatpush3.bf16.msra.mxu0 %v14223_v8  ;;  %1933 = vmatprep.subr.bf16.mxu1 %v15016_v24  ;;  %v14267_v8 = vld [vmem:[%s18553_s7 + $0x3c0] sm:$0xff]  }
 0x29d   :  { %13481 = vmatprep.subr.bf16.mxu0 %v14224_v23  ;;  %v14268_v23 = vld [vmem:[%s18553_s7 + $0x4c0] sm:$0xff]  }
 0x29f   :  { %1934 = vmatpush1.bf16.msra.mxu1 %v14225_v25  ;;  %v14269_v25 = vld [vmem:[%s18553_s7 + $0x380] sm:$0xff]  }
 0x2a0   :  { %13482 = vmatpush3.bf16.msra.mxu0 %v14226_v26  ;;  %1935 = vmatprep.subr.bf16.mxu1 %v15016_v24  ;;  %v14270_v26 = vld [vmem:[%s18553_s7 + $0x480] sm:$0xff]  }
 0x2a1   :  { %2243 = vmatprep.subr.bf16.mxu0 %v15016_v24 }
 0x2a3   :  { %2236 = vmatmul.mubr.bf16.vlgmr.msra.gmra.mxu0 %v2025_v2  ;;  %1936 = vmatpush1.bf16.msra.mxu1 %v14227_v28  ;;  %v14271_v28 = vld [vmem:[%s18553_s7 + $0x4b8] sm:$0xff]   ;;  %v2341_v2 = vrot.slane %v15402_v46, 2 }
 0x2a4   :  { %2244 = vmatpush1.bf16.msra.mxu0 %v14228_v0  ;;  %11338 = vmatprep.mubr.msk.bf16.mxu0 %vm1314_vm4, %v2028_v53  ;;  %v14272_v0 = vld [vmem:[%s18553_s7 + $0x438] sm:$0xff]  }
 0x2a5   :  { %1937 = vmatprep.subr.bf16.mxu1 %v15016_v24  ;;  %2245 = vmatprep.subr.bf16.mxu0 %v15016_v24  ;;  %v14273_v53 = vld [vmem:[%s18553_s7 + $0x478] sm:$0xff]  }
 0x2a7   :  { %1938 = vmatpush1.bf16.msra.mxu1 %v14229_v54  ;;  %v2344_v54 = vrot.slane %v15408_v13, 2 }
 0x2a8   :  { %2246 = vmatpush1.bf16.msra.mxu0 %v14230_v40  ;;  %1939 = vmatprep.subr.bf16.mxu1 %v15016_v24  ;;  %v14274_v40 = vld [vmem:[%s18553_s7 + $0x4b0] sm:$0xff]  }
 0x2a9   :  { %2247 = vmatprep.subr.bf16.mxu0 %v15016_v24 }
 0x2ab   :  { %1940 = vmatpush1.bf16.msra.mxu1 %v14231_v41  ;;  %v14275_v41 = vld [vmem:[%s18553_s7 + $0x430] sm:$0xff]  }
 0x2ac   :  { %2248 = vmatpush1.bf16.msra.mxu0 %v14232_v62  ;;  %1941 = vmatprep.subr.bf16.mxu1 %v15016_v24  ;;  %v14276_v62 = vld [vmem:[%s18553_s7 + $0x470] sm:$0xff]  }
 0x2ad   :  { %2249 = vmatprep.subr.bf16.mxu0 %v15016_v24 }
 0x2af   :  { %1942 = vmatpush1.bf16.msra.mxu1 %v14233_v5  ;;  %v14277_v5 = vld [vmem:[%s18553_s7 + $0x4a8] sm:$0xff]  }
 0x2b0   :  { %2250 = vmatpush1.bf16.msra.mxu0 %v14234_v9  ;;  %1951 = vmatprep.subr.bf16.mxu1 %v15016_v24  ;;  %v14278_v9 = vld [vmem:[%s18553_s7 + $0x428] sm:$0xff]  }
 0x2b1   :  { %2251 = vmatprep.subr.bf16.mxu0 %v15016_v24 }
 0x2b3   :  { %1952 = vmatpush2.bf16.msra.mxu1 %v14235_v45  ;;  %v14279_v45 = vld [vmem:[%s18553_s7 + $0x468] sm:$0xff]  }
 0x2b4   :  { %2252 = vmatpush1.bf16.msra.mxu0 %v14236_v1  ;;  %1953 = vmatprep.subr.bf16.mxu1 %v15016_v24  ;;  %v14280_v1 = vld [vmem:[%s18553_s7 + $0x4a0] sm:$0xff]  }
 0x2b5   :  { %2253 = vmatprep.subr.bf16.mxu0 %v15016_v24 }
 0x2b7   :  { %1954 = vmatpush2.bf16.msra.mxu1 %v14237_v4  ;;  %v14281_v4 = vld [vmem:[%s18553_s7 + $0x420] sm:$0xff]  }
 0x2b8   :  { %2254 = vmatpush1.bf16.msra.mxu0 %v14238_v18  ;;  %1955 = vmatprep.subr.bf16.mxu1 %v15016_v24  ;;  %v14282_v18 = vld [vmem:[%s18553_s7 + $0x460] sm:$0xff]  }
 0x2b9   :  { %2255 = vmatprep.subr.bf16.mxu0 %v15016_v24 }
 0x2bb   :  { %1956 = vmatpush2.bf16.msra.mxu1 %v14239_v19  ;;  %v14283_v19 = vld [vmem:[%s18553_s7 + $0x418] sm:$0xff]  }
 0x2bc   :  { %2256 = vmatpush1.bf16.msra.mxu0 %v14240_v20  ;;  %1957 = vmatprep.subr.bf16.mxu1 %v15016_v24  ;;  %v14284_v20 = vld [vmem:[%s18553_s7 + $0x518] sm:$0xff]  }
 0x2bd   :  { %2257 = vmatprep.subr.bf16.mxu0 %v15016_v24 }
 0x2bf   :  { %1958 = vmatpush2.bf16.msra.mxu1 %v14241_v14  ;;  %v2657_v14 = vrot.slane %v15423_v10, 2 }
 0x2c0   :  { %2258 = vmatpush1.bf16.msra.mxu0 %v14242_v22  ;;  %13489 = vmatprep.subr.bf16.mxu1 %v14243_v12  ;;  %v2660_v22 = vrot.slane %v15414_v36, 2  ;;  %v14285_v12 = vld [vmem:[%s18553_s7 + $0x410] sm:$0xff]  }
 0x2c1   :  { %2267 = vmatprep.subr.bf16.mxu0 %v15016_v24 }
 0x2c2   :  { %1960 = vmatmul.mubr.bf16.vlgmr.msra.gmra.mxu1 %v1711_v29  ;;  %v14287_v29 = vld [vmem:[%s18553_s7 + $0x408] sm:$0xff]  }
 0x2c3   :  { %13490 = vmatpush3.bf16.msra.mxu1 %v14245_v63  ;;  %2551 = vmatprep.mubr.bf16.mxu1 %v2342_v35  ;;  %v14286_v63 = vld [vmem:[%s18553_s7 + $0x510] sm:$0xff]   ;;  %v14290_v35 = vld [vmem:[%s18553_s7 + $0x500] sm:$0xff]  }
 0x2c4   :  { %2268 = vmatpush2.bf16.msra.mxu0 %v14244_v32  ;;  %13491 = vmatprep.subr.bf16.mxu1 %v14246_v30  ;;  %v14288_v32 = vld [vmem:[%s18553_s7 + $0x508] sm:$0xff]   ;;  %v14289_v30 = vld [vmem:[%s18553_s7 + $0x400] sm:$0xff]  }
 0x2c5   :  { %2269 = vmatprep.subr.bf16.mxu0 %v15016_v24 }
 0x2c7   :  { %13492 = vmatpush3.bf16.msra.mxu1 %v14248_v37  ;;  %v14291_v37 = vld [vmem:[%s18553_s7 + $0x458] sm:$0xff]  }
 0x2c8   :  { %2270 = vmatpush2.bf16.msra.mxu0 %v14247_v51  ;;  %13493 = vmatprep.subr.bf16.mxu1 %v14249_v15  ;;  %v14292_v51 = vld [vmem:[%s18553_s7 + $0x4f8] sm:$0xff]   ;;  %v14293_v15 = vld [vmem:[%s18553_s7 + $0x450] sm:$0xff]  }
 0x2c9   :  { %2271 = vmatprep.subr.bf16.mxu0 %v15016_v24 }
 0x2cb   :  { %13494 = vmatpush3.bf16.msra.mxu1 %v14251_v52  ;;  %v14294_v52 = vld [vmem:[%s18553_s7 + $0x4f0] sm:$0xff]  }
 0x2cc   :  { %2272 = vmatpush2.bf16.msra.mxu0 %v14250_v21  ;;  %13495 = vmatprep.subr.bf16.mxu1 %v14252_v6  ;;  %v14295_v21 = vld [vmem:[%s18553_s7 + $0x448] sm:$0xff]  }
 0x2cd   :  { %2273 = vmatprep.subr.bf16.mxu0 %v15016_v24  ;;  %v14296_v6 = vld [vmem:[%s18553_s7 + $0x4e8] sm:$0xff]  }
 0x2cf   :  { %13496 = vmatpush3.bf16.msra.mxu1 %v14254_v16  ;;  %v14297_v16 = vld [vmem:[%s18553_s7 + $0x440] sm:$0xff]  }
 0x2d0   :  { %2274 = vmatpush2.bf16.msra.mxu0 %v14253_v38  ;;  %13497 = vmatprep.subr.bf16.mxu1 %v14255_v42  ;;  %v14298_v38 = vld [vmem:[%s18553_s7 + $0x4e0] sm:$0xff]   ;;  %v14299_v42 = vld [vmem:[%s18553_s7 + $0x5b8] sm:$0xff]  }
 0x2d1   :  { %13511 = vmatprep.subr.bf16.mxu0 %v14256_v49  ;;  %v14301_v49 = vld [vmem:[%s18553_s7 + $0x578] sm:$0xff]  }
 0x2d3   :  { %2276 = vmatmul.mubr.bf16.vlgmr.msra.gmra.mxu0 %v2027_v59  ;;  %13498 = vmatpush3.bf16.msra.mxu1 %v14257_v50  ;;  %v2343_v50 = vrot.slane %v15404_v17, 2  ;;  %v14302_v59 = vld [vmem:[%s18553_s7 + $0x5b0] sm:$0xff]  }
 0x2d4   :  { %13512 = vmatpush3.bf16.msra.mxu0 %v14258_v55  ;;  %2867 = vmatprep.mubr.bf16.mxu0 %v2658_v33  ;;  %v14300_v55 = vld [vmem:[%s18553_s7 + $0x538] sm:$0xff]  }
 0x2d5   :  { %13499 = vmatprep.subr.bf16.mxu1 %v14259_v31  ;;  %13513 = vmatprep.subr.bf16.mxu0 %v14260_v60  ;;  %v2974_v31 = vrot.slane %v15406_v27, 3 }
 0x2d7   :  { %13500 = vmatpush3.bf16.msra.mxu1 %v14261_v57  ;;  %v14304_v57 = vld [vmem:[%s18553_s7 + $0x570] sm:$0xff]  }
 0x2d8   :  { %13514 = vmatpush3.bf16.msra.mxu0 %v14262_v56  ;;  %13501 = vmatprep.subr.bf16.mxu1 %v14263_v58 }
 0x2d9   :  { %13515 = vmatprep.subr.bf16.mxu0 %v14264_v61  ;;  %v14303_v61 = vld [vmem:[%s18553_s7 + $0x530] sm:$0xff]  }
 0x2db   :  { %13502 = vmatpush3.bf16.msra.mxu1 %v14265_v3  ;;  %v14305_v3 = vld [vmem:[%s18553_s7 + $0x5a8] sm:$0xff]  }
 0x2dc   :  { %13516 = vmatpush3.bf16.msra.mxu0 %v14266_v7  ;;  %13503 = vmatprep.subr.bf16.mxu1 %v14267_v8 }
 0x2dd   :  { %13517 = vmatprep.subr.bf16.mxu0 %v14268_v23 }
 0x2df   :  { %13504 = vmatpush3.bf16.msra.mxu1 %v14269_v25 }
 0x2e0   :  { %13518 = vmatpush3.bf16.msra.mxu0 %v14270_v26  ;;  %2559 = vmatprep.subr.bf16.mxu1 %v15016_v24  ;;  %v14307_v26 = vld [vmem:[%s18553_s7 + $0x568] sm:$0xff]  }
 0x2e1   :  { %13519 = vmatprep.subr.bf16.mxu0 %v14271_v28 }
 0x2e2   :  { %2552 = vmatmul.mubr.bf16.vlgmr.msra.gmra.mxu1 %v2341_v2  ;;  %v14306_v2 = vld [vmem:[%s18553_s7 + $0x528] sm:$0xff]  }
 0x2e3   :  { %2560 = vmatpush1.bf16.msra.mxu1 %v14272_v0  ;;  %11423 = vmatprep.mubr.msk.bf16.mxu1 %vm1314_vm4, %v2344_v54  ;;  %v14310_v54 = vld [vmem:[%s18553_s7 + $0x560] sm:$0xff]  }
 0x2e4   :  { %13520 = vmatpush3.bf16.msra.mxu0 %v14273_v53  ;;  %2561 = vmatprep.subr.bf16.mxu1 %v15016_v24  ;;  %v14308_v53 = vld [vmem:[%s18553_s7 + $0x5a0] sm:$0xff]  }
 0x2e5   :  { %13521 = vmatprep.subr.bf16.mxu0 %v14274_v40  ;;  %v14309_v40 = vld [vmem:[%s18553_s7 + $0x520] sm:$0xff]  }
 0x2e7   :  { %2562 = vmatpush1.bf16.msra.mxu1 %v14275_v41  ;;  %v14311_v41 = vld [vmem:[%s18553_s7 + $0x598] sm:$0xff]  }
 0x2e8   :  { %13522 = vmatpush3.bf16.msra.mxu0 %v14276_v62  ;;  %2563 = vmatprep.subr.bf16.mxu1 %v15016_v24  ;;  %v14312_v62 = vld [vmem:[%s18553_s7 + $0x698] sm:$0xff]  }
 0x2e9   :  { %13523 = vmatprep.subr.bf16.mxu0 %v14277_v5  ;;  %v14313_v5 = vld [vmem:[%s18553_s7 + $0x558] sm:$0xff]  }
 0x2eb   :  { %2564 = vmatpush1.bf16.msra.mxu1 %v14278_v9  ;;  %v14314_v9 = vld [vmem:[%s18553_s7 + $0x658] sm:$0xff]  }
 0x2ec   :  { %13524 = vmatpush3.bf16.msra.mxu0 %v14279_v45  ;;  %2565 = vmatprep.subr.bf16.mxu1 %v15016_v24  ;;  %v2659_v45 = vrot.slane %v15426_v11, 2 }
 0x2ed   :  { %13525 = vmatprep.subr.bf16.mxu0 %v14280_v1  ;;  %v14315_v1 = vld [vmem:[%s18553_s7 + $0x590] sm:$0xff]  }
 0x2ef   :  { %2566 = vmatpush1.bf16.msra.mxu1 %v14281_v4  ;;  %v14316_v4 = vld [vmem:[%s18553_s7 + $0x690] sm:$0xff]  }
 0x2f0   :  { %13526 = vmatpush3.bf16.msra.mxu0 %v14282_v18  ;;  %2567 = vmatprep.subr.bf16.mxu1 %v15016_v24  ;;  %v3290_v18 = vrot.slane %v15411_v34, 3 }
 0x2f1   :  { %2875 = vmatprep.subr.bf16.mxu0 %v15016_v24 }
 0x2f3   :  { %2868 = vmatmul.mubr.bf16.vlgmr.msra.gmra.mxu0 %v2657_v14  ;;  %2568 = vmatpush1.bf16.msra.mxu1 %v14283_v19  ;;  %v14317_v19 = vld [vmem:[%s18553_s7 + $0x550] sm:$0xff]   ;;  %v14319_v14 = vld [vmem:[%s18553_s7 + $0x588] sm:$0xff]  }
 0x2f4   :  { %2876 = vmatpush1.bf16.msra.mxu0 %v14284_v20  ;;  %11508 = vmatprep.mubr.msk.bf16.mxu0 %vm1314_vm4, %v2660_v22  ;;  %v14318_v20 = vld [vmem:[%s18553_s7 + $0x650] sm:$0xff]   ;;  %v14320_v22 = vld [vmem:[%s18553_s7 + $0x688] sm:$0xff]  }
 0x2f5   :  { %2569 = vmatprep.subr.bf16.mxu1 %v15016_v24  ;;  %2877 = vmatprep.subr.bf16.mxu0 %v15016_v24 }
 0x2f7   :  { %2570 = vmatpush1.bf16.msra.mxu1 %v14285_v12  ;;  %v14321_v12 = vld [vmem:[%s18553_s7 + $0x548] sm:$0xff]  }
 0x2f8   :  { %2878 = vmatpush1.bf16.msra.mxu0 %v14286_v63  ;;  %2571 = vmatprep.subr.bf16.mxu1 %v15016_v24  ;;  %v14322_v63 = vld [vmem:[%s18553_s7 + $0x648] sm:$0xff]  }
 0x2f9   :  { %2879 = vmatprep.subr.bf16.mxu0 %v15016_v24 }
 0x2fb   :  { %2572 = vmatpush1.bf16.msra.mxu1 %v14287_v29  ;;  %v14323_v29 = vld [vmem:[%s18553_s7 + $0x580] sm:$0xff]  }
 0x2fc   :  { %2880 = vmatpush1.bf16.msra.mxu0 %v14288_v32  ;;  %2573 = vmatprep.subr.bf16.mxu1 %v15016_v24  ;;  %v14324_v32 = vld [vmem:[%s18553_s7 + $0x680] sm:$0xff]  }
 0x2fd   :  { %2881 = vmatprep.subr.bf16.mxu0 %v15016_v24 }
 0x2ff   :  { %2574 = vmatpush1.bf16.msra.mxu1 %v14289_v30  ;;  %v14325_v30 = vld [vmem:[%s18553_s7 + $0x540] sm:$0xff]  }
 0x300   :  { %2882 = vmatpush1.bf16.msra.mxu0 %v14290_v35  ;;  %2583 = vmatprep.subr.bf16.mxu1 %v15016_v24  ;;  %v14326_v35 = vld [vmem:[%s18553_s7 + $0x640] sm:$0xff]  }
 0x301   :  { %2883 = vmatprep.subr.bf16.mxu0 %v15016_v24 }
 0x303   :  { %2584 = vmatpush2.bf16.msra.mxu1 %v14291_v37  ;;  %v14327_v37 = vld [vmem:[%s18553_s7 + $0x678] sm:$0xff]  }
 0x304   :  { %2884 = vmatpush1.bf16.msra.mxu0 %v14292_v51  ;;  %2585 = vmatprep.subr.bf16.mxu1 %v15016_v24  ;;  %v14328_v51 = vld [vmem:[%s18553_s7 + $0x5f8] sm:$0xff]  }
 0x305   :  { %2885 = vmatprep.subr.bf16.mxu0 %v15016_v24 }
 0x307   :  { %2586 = vmatpush2.bf16.msra.mxu1 %v14293_v15  ;;  %v2973_v15 = vrot.slane %v15402_v46, 3 }
 0x308   :  { %2886 = vmatpush1.bf16.msra.mxu0 %v14294_v52  ;;  %2587 = vmatprep.subr.bf16.mxu1 %v15016_v24  ;;  %v14329_v52 = vld [vmem:[%s18553_s7 + $0x638] sm:$0xff]  }
 0x309   :  { %2887 = vmatprep.subr.bf16.mxu0 %v15016_v24 }
 0x30b   :  { %2588 = vmatpush2.bf16.msra.mxu1 %v14295_v21  ;;  %v2976_v21 = vrot.slane %v15408_v13, 3 }
 0x30c   :  { %2888 = vmatpush1.bf16.msra.mxu0 %v14296_v6  ;;  %2589 = vmatprep.subr.bf16.mxu1 %v15016_v24  ;;  %v14330_v6 = vld [vmem:[%s18553_s7 + $0x670] sm:$0xff]  }
 0x30d   :  { %2889 = vmatprep.subr.bf16.mxu0 %v15016_v24 }
 0x30f   :  { %2590 = vmatpush2.bf16.msra.mxu1 %v14297_v16 }
 0x310   :  { %2890 = vmatpush1.bf16.msra.mxu0 %v14298_v38  ;;  %13533 = vmatprep.subr.bf16.mxu1 %v14299_v42  ;;  %v14331_v38 = vld [vmem:[%s18553_s7 + $0x5f0] sm:$0xff]  }
 0x311   :  { %2899 = vmatprep.subr.bf16.mxu0 %v15016_v24 }
 0x312   :  { %2592 = vmatmul.mubr.bf16.vlgmr.msra.gmra.mxu1 %v2343_v50  ;;  %v13417_v60 = vpop.f32.mrf.mxu1  ;;  %v1392_v33 = vpop.f32.mrf.mxu0 }
 0x313   :  { %13534 = vmatpush3.bf16.msra.mxu1 %v14301_v49  ;;  %3183 = vmatprep.mubr.bf16.mxu1 %v2974_v31  ;;  %v14332_v49 = vld [vmem:[%s18553_s7 + $0x630] sm:$0xff]   ;;  %v14334_v31 = vld [vmem:[%s18553_s7 + $0x5e8] sm:$0xff]  }
 0x314   :  { %2900 = vmatpush2.bf16.msra.mxu0 %v14300_v55  ;;  %v13418_v56 = vpop.f32.mrf.mxu1  ;;  %v1394_v58 = vpop.f32.mrf.mxu0  ;;  %13535 = vmatprep.subr.bf16.mxu1 %v14302_v59  ;;  %v14333_v55 = vld [vmem:[%s18553_s7 + $0x668] sm:$0xff]  }
 0x315   :  { %v13419_v7 = vadd.f32 %v13418_v56, %v13417_v60  ;;  %2901 = vmatprep.subr.bf16.mxu0 %v15016_v24  ;;  %v14336_v56 = vld [vmem:[%s18553_s7 + $0x660] sm:$0xff]  }
 0x316   :  { %v13420_v8 = vpop.f32.mrf.mxu1  ;;  %v1395_v23 = vpop.f32.mrf.mxu0  ;;  %v14337_v58 = vld [vmem:[%s18553_s7 + $0x5e0] sm:$0xff]  }
 0x317   :  { %v15958_v25 = vadd.f32 %v13419_v7, %v1392_v33  ;;  %13536 = vmatpush3.bf16.msra.mxu1 %v14304_v57  ;;  %v14335_v57 = vld [vmem:[%s18553_s7 + $0x628] sm:$0xff]   ;;  %v14340_v7 = vld [vmem:[%s18553_s7 + $0x6d8] sm:$0xff]   ;;  %v3289_v8 = vrot.slane %v15423_v10, 3 }
 0x318   :  { %2902 = vmatpush2.bf16.msra.mxu0 %v14303_v61  ;;  %v13421_v28 = vpop.f32.mrf.mxu1  ;;  %v1396_v0 = vpop.f32.mrf.mxu0  ;;  %13537 = vmatprep.subr.bf16.mxu1 %v14305_v3  ;;  %v14338_v61 = vld [vmem:[%s18553_s7 + $0x620] sm:$0xff]   ;;  %v14339_v3 = vld [vmem:[%s18553_s7 + $0x5d8] sm:$0xff]  }
 0x319   :  { %2903 = vmatprep.subr.bf16.mxu0 %v15016_v24  ;;  %v14341_v28 = vld [vmem:[%s18553_s7 + $0x5d0] sm:$0xff]  }
 0x31b   :  { %13538 = vmatpush3.bf16.msra.mxu1 %v14307_v26 }
 0x31c   :  { %2904 = vmatpush2.bf16.msra.mxu0 %v14306_v2  ;;  %13539 = vmatprep.subr.bf16.mxu1 %v14308_v53  ;;  %v14342_v2 = vld [vmem:[%s18553_s7 + $0x6d0] sm:$0xff]  }
 0x31d   :  { %2905 = vmatprep.subr.bf16.mxu0 %v15016_v24 }
 0x31f   :  { %13540 = vmatpush3.bf16.msra.mxu1 %v14310_v54  ;;  %v14343_v54 = vld [vmem:[%s18553_s7 + $0x5c8] sm:$0xff]  }
 0x320   :  { %2906 = vmatpush2.bf16.msra.mxu0 %v14309_v40  ;;  %13541 = vmatprep.subr.bf16.mxu1 %v14311_v41  ;;  %v14344_v41 = vld [vmem:[%s18553_s7 + $0x6c8] sm:$0xff]  }
 0x321   :  { %13555 = vmatprep.subr.bf16.mxu0 %v14312_v62  ;;  %v14345_v62 = vld [vmem:[%s18553_s7 + $0x5c0] sm:$0xff]  }
 0x323   :  { %2908 = vmatmul.mubr.bf16.vlgmr.msra.gmra.mxu0 %v2659_v45  ;;  %13542 = vmatpush3.bf16.msra.mxu1 %v14313_v5  ;;  %v14346_v5 = vld [vmem:[%s18553_s7 + $0x6c0] sm:$0xff]   ;;  %v14348_v45 = vld [vmem:[%s18553_s7 + $0x6b8] sm:$0xff]  }
 0x324   :  { %13556 = vmatpush3.bf16.msra.mxu0 %v14314_v9  ;;  %3499 = vmatprep.mubr.bf16.mxu0 %v3290_v18  ;;  %v14347_v9 = vld [vmem:[%s18553_s7 + $0x618] sm:$0xff]  }
 0x325   :  { %13543 = vmatprep.subr.bf16.mxu1 %v14315_v1  ;;  %13557 = vmatprep.subr.bf16.mxu0 %v14316_v4  ;;  %v14349_v4 = vld [vmem:[%s18553_s7 + $0x610] sm:$0xff]  }
 0x327   :  { %13544 = vmatpush3.bf16.msra.mxu1 %v14317_v19  ;;  %v14350_v19 = vld [vmem:[%s18553_s7 + $0x6b0] sm:$0xff]  }
 0x328   :  { %13558 = vmatpush3.bf16.msra.mxu0 %v14318_v20  ;;  %13545 = vmatprep.subr.bf16.mxu1 %v14319_v14 }
 0x329   :  { %13559 = vmatprep.subr.bf16.mxu0 %v14320_v22  ;;  %v14351_v22 = vld [vmem:[%s18553_s7 + $0x608] sm:$0xff]  }
 0x32b   :  { %13546 = vmatpush3.bf16.msra.mxu1 %v14321_v12 }
 0x32c   :  { %13560 = vmatpush3.bf16.msra.mxu0 %v14322_v63  ;;  %13547 = vmatprep.subr.bf16.mxu1 %v14323_v29  ;;  %v14352_v63 = vld [vmem:[%s18553_s7 + $0x6a8] sm:$0xff]   ;;  %v14353_v29 = vld [vmem:[%s18553_s7 + $0x600] sm:$0xff]  }
 0x32d   :  { %13561 = vmatprep.subr.bf16.mxu0 %v14324_v32  ;;  %v14354_v32 = vld [vmem:[%s18553_s7 + $0x6a0] sm:$0xff]  }
 0x32f   :  { %13548 = vmatpush3.bf16.msra.mxu1 %v14325_v30  ;;  %v14355_v30 = vld [vmem:[%s18553_s7 + $0x778] sm:$0xff]  }
 0x330   :  { %13562 = vmatpush3.bf16.msra.mxu0 %v14326_v35  ;;  %3191 = vmatprep.subr.bf16.mxu1 %v15016_v24  ;;  %v14357_v35 = vld [vmem:[%s18553_s7 + $0x738] sm:$0xff]  }
 0x331   :  { %13563 = vmatprep.subr.bf16.mxu0 %v14327_v37  ;;  %v2975_v37 = vrot.slane %v15404_v17, 3 }
 0x332   :  { %v13439_v16 = vpop.f32.mrf.mxu1  ;;  %3184 = vmatmul.mubr.bf16.vlgmr.msra.gmra.mxu1 %v2973_v15  ;;  %v14358_v15 = vld [vmem:[%s18553_s7 + $0x770] sm:$0xff]  }
 0x333   :  { %3192 = vmatpush1.bf16.msra.mxu1 %v14328_v51  ;;  %11593 = vmatprep.mubr.msk.bf16.mxu1 %vm1314_vm4, %v2976_v21  ;;  %v14356_v51 = vld [vmem:[%s18553_s7 + $0x6f8] sm:$0xff]  }
 0x334   :  { %13564 = vmatpush3.bf16.msra.mxu0 %v14329_v52  ;;  %v13440_v42 = vpop.f32.mrf.mxu1  ;;  %3193 = vmatprep.subr.bf16.mxu1 %v15016_v24  ;;  %v3606_v52 = vrot.slane %v15406_v27, 4 }
 0x335   :  { %v13441_v50 = vadd.f32 %v13440_v42, %v13439_v16  ;;  %13565 = vmatprep.subr.bf16.mxu0 %v14330_v6  ;;  %v14360_v6 = vld [vmem:[%s18553_s7 + $0x730] sm:$0xff]  }
 0x336   :  { %v13442_v59 = vpop.f32.mrf.mxu1  ;;  %v14359_v16 = vld [vmem:[%s18553_s7 + $0x6f0] sm:$0xff]  }
 0x337   :  { %3194 = vmatpush1.bf16.msra.mxu1 %v14331_v38  ;;  %v1603_v60 = vadd.f32 %v13441_v50, %v15958_v25  ;;  %v3292_v25 = vrot.slane %v15414_v36, 3  ;;  %v14361_v38 = vld [vmem:[%s18553_s7 + $0x768] sm:$0xff]  }
 0x338   :  { %13566 = vmatpush3.bf16.msra.mxu0 %v14332_v49  ;;  %v13443_v33 = vpop.f32.mrf.mxu1  ;;  %3195 = vmatprep.subr.bf16.mxu1 %v15016_v24  ;;  %v14362_v59 = vld [vmem:[%s18553_s7 + $0x6e8] sm:$0xff]  }
 0x339   :  { %13567 = vmatprep.subr.bf16.mxu0 %v14333_v55  ;;  %v14363_v55 = vld [vmem:[%s18553_s7 + $0x728] sm:$0xff]   ;;  %v14366_v33 = vld [vmem:[%s18553_s7 + $0x720] sm:$0xff]  }
 0x33b   :  { %3196 = vmatpush1.bf16.msra.mxu1 %v14334_v31  ;;  %v14364_v31 = vld [vmem:[%s18553_s7 + $0x760] sm:$0xff]  }
 0x33c   :  { %13568 = vmatpush3.bf16.msra.mxu0 %v14335_v57  ;;  %3197 = vmatprep.subr.bf16.mxu1 %v15016_v24  ;;  %v14365_v57 = vld [vmem:[%s18553_s7 + $0x6e0] sm:$0xff]  }
 0x33d   :  { %13569 = vmatprep.subr.bf16.mxu0 %v14336_v56  ;;  %v14367_v56 = vld [vmem:[%s18553_s7 + $0x758] sm:$0xff]  }
 0x33f   :  { %3198 = vmatpush1.bf16.msra.mxu1 %v14337_v58  ;;  %v14368_v58 = vld [vmem:[%s18553_s7 + $0x858] sm:$0xff]  }
 0x340   :  { %13570 = vmatpush3.bf16.msra.mxu0 %v14338_v61  ;;  %3199 = vmatprep.subr.bf16.mxu1 %v15016_v24  ;;  %v14369_v61 = vld [vmem:[%s18553_s7 + $0x718] sm:$0xff]  }
 0x341   :  { %3507 = vmatprep.subr.bf16.mxu0 %v15016_v24 }
 0x342   :  { %v1642_v23 = vpop.f32.mrf.mxu0 }
 0x343   :  { %v16081_v26 = vadd.f32 %v1642_v23, %v1603_v60  ;;  %3500 = vmatmul.mubr.bf16.vlgmr.msra.gmra.mxu0 %v3289_v8  ;;  %3200 = vmatpush1.bf16.msra.mxu1 %v14339_v3  ;;  %v14370_v3 = vld [vmem:[%s18553_s7 + $0x818] sm:$0xff]   ;;  %v14371_v8 = vld [vmem:[%s18553_s7 + $0x750] sm:$0xff]  }
 0x344   :  { %3508 = vmatpush1.bf16.msra.mxu0 %v14340_v7  ;;  %11678 = vmatprep.mubr.msk.bf16.mxu0 %vm1314_vm4, %v3292_v25  ;;  %v1644_v0 = vpop.f32.mrf.mxu0  ;;  %v3291_v7 = vrot.slane %v15426_v11, 3  ;;  %v14372_v23 = vld [vmem:[%s18553_s7 + $0x850] sm:$0xff]   ;;  %v3922_v25 = vrot.slane %v15411_v34, 4 }
 0x345   :  { %3201 = vmatprep.subr.bf16.mxu1 %v15016_v24  ;;  %3509 = vmatprep.subr.bf16.mxu0 %v15016_v24  ;;  %v14374_v0 = vld [vmem:[%s18553_s7 + $0x810] sm:$0xff]  }
 0x346   :  { %v1645_v53 = vpop.f32.mrf.mxu0 }
 0x347   :  { %3202 = vmatpush1.bf16.msra.mxu1 %v14341_v28  ;;  %v14373_v28 = vld [vmem:[%s18553_s7 + $0x710] sm:$0xff]   ;;  %v14376_v53 = vld [vmem:[%s18553_s7 + $0x848] sm:$0xff]  }
 0x348   :  { %3510 = vmatpush1.bf16.msra.mxu0 %v14342_v2  ;;  %v1646_v40 = vpop.f32.mrf.mxu0  ;;  %3203 = vmatprep.subr.bf16.mxu1 %v15016_v24  ;;  %v14375_v2 = vld [vmem:[%s18553_s7 + $0x748] sm:$0xff]  }
 0x349   :  { %3511 = vmatprep.subr.bf16.mxu0 %v15016_v24  ;;  %v14378_v40 = vld [vmem:[%s18553_s7 + $0x808] sm:$0xff]  }
 0x34b   :  { %3204 = vmatpush1.bf16.msra.mxu1 %v14343_v54  ;;  %v14377_v54 = vld [vmem:[%s18553_s7 + $0x708] sm:$0xff]  }
 0x34c   :  { %3512 = vmatpush1.bf16.msra.mxu0 %v14344_v41  ;;  %3205 = vmatprep.subr.bf16.mxu1 %v15016_v24  ;;  %v14379_v41 = vld [vmem:[%s18553_s7 + $0x740] sm:$0xff]  }
 0x34d   :  { %3513 = vmatprep.subr.bf16.mxu0 %v15016_v24 }
 0x34f   :  { %3206 = vmatpush1.bf16.msra.mxu1 %v14345_v62  ;;  %v14380_v62 = vld [vmem:[%s18553_s7 + $0x840] sm:$0xff]  }
 0x350   :  { %3514 = vmatpush1.bf16.msra.mxu0 %v14346_v5  ;;  %3215 = vmatprep.subr.bf16.mxu1 %v15016_v24  ;;  %v14381_v5 = vld [vmem:[%s18553_s7 + $0x700] sm:$0xff]  }
 0x351   :  { %3515 = vmatprep.subr.bf16.mxu0 %v15016_v24 }
 0x352   :  { %v13461_v1 = vpop.f32.mrf.mxu1 }
 0x353   :  { %3216 = vmatpush2.bf16.msra.mxu1 %v14347_v9  ;;  %v14382_v9 = vld [vmem:[%s18553_s7 + $0x800] sm:$0xff]  }
 0x354   :  { %3516 = vmatpush1.bf16.msra.mxu0 %v14348_v45  ;;  %v13462_v18 = vpop.f32.mrf.mxu1  ;;  %3217 = vmatprep.subr.bf16.mxu1 %v15016_v24  ;;  %v14383_v45 = vld [vmem:[%s18553_s7 + $0x838] sm:$0xff]  }
 0x355   :  { %v16123_v20 = vadd.f32 %v13462_v18, %v13461_v1  ;;  %3517 = vmatprep.subr.bf16.mxu0 %v15016_v24  ;;  %v14384_v1 = vld [vmem:[%s18553_s7 + $0x7b8] sm:$0xff]  }
 0x356   :  { %v13464_v14 = vpop.f32.mrf.mxu1  ;;  %v14385_v18 = vld [vmem:[%s18553_s7 + $0x7f8] sm:$0xff]  }
 0x357   :  { %3218 = vmatpush2.bf16.msra.mxu1 %v14349_v4  ;;  %v3605_v4 = vrot.slane %v15402_v46, 4  ;;  %v14386_v14 = vld [vmem:[%s18553_s7 + $0x830] sm:$0xff]  }
 0x358   :  { %3518 = vmatpush1.bf16.msra.mxu0 %v14350_v19  ;;  %v13465_v12 = vpop.f32.mrf.mxu1  ;;  %3219 = vmatprep.subr.bf16.mxu1 %v15016_v24  ;;  %v3608_v19 = vrot.slane %v15408_v13, 4 }
 0x359   :  { %3519 = vmatprep.subr.bf16.mxu0 %v15016_v24 }
 0x35b   :  { %3220 = vmatpush2.bf16.msra.mxu1 %v14351_v22 }
 0x35c   :  { %3520 = vmatpush1.bf16.msra.mxu0 %v14352_v63  ;;  %3221 = vmatprep.subr.bf16.mxu1 %v15016_v24  ;;  %v14387_v63 = vld [vmem:[%s18553_s7 + $0x7b0] sm:$0xff]  }
 0x35d   :  { %3521 = vmatprep.subr.bf16.mxu0 %v15016_v24 }
 0x35f   :  { %3222 = vmatpush2.bf16.msra.mxu1 %v14353_v29 }
 0x360   :  { %3522 = vmatpush1.bf16.msra.mxu0 %v14354_v32  ;;  %13577 = vmatprep.subr.bf16.mxu1 %v14355_v30  ;;  %v14388_v32 = vld [vmem:[%s18553_s7 + $0x7f0] sm:$0xff]  }
 0x361   :  { %3531 = vmatprep.subr.bf16.mxu0 %v15016_v24 }
 0x362   :  { %3224 = vmatmul.mubr.bf16.vlgmr.msra.gmra.mxu1 %v2975_v37  ;;  %v14390_v37 = vld [vmem:[%s18553_s7 + $0x7a8] sm:$0xff]  }
 0x363   :  { %v13483_v21 = vpop.f32.mrf.mxu0  ;;  %13578 = vmatpush3.bf16.msra.mxu1 %v14357_v35  ;;  %3815 = vmatprep.mubr.bf16.mxu1 %v3606_v52  ;;  %v14393_v52 = vld [vmem:[%s18553_s7 + $0x7a0] sm:$0xff]  }
 0x364   :  { %3532 = vmatpush2.bf16.msra.mxu0 %v14356_v51  ;;  %13579 = vmatprep.subr.bf16.mxu1 %v14358_v15  ;;  %v14391_v15 = vld [vmem:[%s18553_s7 + $0x7e8] sm:$0xff]  }
 0x365   :  { %v13484_v42 = vpop.f32.mrf.mxu0  ;;  %3533 = vmatprep.subr.bf16.mxu0 %v15016_v24 }
 0x366   :  { %v16167_v49 = vadd.f32 %v13484_v42, %v13483_v21  ;;  %v14394_v21 = vld [vmem:[%s18553_s7 + $0x7e0] sm:$0xff]   ;;  %v3924_v42 = vrot.slane %v15414_v36, 4 }
 0x367   :  { %v13486_v50 = vpop.f32.mrf.mxu0  ;;  %13580 = vmatpush3.bf16.msra.mxu1 %v14360_v6  ;;  %v14395_v6 = vld [vmem:[%s18553_s7 + $0x798] sm:$0xff]  }
 0x368   :  { %3534 = vmatpush2.bf16.msra.mxu0 %v14359_v16  ;;  %13581 = vmatprep.subr.bf16.mxu1 %v14361_v38  ;;  %v14396_v16 = vld [vmem:[%s18553_s7 + $0x898] sm:$0xff]   ;;  %v3921_v38 = vrot.slane %v15423_v10, 4 }
 0x369   :  { %v13487_v60 = vpop.f32.mrf.mxu0  ;;  %3535 = vmatprep.subr.bf16.mxu0 %v15016_v24 }
 0x36b   :  { %13582 = vmatpush3.bf16.msra.mxu1 %v14363_v55  ;;  %v14397_v55 = vld [vmem:[%s18553_s7 + $0x790] sm:$0xff]  }
 0x36c   :  { %3536 = vmatpush2.bf16.msra.mxu0 %v14362_v59  ;;  %13583 = vmatprep.subr.bf16.mxu1 %v14364_v31  ;;  %v14398_v31 = vld [vmem:[%s18553_s7 + $0x890] sm:$0xff]  }
 0x36d   :  { %3537 = vmatprep.subr.bf16.mxu0 %v15016_v24 }
 0x36f   :  { %13584 = vmatpush3.bf16.msra.mxu1 %v14366_v33 }
 0x370   :  { %3538 = vmatpush2.bf16.msra.mxu0 %v14365_v57  ;;  %13585 = vmatprep.subr.bf16.mxu1 %v14367_v56  ;;  %v14400_v56 = vld [vmem:[%s18553_s7 + $0x888] sm:$0xff]  }
 0x371   :  { %13599 = vmatprep.subr.bf16.mxu0 %v14368_v58 }
 0x373   :  { %3540 = vmatmul.mubr.bf16.vlgmr.msra.gmra.mxu0 %v3291_v7  ;;  %13586 = vmatpush3.bf16.msra.mxu1 %v14369_v61  ;;  %v14401_v61 = vld [vmem:[%s18553_s7 + $0x780] sm:$0xff]   ;;  %v14403_v7 = vld [vmem:[%s18553_s7 + $0x7d8] sm:$0xff]  }
 0x374   :  { %13600 = vmatpush3.bf16.msra.mxu0 %v14370_v3  ;;  %4131 = vmatprep.mubr.bf16.mxu0 %v3922_v25  ;;  %v14402_v3 = vld [vmem:[%s18553_s7 + $0x880] sm:$0xff]   ;;  %v14405_v25 = vld [vmem:[%s18553_s7 + $0x7d0] sm:$0xff]  }
 0x375   :  { %13587 = vmatprep.subr.bf16.mxu1 %v14371_v8  ;;  %13601 = vmatprep.subr.bf16.mxu0 %v14372_v23  ;;  %v14404_v8 = vld [vmem:[%s18553_s7 + $0x878] sm:$0xff]  }
 0x377   :  { %13588 = vmatpush3.bf16.msra.mxu1 %v14373_v28 }
 0x378   :  { %13602 = vmatpush3.bf16.msra.mxu0 %v14374_v0  ;;  %13589 = vmatprep.subr.bf16.mxu1 %v14375_v2  ;;  %v14406_v0 = vld [vmem:[%s18553_s7 + $0x870] sm:$0xff]  }
 0x379   :  { %13603 = vmatprep.subr.bf16.mxu0 %v14376_v53 }
 0x37b   :  { %13590 = vmatpush3.bf16.msra.mxu1 %v14377_v54  ;;  %v14407_v54 = vld [vmem:[%s18553_s7 + $0x7c8] sm:$0xff]  }
 0x37c   :  { %13604 = vmatpush3.bf16.msra.mxu0 %v14378_v40  ;;  %13591 = vmatprep.subr.bf16.mxu1 %v14379_v41  ;;  %v14408_v41 = vld [vmem:[%s18553_s7 + $0x868] sm:$0xff]  }
 0x37d   :  { %13605 = vmatprep.subr.bf16.mxu0 %v14380_v62  ;;  %v14409_v62 = vld [vmem:[%s18553_s7 + $0x7c0] sm:$0xff]  }
 0x37f   :  { %13592 = vmatpush3.bf16.msra.mxu1 %v14381_v5  ;;  %v14410_v5 = vld [vmem:[%s18553_s7 + $0x860] sm:$0xff]  }
 0x380   :  { %13606 = vmatpush3.bf16.msra.mxu0 %v14382_v9  ;;  %3823 = vmatprep.subr.bf16.mxu1 %v15016_v24  ;;  %v14411_v9 = vld [vmem:[%s18553_s7 + $0x938] sm:$0xff]  }
 0x381   :  { %13607 = vmatprep.subr.bf16.mxu0 %v14383_v45  ;;  %v14413_v45 = vld [vmem:[%s18553_s7 + $0x8f8] sm:$0xff]  }
 0x382   :  { %v1961_v22 = vpop.f32.mrf.mxu1  ;;  %3816 = vmatmul.mubr.bf16.vlgmr.msra.gmra.mxu1 %v3605_v4  ;;  %v14412_v4 = vld [vmem:[%s18553_s7 + $0x8b8] sm:$0xff]  }
 0x383   :  { %v1962_v12 = vadd.f32 %v16123_v20, %v1961_v22  ;;  %3824 = vmatpush1.bf16.msra.mxu1 %v14384_v1  ;;  %11763 = vmatprep.mubr.msk.bf16.mxu1 %vm1314_vm4, %v3608_v19  ;;  %v14389_v20 = vld [vmem:[%s18553_s7 + $0x828] sm:$0xff]   ;;  %v3607_v1 = vrot.slane %v15404_v17, 4  ;;  %v4238_v19 = vrot.slane %v15406_v27, 5  ;;  %v14416_v22 = vld [vmem:[%s18553_s7 + $0x8f0] sm:$0xff]  }
 0x384   :  { %13608 = vmatpush3.bf16.msra.mxu0 %v14385_v18  ;;  %v1963_v29 = vpop.f32.mrf.mxu1  ;;  %3825 = vmatprep.subr.bf16.mxu1 %v15016_v24  ;;  %v14414_v18 = vld [vmem:[%s18553_s7 + $0x930] sm:$0xff]  }
 0x385   :  { %v1967_v30 = vadd.f32 %v1962_v12, %v16081_v26  ;;  %13609 = vmatprep.subr.bf16.mxu0 %v14386_v14  ;;  %v14392_v26 = vld [vmem:[%s18553_s7 + $0x820] sm:$0xff]   ;;  %v14415_v12 = vld [vmem:[%s18553_s7 + $0x8b0] sm:$0xff]  }
 0x386   :  { %v1964_v35 = vpop.f32.mrf.mxu1 }
 0x387   :  { %3826 = vmatpush1.bf16.msra.mxu1 %v14387_v63  ;;  %v14417_v63 = vld [vmem:[%s18553_s7 + $0x928] sm:$0xff]  }
 0x388   :  { %13610 = vmatpush3.bf16.msra.mxu0 %v14388_v32  ;;  %v1965_v51 = vpop.f32.mrf.mxu1  ;;  %3827 = vmatprep.subr.bf16.mxu1 %v15016_v24  ;;  %v14418_v35 = vld [vmem:[%s18553_s7 + $0x8a8] sm:$0xff]  }
 0x389   :  { %13611 = vmatprep.subr.bf16.mxu0 %v14389_v20  ;;  %v14419_v20 = vld [vmem:[%s18553_s7 + $0x8e8] sm:$0xff]  }
 0x38b   :  { %3828 = vmatpush1.bf16.msra.mxu1 %v14390_v37  ;;  %v14420_v37 = vld [vmem:[%s18553_s7 + $0x920] sm:$0xff]  }
 0x38c   :  { %13612 = vmatpush3.bf16.msra.mxu0 %v14391_v15  ;;  %3829 = vmatprep.subr.bf16.mxu1 %v15016_v24  ;;  %v14422_v15 = vld [vmem:[%s18553_s7 + $0x8e0] sm:$0xff]  }
 0x38d   :  { %13613 = vmatprep.subr.bf16.mxu0 %v14392_v26  ;;  %v14421_v26 = vld [vmem:[%s18553_s7 + $0x8a0] sm:$0xff]  }
 0x38f   :  { %3830 = vmatpush1.bf16.msra.mxu1 %v14393_v52  ;;  %v14423_v52 = vld [vmem:[%s18553_s7 + $0x918] sm:$0xff]  }
 0x390   :  { %13614 = vmatpush3.bf16.msra.mxu0 %v14394_v21  ;;  %3831 = vmatprep.subr.bf16.mxu1 %v15016_v24  ;;  %v14424_v21 = vld [vmem:[%s18553_s7 + $0xa18] sm:$0xff]  }
 0x391   :  { %4139 = vmatprep.subr.bf16.mxu0 %v15016_v24 }
 0x393   :  { %v2277_v50 = vpop.f32.mrf.mxu0  ;;  %4132 = vmatmul.mubr.bf16.vlgmr.msra.gmra.mxu0 %v3921_v38  ;;  %3832 = vmatpush1.bf16.msra.mxu1 %v14395_v6  ;;  %v14425_v6 = vld [vmem:[%s18553_s7 + $0x8d8] sm:$0xff]   ;;  %v3923_v38 = vrot.slane %v15426_v11, 4 }
 0x394   :  { %v2278_v59 = vadd.f32 %v16167_v49, %v2277_v50  ;;  %4140 = vmatpush1.bf16.msra.mxu0 %v14396_v16  ;;  %11848 = vmatprep.mubr.msk.bf16.mxu0 %vm1314_vm4, %v3924_v42  ;;  %v14399_v49 = vld [vmem:[%s18553_s7 + $0x788] sm:$0xff]   ;;  %v14426_v16 = vld [vmem:[%s18553_s7 + $0x9d8] sm:$0xff]   ;;  %v14427_v42 = vld [vmem:[%s18553_s7 + $0x910] sm:$0xff]  }
 0x395   :  { %v2279_v60 = vpop.f32.mrf.mxu0  ;;  %3833 = vmatprep.subr.bf16.mxu1 %v15016_v24  ;;  %4141 = vmatprep.subr.bf16.mxu0 %v15016_v24  ;;  %v14428_v50 = vld [vmem:[%s18553_s7 + $0xa10] sm:$0xff]  }
 0x396   :  { %v16301_v33 = vadd.f32 %v2278_v59, %v1967_v30  ;;  %v14429_v59 = vld [vmem:[%s18553_s7 + $0x8d0] sm:$0xff]   ;;  %v14431_v60 = vld [vmem:[%s18553_s7 + $0x908] sm:$0xff]  }
 0x397   :  { %v2280_v57 = vpop.f32.mrf.mxu0  ;;  %3834 = vmatpush1.bf16.msra.mxu1 %v14397_v55  ;;  %v4554_v55 = vrot.slane %v15411_v34, 5 }
 0x398   :  { %4142 = vmatpush1.bf16.msra.mxu0 %v14398_v31  ;;  %3835 = vmatprep.subr.bf16.mxu1 %v15016_v24  ;;  %v14430_v31 = vld [vmem:[%s18553_s7 + $0x9d0] sm:$0xff]   ;;  %v14432_v57 = vld [vmem:[%s18553_s7 + $0xa08] sm:$0xff]  }
 0x399   :  { %v2281_v58 = vpop.f32.mrf.mxu0  ;;  %4143 = vmatprep.subr.bf16.mxu0 %v15016_v24 }
 0x39a   :  { %v14435_v58 = vld [vmem:[%s18553_s7 + $0x900] sm:$0xff]  }
 0x39b   :  { %3836 = vmatpush1.bf16.msra.mxu1 %v14399_v49  ;;  %v14433_v49 = vld [vmem:[%s18553_s7 + $0x8c8] sm:$0xff]  }
 0x39c   :  { %4144 = vmatpush1.bf16.msra.mxu0 %v14400_v56  ;;  %3837 = vmatprep.subr.bf16.mxu1 %v15016_v24  ;;  %v14434_v56 = vld [vmem:[%s18553_s7 + $0x9c8] sm:$0xff]  }
 0x39d   :  { %4145 = vmatprep.subr.bf16.mxu0 %v15016_v24 }
 0x39f   :  { %3838 = vmatpush1.bf16.msra.mxu1 %v14401_v61  ;;  %v14436_v61 = vld [vmem:[%s18553_s7 + $0xa00] sm:$0xff]  }
 0x3a0   :  { %4146 = vmatpush1.bf16.msra.mxu0 %v14402_v3  ;;  %3847 = vmatprep.subr.bf16.mxu1 %v15016_v24  ;;  %v14437_v3 = vld [vmem:[%s18553_s7 + $0x8c0] sm:$0xff]  }
 0x3a1   :  { %4147 = vmatprep.subr.bf16.mxu0 %v15016_v24 }
 0x3a2   :  { %v13505_v23 = vpop.f32.mrf.mxu1 }
 0x3a3   :  { %3848 = vmatpush2.bf16.msra.mxu1 %v14403_v7  ;;  %v14438_v7 = vld [vmem:[%s18553_s7 + $0x9c0] sm:$0xff]  }
 0x3a4   :  { %4148 = vmatpush1.bf16.msra.mxu0 %v14404_v8  ;;  %v13506_v28 = vpop.f32.mrf.mxu1  ;;  %3849 = vmatprep.subr.bf16.mxu1 %v15016_v24  ;;  %v14439_v8 = vld [vmem:[%s18553_s7 + $0x9f8] sm:$0xff]  }
 0x3a5   :  { %v16334_v2 = vadd.f32 %v13506_v28, %v13505_v23  ;;  %4149 = vmatprep.subr.bf16.mxu0 %v15016_v24  ;;  %v14440_v23 = vld [vmem:[%s18553_s7 + $0x978] sm:$0xff]  }
 0x3a6   :  { %v13508_v53 = vpop.f32.mrf.mxu1  ;;  %v14441_v28 = vld [vmem:[%s18553_s7 + $0x9b8] sm:$0xff]  }
 0x3a7   :  { %3850 = vmatpush2.bf16.msra.mxu1 %v14405_v25  ;;  %v4237_v25 = vrot.slane %v15402_v46, 5  ;;  %v14442_v53 = vld [vmem:[%s18553_s7 + $0x9f0] sm:$0xff]  }
 0x3a8   :  { %4150 = vmatpush1.bf16.msra.mxu0 %v14406_v0  ;;  %v13509_v40 = vpop.f32.mrf.mxu1  ;;  %3851 = vmatprep.subr.bf16.mxu1 %v15016_v24  ;;  %v4240_v0 = vrot.slane %v15408_v13, 5 }
 0x3a9   :  { %4151 = vmatprep.subr.bf16.mxu0 %v15016_v24 }
 0x3ab   :  { %3852 = vmatpush2.bf16.msra.mxu1 %v14407_v54 }
 0x3ac   :  { %4152 = vmatpush1.bf16.msra.mxu0 %v14408_v41  ;;  %3853 = vmatprep.subr.bf16.mxu1 %v15016_v24  ;;  %v14443_v41 = vld [vmem:[%s18553_s7 + $0x970] sm:$0xff]  }
 0x3ad   :  { %4153 = vmatprep.subr.bf16.mxu0 %v15016_v24 }
 0x3af   :  { %3854 = vmatpush2.bf16.msra.mxu1 %v14409_v62 }
 0x3b0   :  { %4154 = vmatpush1.bf16.msra.mxu0 %v14410_v5  ;;  %13621 = vmatprep.subr.bf16.mxu1 %v14411_v9  ;;  %v14444_v5 = vld [vmem:[%s18553_s7 + $0x9b0] sm:$0xff]  }
 0x3b1   :  { %4163 = vmatprep.subr.bf16.mxu0 %v15016_v24 }
 0x3b2   :  { %3856 = vmatmul.mubr.bf16.vlgmr.msra.gmra.mxu1 %v3607_v1  ;;  %v14446_v1 = vld [vmem:[%s18553_s7 + $0x968] sm:$0xff]  }
 0x3b3   :  { %v13527_v14 = vpop.f32.mrf.mxu0  ;;  %13622 = vmatpush3.bf16.msra.mxu1 %v14413_v45  ;;  %4447 = vmatprep.mubr.bf16.mxu1 %v4238_v19  ;;  %v14449_v19 = vld [vmem:[%s18553_s7 + $0x960] sm:$0xff]  }
 0x3b4   :  { %4164 = vmatpush2.bf16.msra.mxu0 %v14412_v4  ;;  %13623 = vmatprep.subr.bf16.mxu1 %v14414_v18  ;;  %v14447_v18 = vld [vmem:[%s18553_s7 + $0x9a8] sm:$0xff]  }
 0x3b5   :  { %v13528_v29 = vpop.f32.mrf.mxu0  ;;  %4165 = vmatprep.subr.bf16.mxu0 %v15016_v24 }
 0x3b6   :  { %v16378_v32 = vadd.f32 %v13528_v29, %v13527_v14  ;;  %v14450_v14 = vld [vmem:[%s18553_s7 + $0x9a0] sm:$0xff]   ;;  %v4556_v29 = vrot.slane %v15414_v36, 5 }
 0x3b7   :  { %v13530_v30 = vpop.f32.mrf.mxu0  ;;  %13624 = vmatpush3.bf16.msra.mxu1 %v14416_v22  ;;  %v14451_v22 = vld [vmem:[%s18553_s7 + $0x958] sm:$0xff]  }
 0x3b8   :  { %4166 = vmatpush2.bf16.msra.mxu0 %v14415_v12  ;;  %13625 = vmatprep.subr.bf16.mxu1 %v14417_v63  ;;  %v14452_v12 = vld [vmem:[%s18553_s7 + $0xa58] sm:$0xff]   ;;  %v4553_v63 = vrot.slane %v15423_v10, 5 }
 0x3b9   :  { %v13531_v51 = vpop.f32.mrf.mxu0  ;;  %4167 = vmatprep.subr.bf16.mxu0 %v15016_v24 }
 0x3bb   :  { %13626 = vmatpush3.bf16.msra.mxu1 %v14419_v20  ;;  %v14453_v20 = vld [vmem:[%s18553_s7 + $0x950] sm:$0xff]  }
 0x3bc   :  { %4168 = vmatpush2.bf16.msra.mxu0 %v14418_v35  ;;  %13627 = vmatprep.subr.bf16.mxu1 %v14420_v37  ;;  %v14454_v37 = vld [vmem:[%s18553_s7 + $0xa50] sm:$0xff]  }
 0x3bd   :  { %4169 = vmatprep.subr.bf16.mxu0 %v15016_v24 }
 0x3bf   :  { %13628 = vmatpush3.bf16.msra.mxu1 %v14422_v15 }
 0x3c0   :  { %4170 = vmatpush2.bf16.msra.mxu0 %v14421_v26  ;;  %13629 = vmatprep.subr.bf16.mxu1 %v14423_v52  ;;  %v14456_v52 = vld [vmem:[%s18553_s7 + $0xa48] sm:$0xff]  }
 0x3c1   :  { %13643 = vmatprep.subr.bf16.mxu0 %v14424_v21 }
 0x3c3   :  { %4172 = vmatmul.mubr.bf16.vlgmr.msra.gmra.mxu0 %v3923_v38  ;;  %13630 = vmatpush3.bf16.msra.mxu1 %v14425_v6  ;;  %v14457_v6 = vld [vmem:[%s18553_s7 + $0x940] sm:$0xff]   ;;  %v14459_v38 = vld [vmem:[%s18553_s7 + $0x998] sm:$0xff]  }
 0x3c4   :  { %13644 = vmatpush3.bf16.msra.mxu0 %v14426_v16  ;;  %4763 = vmatprep.mubr.bf16.mxu0 %v4554_v55  ;;  %v14458_v16 = vld [vmem:[%s18553_s7 + $0xa40] sm:$0xff]   ;;  %v14461_v55 = vld [vmem:[%s18553_s7 + $0x990] sm:$0xff]  }
 0x3c5   :  { %13631 = vmatprep.subr.bf16.mxu1 %v14427_v42  ;;  %13645 = vmatprep.subr.bf16.mxu0 %v14428_v50  ;;  %v14460_v42 = vld [vmem:[%s18553_s7 + $0xa38] sm:$0xff]  }
 0x3c7   :  { %13632 = vmatpush3.bf16.msra.mxu1 %v14429_v59 }
 0x3c8   :  { %13646 = vmatpush3.bf16.msra.mxu0 %v14430_v31  ;;  %13633 = vmatprep.subr.bf16.mxu1 %v14431_v60  ;;  %v14462_v31 = vld [vmem:[%s18553_s7 + $0xa30] sm:$0xff]  }
 0x3c9   :  { %13647 = vmatprep.subr.bf16.mxu0 %v14432_v57 }
 0x3cb   :  { %13634 = vmatpush3.bf16.msra.mxu1 %v14433_v49  ;;  %v14463_v49 = vld [vmem:[%s18553_s7 + $0x988] sm:$0xff]  }
 0x3cc   :  { %13648 = vmatpush3.bf16.msra.mxu0 %v14434_v56  ;;  %13635 = vmatprep.subr.bf16.mxu1 %v14435_v58  ;;  %v14464_v58 = vld [vmem:[%s18553_s7 + $0xa28] sm:$0xff]  }
 0x3cd   :  { %13649 = vmatprep.subr.bf16.mxu0 %v14436_v61  ;;  %v14465_v61 = vld [vmem:[%s18553_s7 + $0x980] sm:$0xff]  }
 0x3cf   :  { %13636 = vmatpush3.bf16.msra.mxu1 %v14437_v3  ;;  %v14466_v3 = vld [vmem:[%s18553_s7 + $0xa20] sm:$0xff]  }
 0x3d0   :  { %13650 = vmatpush3.bf16.msra.mxu0 %v14438_v7  ;;  %4455 = vmatprep.subr.bf16.mxu1 %v15016_v24  ;;  %v14467_v7 = vld [vmem:[%s18553_s7 + $0xaf8] sm:$0xff]  }
 0x3d1   :  { %13651 = vmatprep.subr.bf16.mxu0 %v14439_v8  ;;  %v14469_v8 = vld [vmem:[%s18553_s7 + $0xab8] sm:$0xff]  }
 0x3d2   :  { %v2593_v54 = vpop.f32.mrf.mxu1  ;;  %4448 = vmatmul.mubr.bf16.vlgmr.msra.gmra.mxu1 %v4237_v25  ;;  %v14468_v25 = vld [vmem:[%s18553_s7 + $0xa78] sm:$0xff]  }
 0x3d3   :  { %v2594_v40 = vadd.f32 %v16334_v2, %v2593_v54  ;;  %4456 = vmatpush1.bf16.msra.mxu1 %v14440_v23  ;;  %11933 = vmatprep.mubr.msk.bf16.mxu1 %vm1314_vm4, %v4240_v0  ;;  %v14445_v2 = vld [vmem:[%s18553_s7 + $0x9e8] sm:$0xff]   ;;  %v4239_v23 = vrot.slane %v15404_v17, 5  ;;  %v4870_v0 = vrot.slane %v15406_v27, 6  ;;  %v14472_v54 = vld [vmem:[%s18553_s7 + $0xab0] sm:$0xff]  }
 0x3d4   :  { %13652 = vmatpush3.bf16.msra.mxu0 %v14441_v28  ;;  %v2595_v62 = vpop.f32.mrf.mxu1  ;;  %4457 = vmatprep.subr.bf16.mxu1 %v15016_v24  ;;  %v14470_v28 = vld [vmem:[%s18553_s7 + $0xaf0] sm:$0xff]  }
 0x3d5   :  { %v2599_v9 = vadd.f32 %v2594_v40, %v16301_v33  ;;  %13653 = vmatprep.subr.bf16.mxu0 %v14442_v53  ;;  %v14448_v33 = vld [vmem:[%s18553_s7 + $0x9e0] sm:$0xff]   ;;  %v14471_v40 = vld [vmem:[%s18553_s7 + $0xa70] sm:$0xff]  }
 0x3d6   :  { %v2596_v45 = vpop.f32.mrf.mxu1 }
 0x3d7   :  { %4458 = vmatpush1.bf16.msra.mxu1 %v14443_v41  ;;  %v14473_v41 = vld [vmem:[%s18553_s7 + $0xae8] sm:$0xff]   ;;  %v14476_v45 = vld [vmem:[%s18553_s7 + $0xae0] sm:$0xff]  }
 0x3d8   :  { %13654 = vmatpush3.bf16.msra.mxu0 %v14444_v5  ;;  %v2597_v4 = vpop.f32.mrf.mxu1  ;;  %4459 = vmatprep.subr.bf16.mxu1 %v15016_v24 }
 0x3d9   :  { %13655 = vmatprep.subr.bf16.mxu0 %v14445_v2  ;;  %v14474_v2 = vld [vmem:[%s18553_s7 + $0xa68] sm:$0xff]   ;;  %v14478_v4 = vld [vmem:[%s18553_s7 + $0xaa0] sm:$0xff]  }
 0x3db   :  { %4460 = vmatpush1.bf16.msra.mxu1 %v14446_v1 }
 0x3dc   :  { %13656 = vmatpush3.bf16.msra.mxu0 %v14447_v18  ;;  %4461 = vmatprep.subr.bf16.mxu1 %v15016_v24  ;;  %v14477_v18 = vld [vmem:[%s18553_s7 + $0xa60] sm:$0xff]  }
 0x3dd   :  { %13657 = vmatprep.subr.bf16.mxu0 %v14448_v33  ;;  %v14479_v33 = vld [vmem:[%s18553_s7 + $0xad8] sm:$0xff]  }
 0x3df   :  { %4462 = vmatpush1.bf16.msra.mxu1 %v14449_v19  ;;  %v14480_v19 = vld [vmem:[%s18553_s7 + $0xbd8] sm:$0xff]  }
 0x3e0   :  { %13658 = vmatpush3.bf16.msra.mxu0 %v14450_v14  ;;  %4463 = vmatprep.subr.bf16.mxu1 %v15016_v24  ;;  %v14481_v14 = vld [vmem:[%s18553_s7 + $0xa98] sm:$0xff]  }
 0x3e1   :  { %4771 = vmatprep.subr.bf16.mxu0 %v15016_v24 }
 0x3e3   :  { %v2909_v30 = vpop.f32.mrf.mxu0  ;;  %4764 = vmatmul.mubr.bf16.vlgmr.msra.gmra.mxu0 %v4553_v63  ;;  %4464 = vmatpush1.bf16.msra.mxu1 %v14451_v22  ;;  %v14482_v22 = vld [vmem:[%s18553_s7 + $0xb98] sm:$0xff]   ;;  %v14483_v63 = vld [vmem:[%s18553_s7 + $0xad0] sm:$0xff]  }
 0x3e4   :  { %v2910_v35 = vadd.f32 %v16378_v32, %v2909_v30  ;;  %4772 = vmatpush1.bf16.msra.mxu0 %v14452_v12  ;;  %12018 = vmatprep.mubr.msk.bf16.mxu0 %vm1314_vm4, %v4556_v29  ;;  %v14455_v32 = vld [vmem:[%s18553_s7 + $0x948] sm:$0xff]   ;;  %v4555_v12 = vrot.slane %v15426_v11, 5  ;;  %v14484_v29 = vld [vmem:[%s18553_s7 + $0xbd0] sm:$0xff]   ;;  %v5186_v30 = vrot.slane %v15411_v34, 6 }
 0x3e5   :  { %v2911_v51 = vpop.f32.mrf.mxu0  ;;  %4465 = vmatprep.subr.bf16.mxu1 %v15016_v24  ;;  %4773 = vmatprep.subr.bf16.mxu0 %v15016_v24  ;;  %v14488_v34 = vld [vmem:[%s18553_s7 + $0xbc8] sm:$0xff]  }
 0x3e6   :  { %v16512_v15 = vadd.f32 %v2910_v35, %v2599_v9  ;;  %v14475_v9 = vld [vmem:[%s18553_s7 + $0xaa8] sm:$0xff]   ;;  %v14486_v35 = vld [vmem:[%s18553_s7 + $0xb90] sm:$0xff]  }
 0x3e7   :  { %v2912_v26 = vpop.f32.mrf.mxu0  ;;  %4466 = vmatpush1.bf16.msra.mxu1 %v14453_v20  ;;  %v14485_v20 = vld [vmem:[%s18553_s7 + $0xa90] sm:$0xff]   ;;  %v14489_v51 = vld [vmem:[%s18553_s7 + $0xa88] sm:$0xff]  }
 0x3e8   :  { %4774 = vmatpush1.bf16.msra.mxu0 %v14454_v37  ;;  %4467 = vmatprep.subr.bf16.mxu1 %v15016_v24  ;;  %v14487_v37 = vld [vmem:[%s18553_s7 + $0xac8] sm:$0xff]  }
 0x3e9   :  { %v2913_v21 = vpop.f32.mrf.mxu0  ;;  %4775 = vmatprep.subr.bf16.mxu0 %v15016_v24  ;;  %v14490_v26 = vld [vmem:[%s18553_s7 + $0xb88] sm:$0xff]  }
 0x3ea   :  { %v14493_v21 = vld [vmem:[%s18553_s7 + $0xa80] sm:$0xff]  }
 0x3eb   :  { %4468 = vmatpush1.bf16.msra.mxu1 %v14455_v32  ;;  %v14491_v32 = vld [vmem:[%s18553_s7 + $0xac0] sm:$0xff]  }
 0x3ec   :  { %4776 = vmatpush1.bf16.msra.mxu0 %v14456_v52  ;;  %4469 = vmatprep.subr.bf16.mxu1 %v15016_v24  ;;  %v14492_v52 = vld [vmem:[%s18553_s7 + $0xbc0] sm:$0xff]  }
 0x3ed   :  { %4777 = vmatprep.subr.bf16.mxu0 %v15016_v24 }
 0x3ef   :  { %4470 = vmatpush1.bf16.msra.mxu1 %v14457_v6  ;;  %v14494_v6 = vld [vmem:[%s18553_s7 + $0xb80] sm:$0xff]  }
 0x3f0   :  { %4778 = vmatpush1.bf16.msra.mxu0 %v14458_v16  ;;  %4479 = vmatprep.subr.bf16.mxu1 %v15016_v24  ;;  %v14495_v16 = vld [vmem:[%s18553_s7 + $0xbb8] sm:$0xff]  }
 0x3f1   :  { %4779 = vmatprep.subr.bf16.mxu0 %v15016_v24 }
 0x3f2   :  { %v13549_v50 = vpop.f32.mrf.mxu1 }
 0x3f3   :  { %4480 = vmatpush2.bf16.msra.mxu1 %v14459_v38  ;;  %v14496_v38 = vld [vmem:[%s18553_s7 + $0xb38] sm:$0xff]  }
 0x3f4   :  { %4780 = vmatpush1.bf16.msra.mxu0 %v14460_v42  ;;  %v13550_v59 = vpop.f32.mrf.mxu1  ;;  %4481 = vmatprep.subr.bf16.mxu1 %v15016_v24  ;;  %v4869_v42 = vrot.slane %v15402_v46, 6  ;;  %v14499_v46 = vld [vmem:[%s18553_s7 + $0xb30] sm:$0xff]  }
 0x3f5   :  { %v16545_v60 = vadd.f32 %v13550_v59, %v13549_v50  ;;  %4781 = vmatprep.subr.bf16.mxu0 %v15016_v24  ;;  %v14497_v50 = vld [vmem:[%s18553_s7 + $0xb78] sm:$0xff]   ;;  %v14498_v59 = vld [vmem:[%s18553_s7 + $0xbb0] sm:$0xff]  }
 0x3f6   :  { %v13552_v57 = vpop.f32.mrf.mxu1 }
 0x3f7   :  { %4482 = vmatpush2.bf16.msra.mxu1 %v14461_v55  ;;  %v4872_v55 = vrot.slane %v15408_v13, 6  ;;  %v14500_v13 = vld [vmem:[%s18553_s7 + $0xb70] sm:$0xff]  }
 0x3f8   :  { %4782 = vmatpush1.bf16.msra.mxu0 %v14462_v31  ;;  %v13553_v56 = vpop.f32.mrf.mxu1  ;;  %4483 = vmatprep.subr.bf16.mxu1 %v15016_v24 }
 0x3f9   :  { %4783 = vmatprep.subr.bf16.mxu0 %v15016_v24 }
 0x3fb   :  { %4484 = vmatpush2.bf16.msra.mxu1 %v14463_v49 }
 0x3fc   :  { %4784 = vmatpush1.bf16.msra.mxu0 %v14464_v58  ;;  %4485 = vmatprep.subr.bf16.mxu1 %v15016_v24 }
 0x3fd   :  { %4785 = vmatprep.subr.bf16.mxu0 %v15016_v24 }
 0x3ff   :  { %4486 = vmatpush2.bf16.msra.mxu1 %v14465_v61  ;;  %v14502_v61 = vld [vmem:[%s18553_s7 + $0xb28] sm:$0xff]  }
 0x400   :  { %4786 = vmatpush1.bf16.msra.mxu0 %v14466_v3  ;;  %13665 = vmatprep.subr.bf16.mxu1 %v14467_v7  ;;  %v14503_v7 = vld [vmem:[%s18553_s7 + $0xb68] sm:$0xff]  }
 0x401   :  { %4795 = vmatprep.subr.bf16.mxu0 %v15016_v24 }
 0x402   :  { %4488 = vmatmul.mubr.bf16.vlgmr.msra.gmra.mxu1 %v4239_v23  ;;  %v14506_v23 = vld [vmem:[%s18553_s7 + $0xb60] sm:$0xff]  }
 0x403   :  { %v13571_v53 = vpop.f32.mrf.mxu0  ;;  %13666 = vmatpush3.bf16.msra.mxu1 %v14469_v8  ;;  %5079 = vmatprep.mubr.bf16.mxu1 %v4870_v0  ;;  %v14505_v8 = vld [vmem:[%s18553_s7 + $0xb20] sm:$0xff]   ;;  %v5185_v0 = vrot.slane %v15423_v10, 6  ;;  %v14510_v10 = vld [vmem:[%s18553_s7 + $0xc10] sm:$0xff]  }
 0x404   :  { %4796 = vmatpush2.bf16.msra.mxu0 %v14468_v25  ;;  %13667 = vmatprep.subr.bf16.mxu1 %v14470_v28  ;;  %v14507_v25 = vld [vmem:[%s18553_s7 + $0xb18] sm:$0xff]  }
 0x405   :  { %v13572_v62 = vpop.f32.mrf.mxu0  ;;  %4797 = vmatprep.subr.bf16.mxu0 %v15016_v24  ;;  %v14508_v28 = vld [vmem:[%s18553_s7 + $0xc18] sm:$0xff]  }
 0x406   :  { %v16589_v27 = vadd.f32 %v13572_v62, %v13571_v53  ;;  %v5188_v53 = vrot.slane %v15414_v36, 6 }
 0x407   :  { %v13574_v5 = vpop.f32.mrf.mxu0  ;;  %13668 = vmatpush3.bf16.msra.mxu1 %v14472_v54 }
 0x408   :  { %4798 = vmatpush2.bf16.msra.mxu0 %v14471_v40  ;;  %13669 = vmatprep.subr.bf16.mxu1 %v14473_v41  ;;  %v14509_v40 = vld [vmem:[%s18553_s7 + $0xb10] sm:$0xff]  }
 0x409   :  { %v13575_v1 = vpop.f32.mrf.mxu0  ;;  %4799 = vmatprep.subr.bf16.mxu0 %v15016_v24 }
 0x40a   :  { %v14514_v1 = vld [vmem:[%s18553_s7 + $0xc00] sm:$0xff]  }
 0x40b   :  { %13670 = vmatpush3.bf16.msra.mxu1 %v14475_v9  ;;  %v14512_v9 = vld [vmem:[%s18553_s7 + $0xc08] sm:$0xff]  }
 0x40c   :  { %4800 = vmatpush2.bf16.msra.mxu0 %v14474_v2  ;;  %13671 = vmatprep.subr.bf16.mxu1 %v14476_v45  ;;  %v14513_v45 = vld [vmem:[%s18553_s7 + $0xb00] sm:$0xff]  }
 0x40d   :  { %4801 = vmatprep.subr.bf16.mxu0 %v15016_v24 }
 0x40f   :  { %13672 = vmatpush3.bf16.msra.mxu1 %v14478_v4  ;;  %v14515_v4 = vld [vmem:[%s18553_s7 + $0xb58] sm:$0xff]  }
 0x410   :  { %4802 = vmatpush2.bf16.msra.mxu0 %v14477_v18  ;;  %13673 = vmatprep.subr.bf16.mxu1 %v14479_v33  ;;  %v14516_v18 = vld [vmem:[%s18553_s7 + $0xbf8] sm:$0xff]  }
 0x411   :  { %13687 = vmatprep.subr.bf16.mxu0 %v14480_v19  ;;  %v14517_v19 = vld [vmem:[%s18553_s7 + $0xb50] sm:$0xff]  }
 0x413   :  { %4804 = vmatmul.mubr.bf16.vlgmr.msra.gmra.mxu0 %v4555_v12  ;;  %13674 = vmatpush3.bf16.msra.mxu1 %v14481_v14 }
 0x414   :  { %13688 = vmatpush3.bf16.msra.mxu0 %v14482_v22  ;;  %5395 = vmatprep.mubr.bf16.mxu0 %v5186_v30  ;;  %v14518_v22 = vld [vmem:[%s18553_s7 + $0xbf0] sm:$0xff]  }
 0x415   :  { %13675 = vmatprep.subr.bf16.mxu1 %v14483_v63  ;;  %13689 = vmatprep.subr.bf16.mxu0 %v14484_v29  ;;  %v14519_v29 = vld [vmem:[%s18553_s7 + $0xb48] sm:$0xff]  }
 0x417   :  { %13676 = vmatpush3.bf16.msra.mxu1 %v14485_v20  ;;  %v14520_v20 = vld [vmem:[%s18553_s7 + $0xbe8] sm:$0xff]  }
 0x418   :  { %13690 = vmatpush3.bf16.msra.mxu0 %v14486_v35  ;;  %13677 = vmatprep.subr.bf16.mxu1 %v14487_v37  ;;  %v14521_v35 = vld [vmem:[%s18553_s7 + $0xb40] sm:$0xff]  }
 0x419   :  { %13691 = vmatprep.subr.bf16.mxu0 %v14488_v34  ;;  %v14522_v37 = vld [vmem:[%s18553_s7 + $0xbe0] sm:$0xff]   ;;  %v4871_v34 = vrot.slane %v15404_v17, 6  ;;  %v14525_v17 = vld [vmem:[%s18553_s7 + $0xc28] sm:$0xff]  }
 0x41b   :  { %13678 = vmatpush3.bf16.msra.mxu1 %v14489_v51  ;;  %v14523_v51 = vld [vmem:[%s18553_s7 + $0xc38] sm:$0xff]  }
 0x41c   :  { %13692 = vmatpush3.bf16.msra.mxu0 %v14490_v26  ;;  %13679 = vmatprep.subr.bf16.mxu1 %v14491_v32  ;;  %v14524_v32 = vld [vmem:[%s18553_s7 + $0xc30] sm:$0xff]  }
 0x41d   :  { %13693 = vmatprep.subr.bf16.mxu0 %v14492_v52 }
 0x41f   :  { %13680 = vmatpush3.bf16.msra.mxu1 %v14493_v21 }
 0x420   :  { %13694 = vmatpush3.bf16.msra.mxu0 %v14494_v6  ;;  %5087 = vmatprep.subr.bf16.mxu1 %v15016_v24 }
 0x421   :  { %13695 = vmatprep.subr.bf16.mxu0 %v14495_v16 }
 0x422   :  { %v3225_v31 = vpop.f32.mrf.mxu1  ;;  %5080 = vmatmul.mubr.bf16.vlgmr.msra.gmra.mxu1 %v4869_v42  ;;  %v14529_v42 = vld [vmem:[%s18551_s5 + $0x4c] ss:$16 sps:$4 sm:$0xff]  }
 0x423   :  { %v3226_v57 = vadd.f32 %v16545_v60, %v3225_v31  ;;  %5088 = vmatpush1.bf16.msra.mxu1 %v14496_v38  ;;  %12103 = vmatprep.mubr.msk.bf16.mxu1 %vm1314_vm4, %v4872_v55  ;;  %v14501_v60 = vld [vmem:[%s18553_s7 + $0xba8] sm:$0xff]   ;;  %v14526_v38 = vld [vmem:[%s18553_s7 + $0xc20] sm:$0xff]   ;;  %v5187_v55 = vrot.slane %v15426_v11, 6 }
 0x424   :  { %13696 = vmatpush3.bf16.msra.mxu0 %v14497_v50  ;;  %v3227_v49 = vpop.f32.mrf.mxu1  ;;  %5089 = vmatprep.subr.bf16.mxu1 %v15016_v24  ;;  %v14527_v50 = vld [vmem:[%s18551_s5 + $0x48] ss:$16 sps:$4 sm:$0xff]   ;;  %v14532_v31 = vld [vmem:[%s18551_s5 + $0xc] ss:$16 sps:$4 sm:$0xff]  }
 0x425   :  { %v3231_v56 = vadd.f32 %v3226_v57, %v16512_v15  ;;  %13697 = vmatprep.subr.bf16.mxu0 %v14498_v59  ;;  %v14504_v15 = vld [vmem:[%s18553_s7 + $0xba0] sm:$0xff]   ;;  %v5648_v59 = vshll.u32 %v15619_v39, 16  ;;  %v14530_v49 = vld [vmem:[%s18551_s5 + $0x8] ss:$16 sps:$4 sm:$0xff]  }
 0x426   :  { %v3228_v58 = vpop.f32.mrf.mxu1 }
 0x427   :  { %5090 = vmatpush1.bf16.msra.mxu1 %v14499_v46  ;;  %v5650_v57 = vrot.slane %v5648_v59, 1  ;;  %v5646_v46 = vshrl.u32 %v15619_v39, 16  ;;  %v14573_v59 = vld [vmem:[%s18553_s7 + $0x170] sm:$0xff]  }
 0x428   :  { %13698 = vmatpush3.bf16.msra.mxu0 %v14500_v13  ;;  %v3229_v3 = vpop.f32.mrf.mxu1  ;;  %5091 = vmatprep.subr.bf16.mxu1 %v15016_v24  ;;  %v14535_v13 = vld [vmem:[%s18551_s5 + $0x8c] ss:$16 sps:$4 sm:$0xff]  }
 0x429   :  { %13699 = vmatprep.subr.bf16.mxu0 %v14501_v60  ;;  %v16806_v11 = vor.u32 %v5650_v57, %v5646_v46  ;;  %v14538_v60 = vld [vmem:[%s18551_s5 + $0x6c] ss:$16 sps:$4 sm:$0xff]  }
 0x42b   :  { %5092 = vmatpush1.bf16.msra.mxu1 %v14502_v61 }
 0x42c   :  { %13700 = vmatpush3.bf16.msra.mxu0 %v14503_v7  ;;  %5093 = vmatprep.subr.bf16.mxu1 %v15016_v24 }
 0x42d   :  { %13701 = vmatprep.subr.bf16.mxu0 %v14504_v15 }
 0x42f   :  { %5094 = vmatpush1.bf16.msra.mxu1 %v14505_v8 }
 0x430   :  { %13702 = vmatpush3.bf16.msra.mxu0 %v14506_v23  ;;  %5095 = vmatprep.subr.bf16.mxu1 %v15016_v24  ;;  %v14536_v23 = vld [vmem:[%s18551_s5 + $0x68] ss:$16 sps:$4 sm:$0xff]  }
 0x431   :  { %5403 = vmatprep.subr.bf16.mxu0 %v15016_v24 }
 0x433   :  { %v3541_v54 = vpop.f32.mrf.mxu0  ;;  %5396 = vmatmul.mubr.bf16.vlgmr.msra.gmra.mxu0 %v5185_v0  ;;  %5096 = vmatpush1.bf16.msra.mxu1 %v14507_v25  ;;  %v16828_v25 = vrot.slane %v15619_v39, 1  ;;  %v14545_v0 = vld [vmem:[%s18555_s9 + $0x38] sm:$0xff]  }
 0x434   :  { %v3542_v41 = vadd.f32 %v16589_v27, %v3541_v54  ;;  %5404 = vmatpush1.bf16.msra.mxu0 %v14508_v28  ;;  %12188 = vmatprep.mubr.msk.bf16.mxu0 %vm1314_vm4, %v5188_v53  ;;  %v14511_v27 = vld [vmem:[%s18553_s7 + $0xb08] sm:$0xff]   ;;  %v15018_v53 = vmov 0.0   ;;  %v14546_v54 = vld [vmem:[%s18555_s9 + $0x30] sm:$0xff]  }
 0x435   :  { %v3543_v62 = vpop.f32.mrf.mxu0  ;;  %5097 = vmatprep.subr.bf16.mxu1 %v15016_v24  ;;  %5405 = vmatprep.subr.bf16.mxu0 %v15016_v24  ;;  %v14541_v28 = vld [vmem:[%s18551_s5 + $0x2c] ss:$16 sps:$4 sm:$0xff]  }
 0x436   :  { %v16723_v36 = vadd.f32 %v3542_v41, %v3231_v56  ;;  %v14533_v56 = vld [vmem:[%s18551_s5 + $0x88] ss:$16 sps:$4 sm:$0xff]   ;;  %v14544_v41 = vld [vmem:[%s18551_s5 + $0xac] ss:$16 sps:$4 sm:$0xff]  }
 0x437   :  { %v3544_v5 = vpop.f32.mrf.mxu0  ;;  %5098 = vmatpush1.bf16.msra.mxu1 %v14509_v40  ;;  %v14539_v40 = vld [vmem:[%s18551_s5 + $0x28] ss:$16 sps:$4 sm:$0xff]  }
 0x438   :  { %5406 = vmatpush1.bf16.msra.mxu0 %v14510_v10  ;;  %5099 = vmatprep.subr.bf16.mxu1 %v15016_v24 }
 0x439   :  { %v3545_v2 = vpop.f32.mrf.mxu0  ;;  %5407 = vmatprep.subr.bf16.mxu0 %v15016_v24 }
 0x43b   :  { %5100 = vmatpush1.bf16.msra.mxu1 %v14511_v27 }
 0x43c   :  { %5408 = vmatpush1.bf16.msra.mxu0 %v14512_v9  ;;  %5101 = vmatprep.subr.bf16.mxu1 %v15016_v24  ;;  %v14542_v9 = vld [vmem:[%s18551_s5 + $0xa8] ss:$16 sps:$4 sm:$0xff]  }
 0x43d   :  { %5409 = vmatprep.subr.bf16.mxu0 %v15016_v24 }
 0x43f   :  { %5102 = vmatpush1.bf16.msra.mxu1 %v14513_v45 }
 0x440   :  { %5410 = vmatpush1.bf16.msra.mxu0 %v14514_v1  ;;  %5111 = vmatprep.subr.bf16.mxu1 %v15016_v24 }
 0x441   :  { %5411 = vmatprep.subr.bf16.mxu0 %v15016_v24 }
 0x442   :  { %v13593_v33 = vpop.f32.mrf.mxu1 }
 0x443   :  { %5112 = vmatpush2.bf16.msra.mxu1 %v14515_v4 }
 0x444   :  { %5412 = vmatpush1.bf16.msra.mxu0 %v14516_v18  ;;  %v13594_v14 = vpop.f32.mrf.mxu1  ;;  %5113 = vmatprep.subr.bf16.mxu1 %v15016_v24  ;;  %v14547_v18 = vld [vmem:[%s18555_s9 + $0x28] sm:$0xff]  }
 0x445   :  { %v13595_v12 = vadd.f32 %v13594_v14, %v13593_v33  ;;  %5413 = vmatprep.subr.bf16.mxu0 %v15016_v24  ;;  %v14548_v14 = vld [vmem:[%s18555_s9 + $0x20] sm:$0xff]  }
 0x446   :  { %v13596_v63 = vpop.f32.mrf.mxu1 }
 0x447   :  { %5114 = vmatpush2.bf16.msra.mxu1 %v14517_v19 }
 0x448   :  { %5414 = vmatpush1.bf16.msra.mxu0 %v14518_v22  ;;  %v13597_v30 = vpop.f32.mrf.mxu1  ;;  %5115 = vmatprep.subr.bf16.mxu1 %v15016_v24  ;;  %v14549_v22 = vld [vmem:[%s18555_s9 + $0x18] sm:$0xff]  }
 0x449   :  { %5415 = vmatprep.subr.bf16.mxu0 %v15016_v24 }
 0x44b   :  { %5116 = vmatpush2.bf16.msra.mxu1 %v14519_v29 }
 0x44c   :  { %5416 = vmatpush1.bf16.msra.mxu0 %v14520_v20  ;;  %5117 = vmatprep.subr.bf16.mxu1 %v15016_v24 }
 0x44d   :  { %5417 = vmatprep.subr.bf16.mxu0 %v15016_v24 }
 0x44f   :  { %5118 = vmatpush2.bf16.msra.mxu1 %v14521_v35 }
 0x450   :  { %5418 = vmatpush1.bf16.msra.mxu0 %v14522_v37  ;;  %14041 = vmatprep.subr.bf16.mxu1 %v15018_v53  ;;  %v14551_v37 = vld [vmem:[%s18555_s9 + $0x8] sm:$0xff]  }
 0x451   :  { %5427 = vmatprep.subr.bf16.mxu0 %v15016_v24 }
 0x452   :  { %5120 = vmatmul.mubr.bf16.vlgmr.msra.gmra.mxu1 %v4871_v34  ;;  %v14552_v34 = vld [vmem:[%s18555_s9] sm:$0xff]  }
 0x453   :  { %v13615_v26 = vpop.f32.mrf.mxu0  ;;  %14042 = vmatpush3.bf16.msra.mxu1 %v14545_v0  ;;  %14057 = vmatprep.mubr.msk.bf16.mxu1 %vm15019_vm5, %v15018_v53  ;;  %v14582_v0 = vld [vmem:[%s18553_s7 + $0x1a0] sm:$0xff]  }
 0x454   :  { %5428 = vmatpush2.bf16.msra.mxu0 %v14523_v51  ;;  %14043 = vmatprep.subr.bf16.mxu1 %v15018_v53  ;;  %v14555_v51 = vld [vmem:[%s18551_s5 + $0x44] ss:$16 sps:$4 sm:$0xff]  }
 0x455   :  { %v13616_v52 = vpop.f32.mrf.mxu0  ;;  %5429 = vmatprep.subr.bf16.mxu0 %v15016_v24 }
 0x456   :  { %v13617_v21 = vadd.f32 %v13616_v52, %v13615_v26  ;;  %v14559_v26 = vld [vmem:[%s18553_s7 + $0x198] sm:$0xff]  }
 0x457   :  { %v13618_v6 = vpop.f32.mrf.mxu0  ;;  %14044 = vmatpush3.bf16.msra.mxu1 %v14546_v54 }
 0x458   :  { %5430 = vmatpush2.bf16.msra.mxu0 %v14524_v32  ;;  %14045 = vmatprep.subr.bf16.mxu1 %v15018_v53  ;;  %v14563_v6 = vld [vmem:[%s18553_s7 + $0x190] sm:$0xff]  }
 0x459   :  { %v13619_v16 = vpop.f32.mrf.mxu0  ;;  %5431 = vmatprep.subr.bf16.mxu0 %v15016_v24 }
 0x45b   :  { %14046 = vmatpush3.bf16.msra.mxu1 %v14547_v18 }
 0x45c   :  { %5432 = vmatpush2.bf16.msra.mxu0 %v14525_v17  ;;  %14047 = vmatprep.subr.bf16.mxu1 %v15018_v53 }
 0x45d   :  { %5433 = vmatprep.subr.bf16.mxu0 %v15016_v24 }
 0x45f   :  { %14048 = vmatpush3.bf16.msra.mxu1 %v14548_v14 }
 0x460   :  { %5434 = vmatpush2.bf16.msra.mxu0 %v14526_v38  ;;  %14049 = vmatprep.subr.bf16.mxu1 %v15018_v53 }
 0x461   :  { %5732 = vmatprep.subr.bf16.mxu0 %v14529_v42  ;;  %v14564_v42 = vld [vmem:[%s18553_s7 + $0x188] sm:$0xff]  }
 0x463   :  { %5436 = vmatmul.mubr.bf16.vlgmr.msra.gmra.mxu0 %v5187_v55  ;;  %14050 = vmatpush3.bf16.msra.mxu1 %v14549_v22  ;;  %v14569_v55 = vld [vmem:[%s18553_s7 + $0x178] sm:$0xff]  }
 0x464   :  { %5733 = vmatpush1.bf16.msra.mxu0 %v14527_v50  ;;  %5750 = vmatprep.mubr.bf16.mxu0 %v15016_v24  ;;  %v14568_v50 = vld [vmem:[%s18553_s7 + $0x180] sm:$0xff]  }
 0x465   :  { %5840 = vmatprep.subr.bf16.mxu0 %v14532_v31  ;;  %14051 = vmatprep.subr.bf16.mxu1 %v15018_v53 }
 0x46b   :  { %12208 = vmatmul.mubr.msk.bf16.vlgmr.msra.gmra.mxu0 %vm163_vm3, %v16806_v11 }
 0x46c   :  { %5841 = vmatpush1.bf16.msra.mxu0 %v14530_v49  ;;  %5858 = vmatprep.mubr.bf16.mxu0 %v15016_v24 }
 0x46d   :  { %5955 = vmatprep.subr.bf16.mxu0 %v14535_v13  ;;  %v14574_v13 = vld [vmem:[%s18553_s7 + $0x168] sm:$0xff]  }
 0x472   :  { %v3857_v58 = vpop.f32.mrf.mxu1 }
 0x473   :  { %v3858_v61 = vadd.f32 %v13595_v12, %v3857_v58  ;;  %12214 = vmatmul.mubr.msk.bf16.vlgmr.msra.gmra.mxu0 %vm163_vm3, %v15619_v39  ;;  %v14550_v12 = vld [vmem:[%s18555_s9 + $0x10] sm:$0xff]   ;;  %v14578_v58 = vld [vmem:[%s18553_s7 + $0x160] sm:$0xff]  }
 0x474   :  { %v3859_v3 = vpop.f32.mrf.mxu1  ;;  %5956 = vmatpush1.bf16.msra.mxu0 %v14533_v56  ;;  %5973 = vmatprep.mubr.bf16.mxu0 %v15016_v24 }
 0x475   :  { %v3863_v7 = vadd.f32 %v3858_v61, %v16723_v36  ;;  %6131 = vmatprep.subr.bf16.mxu0 %v14538_v60  ;;  %14052 = vmatpush3.bf16.msra.mxu1 %v14550_v12  ;;  %v14579_v3 = vld [vmem:[%s18553_s7 + $0x1b8] sm:$0xff]  }
 0x476   :  { %v3860_v15 = vpop.f32.mrf.mxu1  ;;  %14053 = vmatprep.subr.bf16.mxu1 %v15018_v53 }
 0x477   :  { %v14580_v15 = vld [vmem:[%s18553_s7 + $0x1b0] sm:$0xff]  }
 0x478   :  { %v3861_v8 = vpop.f32.mrf.mxu1 }
 0x479   :  { %14054 = vmatpush3.bf16.msra.mxu1 %v14551_v37 }
 0x47a   :  { %14055 = vmatprep.subr.bf16.mxu1 %v15018_v53 }
 0x47b   :  { %12224 = vmatmul.mubr.msk.bf16.vlgmr.msra.gmra.mxu0 %vm163_vm3, %v16828_v25 }
 0x47c   :  { %6132 = vmatpush1.bf16.msra.mxu0 %v14536_v23  ;;  %6149 = vmatprep.mubr.bf16.mxu0 %v15016_v24 }
 0x47d   :  { %6237 = vmatprep.subr.bf16.mxu0 %v14541_v28  ;;  %14056 = vmatpush3.bf16.msra.mxu1 %v14552_v34  ;;  %v14581_v28 = vld [vmem:[%s18553_s7 + $0x1a8] sm:$0xff]  }
 0x47e   :  { %5689 = vmatprep.subr.bf16.mxu1 %v14555_v51 }
 0x483   :  { %v4173_v10 = vpop.f32.mrf.mxu0  ;;  %12238 = vmatmul.mubr.msk.bf16.vlgmr.msra.gmra.mxu0 %vm163_vm3, %v16806_v11 }
 0x484   :  { %v4174_v62 = vadd.f32 %v13617_v21, %v4173_v10  ;;  %6238 = vmatpush1.bf16.msra.mxu0 %v14539_v40  ;;  %6255 = vmatprep.mubr.bf16.mxu0 %v15016_v24 }
 0x485   :  { %v4175_v36 = vpop.f32.mrf.mxu0  ;;  %6347 = vmatprep.subr.bf16.mxu0 %v14544_v41 }
 0x486   :  { %v4179_v5 = vadd.f32 %v4174_v62, %v3863_v7  ;;  %v5597_v62 = vpop.xlane.xlu0 %5596 }
 0x487   :  { %v4176_v27 = vpop.f32.mrf.mxu0 }
 0x488   :  { %v5600_v27 = vpop.xlane.xlu1 %5599 }
 0x489   :  { %v4177_v2 = vpop.f32.mrf.mxu0 }
 0x48a   :  { %v5614_v36 = vpop.xlane.xlu0 %5613  ;;  %v5601_v2 = vadd.f32 %v5600_v27, %v5597_v62  ;;  %v14567_v62 = vld [vmem:[%s18551_s5 + $0x64] ss:$16 sps:$4 sm:$0xff]  }
 0x48b   :  { %12244 = vmatmul.mubr.msk.bf16.vlgmr.msra.gmra.mxu0 %vm163_vm3, %v15619_v39 }
 0x48c   :  { %6348 = vmatpush1.bf16.msra.mxu0 %v14542_v9  ;;  %6365 = vmatprep.mubr.bf16.mxu0 %v15016_v24 }
 0x48d   :  { %6780 = vmatprep.subr.bf16.mxu0 %v15016_v24 }
 0x492   :  { %v13637_v45 = vpop.f32.mrf.mxu1 }
 0x493   :  { %12254 = vmatmul.mubr.msk.bf16.vlgmr.msra.gmra.mxu0 %vm163_vm3, %v16828_v25 }
 0x494   :  { %v13638_v1 = vpop.f32.mrf.mxu1  ;;  %6781 = vmatpush1.bf16.msra.mxu0 %v14559_v26 }
 0x495   :  { %v13639_v4 = vadd.f32 %v13638_v1, %v13637_v45  ;;  %6782 = vmatprep.subr.bf16.mxu0 %v15016_v24 }
 0x496   :  { %v13640_v33 = vpop.f32.mrf.mxu1 }
 0x498   :  { %v13641_v19 = vpop.f32.mrf.mxu1  ;;  %6783 = vmatpush1.bf16.msra.mxu0 %v14563_v6 }
 0x499   :  { %6784 = vmatprep.subr.bf16.mxu0 %v15016_v24 }
 0x49c   :  { %6785 = vmatpush1.bf16.msra.mxu0 %v14564_v42 }
 0x49d   :  { %6786 = vmatprep.subr.bf16.mxu0 %v15016_v24 }
 0x4a0   :  { %6787 = vmatpush1.bf16.msra.mxu0 %v14568_v50 }
 0x4a1   :  { %6788 = vmatprep.subr.bf16.mxu0 %v15016_v24 }
 0x4a3   :  { %v13659_v63 = vpop.f32.mrf.mxu0 }
 0x4a4   :  { %6789 = vmatpush1.bf16.msra.mxu0 %v14569_v55 }
 0x4a5   :  { %v13660_v29 = vpop.f32.mrf.mxu0  ;;  %6790 = vmatprep.subr.bf16.mxu0 %v15016_v24 }
 0x4a6   :  { %v13661_v30 = vadd.f32 %v13660_v29, %v13659_v63 }
 0x4a7   :  { %v13662_v20 = vpop.f32.mrf.mxu0 }
 0x4a8   :  { %6791 = vmatpush1.bf16.msra.mxu0 %v14573_v59 }
 0x4a9   :  { %v13663_v35 = vpop.f32.mrf.mxu0  ;;  %6792 = vmatprep.subr.bf16.mxu0 %v15016_v24 }
 0x4ac   :  { %6793 = vmatpush1.bf16.msra.mxu0 %v14574_v13  ;;  %v14558_v13 = vld [vmem:[%s18551_s5 + $0x4] ss:$16 sps:$4 sm:$0xff]  }
 0x4ad   :  { %6794 = vmatprep.subr.bf16.mxu0 %v15016_v24 }
 0x4b0   :  { %6795 = vmatpush1.bf16.msra.mxu0 %v14578_v58 }
 0x4b1   :  { %6804 = vmatprep.subr.bf16.mxu0 %v15016_v24 }
 0x4b4   :  { %6805 = vmatpush2.bf16.msra.mxu0 %v14579_v3 }
 0x4b5   :  { %6806 = vmatprep.subr.bf16.mxu0 %v15016_v24 }
 0x4b8   :  { %6807 = vmatpush2.bf16.msra.mxu0 %v14580_v15 }
 0x4b9   :  { %6808 = vmatprep.subr.bf16.mxu0 %v15016_v24 }
 0x4bc   :  { %6809 = vmatpush2.bf16.msra.mxu0 %v14581_v28  ;;  %v14562_v28 = vld [vmem:[%s18551_s5 + $0x84] ss:$16 sps:$4 sm:$0xff]  }
 0x4bd   :  { %6810 = vmatprep.subr.bf16.mxu0 %v15016_v24 }
 0x4c0   :  { %6811 = vmatpush2.bf16.msra.mxu0 %v14582_v0 }
 0x4c1   :  { %7030 = vmatprep.subr.bf16.mxu0 %v15016_v24 }
 0x4c2   :  { %v4489_v32 = vpop.f32.mrf.mxu1 }
 0x4c3   :  { %v4490_v52 = vadd.f32 %v13639_v4, %v4489_v32  ;;  %v5602_v4 = vrot.slane %v5601_v2, 4 }
 0x4c4   :  { %v4491_v21 = vpop.f32.mrf.mxu1 }
 0x4c5   :  { %v4495_v17 = vadd.f32 %v4490_v52, %v4179_v5  ;;  %v5617_v5 = vpop.xlane.xlu0 %5616  ;;  %v5603_v14 = vadd.f32 %v5602_v4, %v5601_v2  ;;  %v5444_v21 = vld [vmem:[%s18554_s8] sm:$0x1]  ;;  %v14572_v4 = vld [vmem:[%s18551_s5 + $0x24] ss:$16 sps:$4 sm:$0xff]  }
 0x4c6   :  { %v4492_v16 = vpop.f32.mrf.mxu1  ;;  %v5618_v9 = vadd.f32 %v5617_v5, %v5614_v36 }
 0x4c7   :  { %v5604_v63 = vrot.slane %v5603_v14, 2 }
 0x4c8   :  { %v4493_v38 = vpop.f32.mrf.mxu1  ;;  %v5619_v45 = vrot.slane %v5618_v9, 4 }
 0x4c9   :  { %v5605_v20 = vadd.f32 %v5604_v63, %v5603_v14  ;;  %v14577_v63 = vld [vmem:[%s18551_s5 + $0xa4] ss:$16 sps:$4 sm:$0xff]  }
 0x4ca   :  { %v5620_v33 = vadd.f32 %v5619_v45, %v5618_v9  ;;  %v14565_v45 = vld [vmem:[%s18551_s5 + $0x60] ss:$16 sps:$4 sm:$0xff]  }
 0x4cb   :  { %v5606_v26 = vrot.slane %v5605_v20, 1 }
 0x4cc   :  { %v5621_v12 = vrot.slane %v5620_v33, 2 }
 0x4cd   :  { %v5607_v42 = vadd.f32 %v5606_v26, %v5605_v20  ;;  %v16995_v20 = vld [vmem:[%s18552_s6 + $0x4] sm:$0xf] }
 0x4ce   :  { %v5622_v29 = vadd.f32 %v5621_v12, %v5620_v33  ;;  %v14570_v12 = vld [vmem:[%s18551_s5 + $0x20] ss:$16 sps:$4 sm:$0xff]  }
 0x4d0   :  { %v5623_v37 = vrot.slane %v5622_v29, 1 }
 0x4d3   :  { %v4805_v31 = vpop.f32.mrf.mxu0 }
 0x4d4   :  { %v4806_v57 = vadd.f32 %v13661_v30, %v4805_v31 }
 0x4d5   :  { %v4807_v46 = vpop.f32.mrf.mxu0 }
 0x4d6   :  { %v4811_v49 = vadd.f32 %v4806_v57, %v4495_v17  ;;  %v5624_v17 = vadd.f32 %v5623_v37, %v5622_v29  ;;  %v14553_v46 = vld [vmem:[%s18551_s5 + $0x40] ss:$16 sps:$4 sm:$0xff]  }
 0x4d7   :  { %v4808_v56 = vpop.f32.mrf.mxu0  ;;  %v17001_v37 = vld [vmem:[%s18552_s6] sm:$0xf] }
 0x4d8   :  { %v5625_v59 = vmax.f32 %v5607_v42, %v5624_v17 }
 0x4d9   :  { %v4809_v60 = vpop.f32.mrf.mxu0 }
 0x4da   :  { %v5626_v60 = vsub.f32 %v5607_v42, %v5625_v59  ;;  %v5629_v58 = vsub.f32 %v5624_v17, %v5625_v59  ;;  %v6005_v17 = vrot.slane %v17001_v37, %v15355_v44 }
 0x4dc   :  { %v5630_v15 = vmul.f32 1.442695, %v5629_v58 }
 0x4e2   :  { %v13681_v61 = vpop.f32.mrf.mxu1 }
 0x4e4   :  { %v13682_v7 = vpop.f32.mrf.mxu1 }
 0x4e5   :  { %v13683_v30 = vadd.f32 %v13682_v7, %v13681_v61  ;;  %v5627_v7 = vmul.f32 1.442695, %v5626_v60 }
 0x4e6   :  { %v13684_v8 = vpop.f32.mrf.mxu1 }
 0x4e7   :  { %14977 = vpow2.f32 %v5627_v7 }
 0x4e8   :  { %v13685_v23 = vpop.f32.mrf.mxu1  ;;  %14979 = vpow2.f32 %v5630_v15 }
 0x4e9   :  { %v14556_v23 = vld [vmem:[%s18551_s5] ss:$16 sps:$4 sm:$0xff]  }
 0x4f3   :  { %v13703_v54 = vpop.f32.mrf.mxu0 }
 0x4f4   :  { %v16969_v9 = vpop.eup %14977 }
 0x4f5   :  { %v13704_v40 = vpop.f32.mrf.mxu0 }
 0x4f6   :  { %v13705_v34 = vadd.f32 %v13704_v40, %v13703_v54 }
 0x4f7   :  { %v13706_v41 = vpop.f32.mrf.mxu0 }
 0x4f9   :  { %v13707_v10 = vpop.f32.mrf.mxu0 }
 0x4fa   :  { %v14560_v10 = vld [vmem:[%s18551_s5 + $0x80] ss:$16 sps:$4 sm:$0xff]  }
 0x512   :  { %v5121_v1 = vpop.f32.mrf.mxu1 }
 0x513   :  { %v5122_v35 = vadd.f32 %v13683_v30, %v5121_v1  ;;  %v16974_v1 = vpop.eup %14979 }
 0x514   :  { %v5123_v18 = vpop.f32.mrf.mxu1  ;;  %v5632_v33 = vadd.f32 %v16974_v1, %v16969_v9 }
 0x515   :  { %v5127_v32 = vadd.f32 %v5122_v35, %v4811_v49 }
 0x516   :  { %v5124_v19 = vpop.f32.mrf.mxu1  ;;  %14981 = vrcp.f32 %v5632_v33 }
 0x518   :  { %v5125_v22 = vpop.f32.mrf.mxu1 }
 0x523   :  { %v5437_v51 = vpop.f32.mrf.mxu0 }
 0x524   :  { %v5438_v52 = vadd.f32 %v13705_v34, %v5437_v51 }
 0x525   :  { %v5439_v6 = vpop.f32.mrf.mxu0 }
 0x526   :  { %v5443_v16 = vadd.f32 %v5438_v52, %v5127_v32 }
 0x527   :  { %v5440_v38 = vpop.f32.mrf.mxu0 }
 0x528   :  { %v5445_v50 = vadd.f32 %v5444_v21, %v5443_v16  ;;  %v6397_v21 = vrot.slane %v16995_v20, %v15355_v44  ;;  %v6009_v38 = vrot.slane %v17001_v37, %v15359_v48 }
 0x529   :  { %v5441_v55 = vpop.f32.mrf.mxu0 }
 0x52a   :  { %v5446_v31 = vmax.f32 %v5445_v50, 0.0  ;;  %v14575_v50 = vld [vmem:[%s18551_s5 + $0xa0] ss:$16 sps:$4 sm:$0xff]  }
 0x52b   :  { %v16942_v57 = vpop.f32.mrf.mxu0 }
 0x52c   :  { %v5447_v49 = vpack.c.bf16 %v5446_v31, %v5446_v31 }
 0x52d   :  { %v5754_v56 = vpop.f32.mrf.mxu0 }
 0x52e   :  { %14058 = vmatmul.mubr.bf16.vlgmr.msra.gmra.mxu1 %v5447_v49 }
 0x52f   :  { %5690 = vmatpush1.bf16.msra.mxu1 %v14553_v46  ;;  %v5756_v61 = vpop.f32.mrf.mxu0  ;;  %5707 = vmatprep.mubr.bf16.mxu1 %v15016_v24 }
 0x530   :  { %5797 = vmatprep.subr.bf16.mxu1 %v14558_v13 }
 0x531   :  { %v5758_v3 = vpop.f32.mrf.mxu0 }
 0x533   :  { %v5860_v8 = vpop.f32.mrf.mxu0 }
 0x534   :  { %v5861_v34 = vadd.f32 %v5860_v8, %v16942_v57  ;;  %v6401_v57 = vrot.slane %v16995_v20, %v15359_v48 }
 0x535   :  { %v5862_v0 = vpop.f32.mrf.mxu0 }
 0x536   :  { %12207 = vmatmul.mubr.msk.bf16.vlgmr.msra.gmra.mxu1 %vm163_vm3, %v16806_v11  ;;  %v5863_v51 = vadd.f32 %v5862_v0, %v5754_v56 }
 0x537   :  { %5798 = vmatpush1.bf16.msra.mxu1 %v14556_v23  ;;  %v5864_v54 = vpop.f32.mrf.mxu0  ;;  %5815 = vmatprep.mubr.bf16.mxu1 %v15016_v24 }
 0x538   :  { %5912 = vmatprep.subr.bf16.mxu1 %v14562_v28  ;;  %v5865_v35 = vadd.f32 %v5864_v54, %v5756_v61 }
 0x539   :  { %v5866_v40 = vpop.f32.mrf.mxu0 }
 0x53a   :  { %v5867_v26 = vadd.f32 %v5866_v40, %v5758_v3  ;;  %v14982_v3 = vpop.eup %14981 }
 0x53b   :  { %v5975_v41 = vpop.f32.mrf.mxu0 }
 0x53c   :  { %v5986_v6 = vadd.f32 %v5975_v41, %v5861_v34 }
 0x53d   :  { %v5977_v36 = vpop.f32.mrf.mxu0 }
 0x53e   :  { %12213 = vmatmul.mubr.msk.bf16.vlgmr.msra.gmra.mxu1 %vm163_vm3, %v15619_v39  ;;  %v5987_v16 = vadd.f32 %v5977_v36, %v5863_v51  ;;  %v6016_v60 = vadd.f32 %v6005_v17, %v5986_v6  ;;  %v14588_v6 = vld [vmem:[%s18553_s7 + $0x90] sm:$0xff]  }
 0x53f   :  { %5913 = vmatpush1.bf16.msra.mxu1 %v14560_v10  ;;  %v5979_v5 = vpop.f32.mrf.mxu0  ;;  %5930 = vmatprep.mubr.bf16.mxu1 %v15016_v24  ;;  %v17019_v10 = vmul.f32 %v14982_v3, %v16969_v9 }
 0x540   :  { %6088 = vmatprep.subr.bf16.mxu1 %v14567_v62  ;;  %v5990_v32 = vadd.f32 %v5979_v5, %v5865_v35  ;;  %v6017_v58 = vadd.f32 %v6009_v38, %v5987_v16  ;;  %v6024_v62 = vmax.f32 %v6016_v60, 0.0  ;;  %v14590_v16 = vld [vmem:[%s18553_s7 + $0x80] sm:$0xff]   ;;  %v14603_v60 = vld [vmem:[%s18553_s7 + $0x148] sm:$0xff]  }
 0x541   :  { %v5981_v27 = vpop.f32.mrf.mxu0 }
 0x542   :  { %v5991_v55 = vadd.f32 %v5981_v27, %v5867_v26  ;;  %v6020_v49 = vadd.f32 %v6005_v17, %v5990_v32  ;;  %v6025_v36 = vmax.f32 %v6017_v58, 0.0  ;;  %v6032_v9 = vmul.f32 %v6024_v62, %v17019_v10  ;;  %v14584_v26 = vld [vmem:[%s18553_s7 + $0xb0] sm:$0xff]   ;;  %v14585_v32 = vld [vmem:[%s18553_s7 + $0xa8] sm:$0xff]  }
 0x543   :  { %v6151_v2 = vpop.f32.mrf.mxu0  ;;  %v14589_v17 = vld [vmem:[%s18553_s7 + $0x88] sm:$0xff]   ;;  %v14617_v62 = vld [vmem:[%s18553_s7 + $0x2f0] sm:$0xff]  }
 0x544   :  { %v6021_v7 = vadd.f32 %v6009_v38, %v5991_v55  ;;  %v6028_v0 = vmax.f32 %v6020_v49, 0.0  ;;  %v14591_v38 = vld [vmem:[%s18553_s7 + $0xd8] sm:$0xff]   ;;  %v14594_v55 = vld [vmem:[%s18553_s7 + $0xc0] sm:$0xff]   ;;  %v14599_v49 = vld [vmem:[%s18553_s7 + $0x150] sm:$0xff]  }
 0x545   :  { %v6153_v18 = vpop.f32.mrf.mxu0  ;;  %v14604_v58 = vld [vmem:[%s18553_s7 + $0x108] sm:$0xff]  }
 0x546   :  { %12223 = vmatmul.mubr.msk.bf16.vlgmr.msra.gmra.mxu1 %vm163_vm3, %v16828_v25  ;;  %v6029_v5 = vmax.f32 %v6021_v7, 0.0  ;;  %v14607_v7 = vld [vmem:[%s18553_s7 + $0x140] sm:$0xff]  }
 0x547   :  { %6089 = vmatpush1.bf16.msra.mxu1 %v14565_v45  ;;  %v6155_v19 = vpop.f32.mrf.mxu0  ;;  %6106 = vmatprep.mubr.bf16.mxu1 %v15016_v24 }
 0x548   :  { %6194 = vmatprep.subr.bf16.mxu1 %v14572_v4  ;;  %v6036_v4 = vmul.f32 %v6028_v0, %v17019_v10  ;;  %v14613_v0 = vld [vmem:[%s18553_s7 + $0x2f8] sm:$0xff]  }
 0x549   :  { %v6157_v14 = vpop.f32.mrf.mxu0 }
 0x54b   :  { %v6257_v22 = vpop.f32.mrf.mxu0 }
 0x54c   :  { %v6258_v52 = vadd.f32 %v6257_v22, %v6151_v2 }
 0x54d   :  { %v6259_v29 = vpop.f32.mrf.mxu0 }
 0x54e   :  { %12237 = vmatmul.mubr.msk.bf16.vlgmr.msra.gmra.mxu1 %vm163_vm3, %v16806_v11  ;;  %v6260_v59 = vadd.f32 %v6259_v29, %v6153_v18 }
 0x54f   :  { %6195 = vmatpush1.bf16.msra.mxu1 %v14570_v12  ;;  %v6261_v30 = vpop.f32.mrf.mxu0  ;;  %6212 = vmatprep.mubr.bf16.mxu1 %v15016_v24 }
 0x550   :  { %6304 = vmatprep.subr.bf16.mxu1 %v14577_v63  ;;  %v6262_v13 = vadd.f32 %v6261_v30, %v6155_v19 }
 0x551   :  { %v6263_v11 = vpop.f32.mrf.mxu0 }
 0x552   :  { %v6264_v15 = vadd.f32 %v6263_v11, %v6157_v14  ;;  %v6037_v14 = vmul.f32 %v6029_v5, %v17019_v10  ;;  %v14618_v5 = vld [vmem:[%s18553_s7 + $0x2b0] sm:$0xff]  }
 0x553   :  { %v6367_v42 = vpop.f32.mrf.mxu0 }
 0x554   :  { %v6378_v31 = vadd.f32 %v6367_v42, %v6258_v52  ;;  %v14586_v52 = vld [vmem:[%s18553_s7 + $0xa0] sm:$0xff]   ;;  %v14592_v42 = vld [vmem:[%s18553_s7 + $0xd0] sm:$0xff]  }
 0x555   :  { %v6369_v46 = vpop.f32.mrf.mxu0 }
 0x556   :  { %v6408_v56 = vadd.f32 %v6397_v21, %v6378_v31  ;;  %v6379_v44 = vadd.f32 %v6369_v46, %v6260_v59  ;;  %12243 = vmatmul.mubr.msk.bf16.vlgmr.msra.gmra.mxu1 %vm163_vm3, %v15619_v39  ;;  %v17022_v39 = vmul.f32 %v14982_v3, %v16974_v1  ;;  %v6033_v1 = vmul.f32 %v6025_v36, %v17019_v10  ;;  %v14595_v59 = vld [vmem:[%s18553_s7 + $0x158] sm:$0xff]   ;;  %v14606_v3 = vld [vmem:[%s18553_s7 + $0x2c8] sm:$0xff]  }
 0x557   :  { %6305 = vmatpush1.bf16.msra.mxu1 %v14575_v50  ;;  %v6371_v61 = vpop.f32.mrf.mxu0  ;;  %6322 = vmatprep.mubr.bf16.mxu1 %v15016_v24  ;;  %v14593_v50 = vld [vmem:[%s18553_s7 + $0xc8] sm:$0xff]   ;;  %v14596_v31 = vld [vmem:[%s18553_s7 + $0x118] sm:$0xff]  }
 0x558   :  { %v6409_v8 = vadd.f32 %v6401_v57, %v6379_v44  ;;  %v6382_v23 = vadd.f32 %v6371_v61, %v6262_v13  ;;  %v6416_v48 = vmax.f32 %v6408_v56, 0.0  ;;  %13718 = vmatprep.subr.bf16.mxu1 %v14595_v59  ;;  %v14598_v46 = vld [vmem:[%s18553_s7 + $0x2d8] sm:$0xff]   ;;  %v14600_v13 = vld [vmem:[%s18553_s7 + $0x110] sm:$0xff]   ;;  %v14605_v61 = vld [vmem:[%s18553_s7 + $0x308] sm:$0xff]  }
 0x559   :  { %v6373_v28 = vpop.f32.mrf.mxu0  ;;  %v14601_v56 = vld [vmem:[%s18553_s7 + $0x310] sm:$0xff]   ;;  %v14619_v36 = vld [vmem:[%s18553_s7 + $0x128] sm:$0xff]  }
 0x55a   :  { %v6417_v54 = vmax.f32 %v6409_v8, 0.0  ;;  %v6412_v40 = vadd.f32 %v6397_v21, %v6382_v23  ;;  %v6383_v41 = vadd.f32 %v6373_v28, %v6264_v15  ;;  %v6424_v45 = vmul.f32 %v6416_v48, %v17022_v39  ;;  %v14587_v21 = vld [vmem:[%s18553_s7 + $0x98] sm:$0xff]   ;;  %v14602_v44 = vld [vmem:[%s18553_s7 + $0x2d0] sm:$0xff]   ;;  %v14608_v15 = vld [vmem:[%s18553_s7 + $0x100] sm:$0xff]  }
 0x55b   :  { %v14609_v8 = vld [vmem:[%s18553_s7 + $0x300] sm:$0xff]   ;;  %v14611_v48 = vld [vmem:[%s18553_s7 + $0x138] sm:$0xff]  }
 0x55c   :  { %v6420_v27 = vmax.f32 %v6412_v40, 0.0  ;;  %v6413_v2 = vadd.f32 %v6401_v57, %v6383_v41  ;;  %v6425_v18 = vmul.f32 %v6417_v54, %v17022_v39  ;;  %v6432_v63 = vadd.f32 %v6424_v45, %v6032_v9  ;;  %v14597_v57 = vld [vmem:[%s18553_s7 + $0x318] sm:$0xff]   ;;  %v14610_v23 = vld [vmem:[%s18553_s7 + $0x2c0] sm:$0xff]   ;;  %v14615_v40 = vld [vmem:[%s18553_s7 + $0x130] sm:$0xff]  }
 0x55d   :  { %v14612_v28 = vld [vmem:[%s18553_s7 + $0xf8] sm:$0xff]   ;;  %v14616_v41 = vld [vmem:[%s18553_s7 + $0xf0] sm:$0xff]   ;;  %v14623_v45 = vld [vmem:[%s18553_s7 + $0x120] sm:$0xff]  }
 0x55e   :  { %v6428_v33 = vmul.f32 %v6420_v27, %v17022_v39  ;;  %v6421_v19 = vmax.f32 %v6413_v2, 0.0  ;;  %12253 = vmatmul.mubr.msk.bf16.vlgmr.msra.gmra.mxu1 %vm163_vm3, %v16828_v25  ;;  %v6433_v29 = vadd.f32 %v6425_v18, %v6033_v1  ;;  %v14583_v25 = vld [vmem:[%s18553_s7 + $0xb8] sm:$0xff]   ;;  %v14621_v27 = vld [vmem:[%s18553_s7 + $0x2e8] sm:$0xff]   ;;  %v14625_v18 = vld [vmem:[%s18553_s7 + $0x2e0] sm:$0xff]  }
 0x55f   :  { %13719 = vmatpush3.bf16.msra.mxu1 %v14596_v31  ;;  %v14614_v54 = vld [vmem:[%s18553_s7 + $0x2b8] sm:$0xff]   ;;  %v14620_v2 = vld [vmem:[%s18553_s7 + $0xe8] sm:$0xff]   ;;  %v14626_v9 = vld [vmem:[%s18553_s7 + $0x2a0] sm:$0xff]  }
 0x560   :  { %v6436_v22 = vadd.f32 %v6428_v33, %v6036_v4  ;;  %v6429_v12 = vmul.f32 %v6421_v19, %v17022_v39  ;;  %13720 = vmatprep.subr.bf16.mxu1 %v14599_v49  ;;  %v14622_v4 = vld [vmem:[%s18553_s7 + $0x2a8] sm:$0xff]   ;;  %v14624_v33 = vld [vmem:[%s18553_s7 + $0xe0] sm:$0xff]   ;;  %v14627_v19 = vld [vmem:[%s18553_s7 + $0x78] sm:$0xff]  }
 0x561   :  { %v5464_v1 = vld [vmem:[%s18556_s10] sm:$0x1] }
 0x562   :  { %v6437_v30 = vadd.f32 %v6429_v12, %v6037_v14  ;;  %v17034_v35 = vpack.c.bf16 %v6436_v22, %v6432_v63 }
 0x563   :  { %13721 = vmatpush3.bf16.msra.mxu1 %v14600_v13 }
 0x564   :  { %v17036_v34 = vpack.c.bf16 %v6437_v30, %v6433_v29  ;;  %v17045_v11 = vshrl.u32 %v17034_v35, 16  ;;  %13722 = vmatprep.subr.bf16.mxu1 %v14603_v60 }
 0x566   :  { %v17039_v51 = vshrl.u32 %v17036_v34, 16 }
 0x567   :  { %13723 = vmatpush3.bf16.msra.mxu1 %v14604_v58 }
 0x568   :  { %12340 = vmatprep.mubr.msk.bf16.mxu0 %vm1314_vm4, %v17039_v51  ;;  %13724 = vmatprep.subr.bf16.mxu1 %v14607_v7  ;;  %v5997_v7 = vrot.slane %v17001_v37, %v15353_v43 }
 0x569   :  { %6813 = vmatmul.mubr.bf16.vlgmr.msra.gmra.mxu0 %v17045_v11 }
 0x56a   :  { %7031 = vmatpush1.bf16.msra.mxu0 %v14583_v25  ;;  %12369 = vmatprep.mubr.msk.bf16.mxu0 %vm1314_vm4, %v17036_v34 }
 0x56b   :  { %7032 = vmatprep.subr.bf16.mxu0 %v15016_v24  ;;  %13725 = vmatpush3.bf16.msra.mxu1 %v14608_v15 }
 0x56c   :  { %13726 = vmatprep.subr.bf16.mxu1 %v14611_v48  ;;  %v6389_v48 = vrot.slane %v16995_v20, %v15353_v43 }
 0x56e   :  { %7033 = vmatpush1.bf16.msra.mxu0 %v14584_v26 }
 0x56f   :  { %7034 = vmatprep.subr.bf16.mxu0 %v15016_v24  ;;  %13727 = vmatpush3.bf16.msra.mxu1 %v14612_v28 }
 0x570   :  { %13728 = vmatprep.subr.bf16.mxu1 %v14615_v40 }
 0x572   :  { %7035 = vmatpush1.bf16.msra.mxu0 %v14585_v32 }
 0x573   :  { %7036 = vmatprep.subr.bf16.mxu0 %v15016_v24  ;;  %13729 = vmatpush3.bf16.msra.mxu1 %v14616_v41 }
 0x574   :  { %13730 = vmatprep.subr.bf16.mxu1 %v14619_v36  ;;  %v6393_v36 = vrot.slane %v16995_v20, %v15357_v47 }
 0x576   :  { %7037 = vmatpush1.bf16.msra.mxu0 %v14586_v52 }
 0x577   :  { %7038 = vmatprep.subr.bf16.mxu0 %v15016_v24  ;;  %13731 = vmatpush3.bf16.msra.mxu1 %v14620_v2 }
 0x578   :  { %13732 = vmatprep.subr.bf16.mxu1 %v14623_v45 }
 0x57a   :  { %7039 = vmatpush1.bf16.msra.mxu0 %v14587_v21 }
 0x57b   :  { %7040 = vmatprep.subr.bf16.mxu0 %v15016_v24  ;;  %13733 = vmatpush3.bf16.msra.mxu1 %v14624_v33 }
 0x57c   :  { %13740 = vmatprep.subr.bf16.mxu1 %v14627_v19 }
 0x57e   :  { %7041 = vmatpush1.bf16.msra.mxu0 %v14588_v6 }
 0x57f   :  { %7042 = vmatprep.subr.bf16.mxu0 %v15016_v24 }
 0x582   :  { %7043 = vmatpush1.bf16.msra.mxu0 %v14589_v17 }
 0x583   :  { %7044 = vmatprep.subr.bf16.mxu0 %v15016_v24 }
 0x586   :  { %7045 = vmatpush1.bf16.msra.mxu0 %v14590_v16 }
 0x587   :  { %7054 = vmatprep.subr.bf16.mxu0 %v15016_v24 }
 0x58a   :  { %7055 = vmatpush2.bf16.msra.mxu0 %v14591_v38 }
 0x58b   :  { %7056 = vmatprep.subr.bf16.mxu0 %v15016_v24 }
 0x58e   :  { %7057 = vmatpush2.bf16.msra.mxu0 %v14592_v42 }
 0x58f   :  { %7058 = vmatprep.subr.bf16.mxu0 %v15016_v24 }
 0x592   :  { %7059 = vmatpush2.bf16.msra.mxu0 %v14593_v50 }
 0x593   :  { %7060 = vmatprep.subr.bf16.mxu0 %v15016_v24 }
 0x596   :  { %7061 = vmatpush2.bf16.msra.mxu0 %v14594_v55 }
 0x597   :  { %13784 = vmatprep.subr.bf16.mxu0 %v14597_v57 }
 0x599   :  { %7063 = vmatmul.mubr.bf16.vlgmr.msra.gmra.mxu0 %v17034_v35 }
 0x59a   :  { %13785 = vmatpush3.bf16.msra.mxu0 %v14598_v46 }
 0x59b   :  { %13786 = vmatprep.subr.bf16.mxu0 %v14601_v56 }
 0x59e   :  { %13787 = vmatpush3.bf16.msra.mxu0 %v14602_v44 }
 0x59f   :  { %13788 = vmatprep.subr.bf16.mxu0 %v14605_v61 }
 0x5a2   :  { %13789 = vmatpush3.bf16.msra.mxu0 %v14606_v3 }
 0x5a3   :  { %13790 = vmatprep.subr.bf16.mxu0 %v14609_v8 }
 0x5a6   :  { %13791 = vmatpush3.bf16.msra.mxu0 %v14610_v23 }
 0x5a7   :  { %13792 = vmatprep.subr.bf16.mxu0 %v14613_v0  ;;  %v6001_v0 = vrot.slane %v17001_v37, %v15357_v47 }
 0x5aa   :  { %13793 = vmatpush3.bf16.msra.mxu0 %v14614_v54 }
 0x5ab   :  { %13794 = vmatprep.subr.bf16.mxu0 %v14617_v62 }
 0x5ae   :  { %13795 = vmatpush3.bf16.msra.mxu0 %v14618_v5 }
 0x5af   :  { %13796 = vmatprep.subr.bf16.mxu0 %v14621_v27 }
 0x5b2   :  { %13797 = vmatpush3.bf16.msra.mxu0 %v14622_v4 }
 0x5b3   :  { %13798 = vmatprep.subr.bf16.mxu0 %v14625_v18 }
 0x5b6   :  { %13799 = vmatpush3.bf16.msra.mxu0 %v14626_v9 }
 0x5b7   :  { %7663 = vmatprep.subr.bf16.mxu0 %v15016_v24 }
 0x5ee   :  { %v5547_v14 = vpop.f32.mrf.mxu1 }
 0x5ef   :  { %v17200_v22 = vadd.f32 %v5547_v14, %v5464_v1 }
 0x5f0   :  { %v14059_v12 = vpop.f32.mrf.mxu1 }
 0x5f1   :  { %v5554_v63 = vsel %vm5553_vm6, %v17200_v22, -inf }
 0x5f2   :  { %v5550_v29 = vpop.f32.mrf.mxu1  ;;  %5555 = vmax.xlane.f32.xlu1 %v5554_v63 }
 0x5f4   :  { %v14060_v30 = vpop.f32.mrf.mxu1 }
 0x5f6   :  { %v5709_v25 = vpop.f32.mrf.mxu1 }
 0x5f8   :  { %v5711_v26 = vpop.f32.mrf.mxu1 }
 0x5fa   :  { %v5713_v32 = vpop.f32.mrf.mxu1 }
 0x5fc   :  { %v5715_v52 = vpop.f32.mrf.mxu1 }
 0x5fe   :  { %v5817_v21 = vpop.f32.mrf.mxu1 }
 0x5ff   :  { %v5818_v56 = vadd.f32 %v5817_v21, %v5709_v25 }
 0x600   :  { %v5819_v6 = vpop.f32.mrf.mxu1 }
 0x601   :  { %v5820_v58 = vadd.f32 %v5819_v6, %v5711_v26 }
 0x602   :  { %v5821_v17 = vpop.f32.mrf.mxu1 }
 0x603   :  { %v5822_v60 = vadd.f32 %v5821_v17, %v5713_v32 }
 0x604   :  { %v5823_v16 = vpop.f32.mrf.mxu1 }
 0x605   :  { %v5824_v61 = vadd.f32 %v5823_v16, %v5715_v52 }
 0x606   :  { %v5932_v38 = vpop.f32.mrf.mxu1 }
 0x607   :  { %v5984_v3 = vadd.f32 %v5932_v38, %v5818_v56 }
 0x608   :  { %v5934_v42 = vpop.f32.mrf.mxu1 }
 0x609   :  { %v5985_v28 = vadd.f32 %v5934_v42, %v5820_v58  ;;  %v6014_v5 = vadd.f32 %v5997_v7, %v5984_v3 }
 0x60a   :  { %v5936_v50 = vpop.f32.mrf.mxu1 }
 0x60b   :  { %v5988_v8 = vadd.f32 %v5936_v50, %v5822_v60  ;;  %v6015_v33 = vadd.f32 %v6001_v0, %v5985_v28  ;;  %v6022_v12 = vmax.f32 %v6014_v5, 0.0  ;;  %v7448_v28 = vrot.slane %v17039_v51, 1  ;;  %v14639_v5 = vld [vmem:[%s18553_s7 + $0x58] sm:$0xff]  }
 0x60c   :  { %v5938_v55 = vpop.f32.mrf.mxu1 }
 0x60d   :  { %v5989_v54 = vadd.f32 %v5938_v55, %v5824_v61  ;;  %v6018_v2 = vadd.f32 %v5997_v7, %v5988_v8  ;;  %v6023_v47 = vmax.f32 %v6015_v33, 0.0  ;;  %v6030_v6 = vmul.f32 %v6022_v12, %v17019_v10  ;;  %v14629_v8 = vld [vmem:[%s18553_s7 + $0x358] sm:$0xff]   ;;  %v14645_v33 = vld [vmem:[%s18553_s7 + $0x48] sm:$0xff]   ;;  %v14650_v12 = vld [vmem:[%s18553_s7 + $0x320] sm:$0xff]  }
 0x60e   :  { %v6108_v59 = vpop.f32.mrf.mxu1 }
 0x60f   :  { %v6019_v19 = vadd.f32 %v6001_v0, %v5989_v54  ;;  %v6026_v29 = vmax.f32 %v6018_v2, 0.0  ;;  %v6031_v55 = vmul.f32 %v6023_v47, %v17019_v10  ;;  %v14633_v0 = vld [vmem:[%s18553_s7 + $0x68] sm:$0xff]   ;;  %v14632_v54 = vld [vmem:[%s18553_s7 + $0x350] sm:$0xff]   ;;  %v14640_v2 = vld [vmem:[%s18553_s7 + $0x18] sm:$0xff]  }
 0x610   :  { %v6110_v31 = vpop.f32.mrf.mxu1  ;;  %v14657_v47 = vld [vmem:[%s18553_s7 + $0x228] sm:$0xff]  }
 0x611   :  { %v6027_v20 = vmax.f32 %v6019_v19, 0.0  ;;  %v6034_v17 = vmul.f32 %v6026_v29, %v17019_v10  ;;  %v14644_v19 = vld [vmem:[%s18553_s7 + $0x330] sm:$0xff]  }
 0x612   :  { %v6112_v57 = vpop.f32.mrf.mxu1  ;;  %v14654_v29 = vld [vmem:[%s18553_s7 + $0x230] sm:$0xff]  }
 0x614   :  { %v6114_v46 = vpop.f32.mrf.mxu1 }
 0x616   :  { %v6214_v49 = vpop.f32.mrf.mxu1 }
 0x617   :  { %v6215_v23 = vadd.f32 %v6214_v49, %v6108_v59  ;;  %v6035_v59 = vmul.f32 %v6027_v20, %v17019_v10  ;;  %v14628_v10 = vld [vmem:[%s18553_s7 + $0x38] sm:$0xff]   ;;  %v14656_v20 = vld [vmem:[%s18553_s7 + $0x370] sm:$0xff]  }
 0x618   :  { %v6216_v13 = vpop.f32.mrf.mxu1 }
 0x619   :  { %v6217_v41 = vadd.f32 %v6216_v13, %v6110_v31 }
 0x61a   :  { %v6218_v44 = vpop.f32.mrf.mxu1 }
 0x61b   :  { %v6219_v45 = vadd.f32 %v6218_v44, %v6112_v57 }
 0x61c   :  { %v6220_v15 = vpop.f32.mrf.mxu1 }
 0x61d   :  { %v6221_v9 = vadd.f32 %v6220_v15, %v6114_v46 }
 0x61e   :  { %v6324_v40 = vpop.f32.mrf.mxu1 }
 0x61f   :  { %v6376_v62 = vadd.f32 %v6324_v40, %v6215_v23  ;;  %v14634_v40 = vld [vmem:[%s18553_s7 + $0x28] sm:$0xff]  }
 0x620   :  { %v6326_v27 = vpop.f32.mrf.mxu1 }
 0x621   :  { %v6406_v4 = vadd.f32 %v6389_v48, %v6376_v62  ;;  %v6377_v18 = vadd.f32 %v6326_v27, %v6217_v41  ;;  %v14636_v41 = vld [vmem:[%s18553_s7 + $0x60] sm:$0xff]   ;;  %v14635_v62 = vld [vmem:[%s18553_s7 + $0x348] sm:$0xff]  }
 0x622   :  { %v6328_v43 = vpop.f32.mrf.mxu1  ;;  %v14638_v27 = vld [vmem:[%s18553_s7 + $0x340] sm:$0xff]  }
 0x623   :  { %v6414_v1 = vmax.f32 %v6406_v4, 0.0  ;;  %v6407_v14 = vadd.f32 %v6393_v36, %v6377_v18  ;;  %v6380_v37 = vadd.f32 %v6328_v43, %v6219_v45  ;;  %v14642_v45 = vld [vmem:[%s18553_s7 + $0x50] sm:$0xff]   ;;  %v14641_v4 = vld [vmem:[%s18553_s7 + $0x338] sm:$0xff]   ;;  %v14646_v43 = vld [vmem:[%s18553_s7 + $0x8] sm:$0xff]  }
 0x624   :  { %v6330_v63 = vpop.f32.mrf.mxu1  ;;  %v14643_v18 = vld [vmem:[%s18553_s7 + $0x10] sm:$0xff]  }
 0x625   :  { %v6415_v30 = vmax.f32 %v6407_v14, 0.0  ;;  %v6410_v25 = vadd.f32 %v6389_v48, %v6380_v37  ;;  %v6381_v26 = vadd.f32 %v6330_v63, %v6221_v9  ;;  %v6422_v32 = vmul.f32 %v6414_v1, %v17022_v39  ;;  %v14631_v48 = vld [vmem:[%s18553_s7 + $0x30] sm:$0xff]   ;;  %v14648_v9 = vld [vmem:[%s18553_s7 + $0x40] sm:$0xff]   ;;  %v14647_v1 = vld [vmem:[%s18553_s7 + $0x328] sm:$0xff]  }
 0x626   :  { %v14649_v14 = vld [vmem:[%s18553_s7] sm:$0xff]   ;;  %v14651_v37 = vld [vmem:[%s18553_s7 + $0x238] sm:$0xff]  }
 0x627   :  { %v6418_v52 = vmax.f32 %v6410_v25, 0.0  ;;  %v6411_v21 = vadd.f32 %v6393_v36, %v6381_v26  ;;  %v6423_v16 = vmul.f32 %v6415_v30, %v17022_v39  ;;  %v6430_v31 = vadd.f32 %v6422_v32, %v6030_v6  ;;  %v14637_v36 = vld [vmem:[%s18553_s7 + $0x20] sm:$0xff]   ;;  %v14652_v63 = vld [vmem:[%s18553_s7 + $0x1f8] sm:$0xff]   ;;  %v14655_v26 = vld [vmem:[%s18553_s7 + $0x1f0] sm:$0xff]  }
 0x628   :  { %v14653_v25 = vld [vmem:[%s18553_s7 + $0x378] sm:$0xff]  }
 0x629   :  { %v6426_v38 = vmul.f32 %v6418_v52, %v17022_v39  ;;  %v6419_v42 = vmax.f32 %v6411_v21, 0.0  ;;  %v17217_v50 = vpop.f32.mrf.mxu0  ;;  %v6431_v13 = vadd.f32 %v6423_v16, %v6031_v55  ;;  %v14658_v52 = vld [vmem:[%s18553_s7 + $0x1e8] sm:$0xff]   ;;  %v14660_v21 = vld [vmem:[%s18553_s7 + $0x220] sm:$0xff]  }
 0x62b   :  { %v6434_v57 = vadd.f32 %v6426_v38, %v6034_v17  ;;  %v6427_v46 = vmul.f32 %v6419_v42, %v17022_v39  ;;  %v6816_v49 = vpop.f32.mrf.mxu0  ;;  %v14630_v39 = vld [vmem:[%s18553_s7 + $0x70] sm:$0xff]   ;;  %v14659_v17 = vld [vmem:[%s18553_s7 + $0x368] sm:$0xff]   ;;  %v14661_v38 = vld [vmem:[%s18553_s7 + $0x1e0] sm:$0xff]  }
 0x62c   :  { %v14663_v42 = vld [vmem:[%s18553_s7 + $0x218] sm:$0xff]  }
 0x62d   :  { %v17222_v56 = vpack.c.bf16 %v6434_v57, %v6430_v31  ;;  %v6435_v44 = vadd.f32 %v6427_v46, %v6035_v59  ;;  %v6817_v60 = vpop.f32.mrf.mxu0  ;;  %v14662_v59 = vld [vmem:[%s18553_s7 + $0x360] sm:$0xff]   ;;  %v14664_v31 = vld [vmem:[%s18553_s7 + $0x1d8] sm:$0xff]   ;;  %v14667_v46 = vld [vmem:[%s18553_s7 + $0x210] sm:$0xff]  }
 0x62e   :  { %v14665_v57 = vld [vmem:[%s18553_s7 + $0x4d8] sm:$0xff]   ;;  %v14669_v60 = vld [vmem:[%s18553_s7 + $0x4d0] sm:$0xff]  }
 0x62f   :  { %v17224_v58 = vpack.c.bf16 %v6435_v44, %v6431_v13  ;;  %v6818_v61 = vpop.f32.mrf.mxu0  ;;  %v17230_v7 = vshrl.u32 %v17222_v56, 16  ;;  %v14666_v49 = vld [vmem:[%s18553_s7 + $0x498] sm:$0xff]   ;;  %v7447_v13 = vrot.slane %v17045_v11, 1  ;;  %v14668_v44 = vld [vmem:[%s18553_s7 + $0x1d0] sm:$0xff]  }
 0x631   :  { %v17227_v3 = vshrl.u32 %v17224_v58, 16  ;;  %v7445_v23 = vrot.slane %v17230_v7, 1  ;;  %v7131_v30 = vrot.slane %v17224_v58, 1 }
 0x633   :  { %6772 = vmatprep.mubr.bf16.mxu1 %v17227_v3  ;;  %v7446_v15 = vrot.slane %v17227_v3, 1  ;;  %v8076_v61 = vrot.slane %v17227_v3, 2 }
 0x634   :  { %6773 = vmatmul.mubr.bf16.vlgmr.msra.gmra.mxu1 %v17230_v7 }
 0x635   :  { %13741 = vmatpush3.bf16.msra.mxu1 %v14628_v10  ;;  %7022 = vmatprep.mubr.bf16.mxu1 %v17224_v58  ;;  %v14671_v10 = vld [vmem:[%s18553_s7 + $0x208] sm:$0xff]  }
 0x636   :  { %7655 = vmatprep.mubr.bf16.mxu0 %v7446_v15  ;;  %13742 = vmatprep.subr.bf16.mxu1 %v14630_v39  ;;  %v14670_v39 = vld [vmem:[%s18553_s7 + $0x490] sm:$0xff]   ;;  %v14672_v15 = vld [vmem:[%s18553_s7 + $0x1c8] sm:$0xff]  }
 0x637   :  { %7656 = vmatmul.mubr.bf16.vlgmr.msra.gmra.mxu0 %v7445_v23  ;;  %v14675_v23 = vld [vmem:[%s18553_s7 + $0x200] sm:$0xff]  }
 0x638   :  { %7664 = vmatpush1.bf16.msra.mxu0 %v14629_v8  ;;  %12539 = vmatprep.mubr.msk.bf16.mxu0 %vm1314_vm4, %v7448_v28  ;;  %v14673_v8 = vld [vmem:[%s18553_s7 + $0x4c8] sm:$0xff]   ;;  %v14676_v28 = vld [vmem:[%s18553_s7 + $0x1c0] sm:$0xff]  }
 0x639   :  { %13743 = vmatpush3.bf16.msra.mxu1 %v14631_v48  ;;  %7665 = vmatprep.subr.bf16.mxu0 %v15016_v24  ;;  %v14674_v48 = vld [vmem:[%s18553_s7 + $0x488] sm:$0xff]  }
 0x63a   :  { %13744 = vmatprep.subr.bf16.mxu1 %v14633_v0  ;;  %v14677_v0 = vld [vmem:[%s18553_s7 + $0x4c0] sm:$0xff]  }
 0x63c   :  { %7666 = vmatpush1.bf16.msra.mxu0 %v14632_v54  ;;  %v14678_v54 = vld [vmem:[%s18553_s7 + $0x480] sm:$0xff]  }
 0x63d   :  { %13745 = vmatpush3.bf16.msra.mxu1 %v14634_v40  ;;  %7667 = vmatprep.subr.bf16.mxu0 %v15016_v24  ;;  %v14679_v40 = vld [vmem:[%s18553_s7 + $0x278] sm:$0xff]  }
 0x63e   :  { %13746 = vmatprep.subr.bf16.mxu1 %v14636_v41  ;;  %v7130_v41 = vrot.slane %v17222_v56, 1 }
 0x640   :  { %7668 = vmatpush1.bf16.msra.mxu0 %v14635_v62  ;;  %v14680_v62 = vld [vmem:[%s18553_s7 + $0x4b8] sm:$0xff]  }
 0x641   :  { %13747 = vmatpush3.bf16.msra.mxu1 %v14637_v36  ;;  %7669 = vmatprep.subr.bf16.mxu0 %v15016_v24  ;;  %v7133_v36 = vrot.slane %v17036_v34, 1 }
 0x642   :  { %13748 = vmatprep.subr.bf16.mxu1 %v14639_v5  ;;  %v14681_v5 = vld [vmem:[%s18553_s7 + $0x478] sm:$0xff]  }
 0x644   :  { %7670 = vmatpush1.bf16.msra.mxu0 %v14638_v27  ;;  %v14682_v27 = vld [vmem:[%s18553_s7 + $0x270] sm:$0xff]  }
 0x645   :  { %13749 = vmatpush3.bf16.msra.mxu1 %v14640_v2  ;;  %7671 = vmatprep.subr.bf16.mxu0 %v15016_v24  ;;  %v14683_v2 = vld [vmem:[%s18553_s7 + $0x4b0] sm:$0xff]  }
 0x646   :  { %13750 = vmatprep.subr.bf16.mxu1 %v14642_v45  ;;  %v14684_v45 = vld [vmem:[%s18553_s7 + $0x470] sm:$0xff]  }
 0x648   :  { %7672 = vmatpush1.bf16.msra.mxu0 %v14641_v4  ;;  %v14685_v4 = vld [vmem:[%s18553_s7 + $0x268] sm:$0xff]  }
 0x649   :  { %13751 = vmatpush3.bf16.msra.mxu1 %v14643_v18  ;;  %7673 = vmatprep.subr.bf16.mxu0 %v15016_v24  ;;  %v14686_v18 = vld [vmem:[%s18553_s7 + $0x4a8] sm:$0xff]  }
 0x64a   :  { %13752 = vmatprep.subr.bf16.mxu1 %v14645_v33 }
 0x64c   :  { %7674 = vmatpush1.bf16.msra.mxu0 %v14644_v19 }
 0x64d   :  { %13753 = vmatpush3.bf16.msra.mxu1 %v14646_v43  ;;  %7675 = vmatprep.subr.bf16.mxu0 %v15016_v24  ;;  %v14687_v43 = vld [vmem:[%s18553_s7 + $0x468] sm:$0xff]  }
 0x64e   :  { %13754 = vmatprep.subr.bf16.mxu1 %v14648_v9  ;;  %v14688_v9 = vld [vmem:[%s18553_s7 + $0x260] sm:$0xff]  }
 0x650   :  { %7676 = vmatpush1.bf16.msra.mxu0 %v14647_v1  ;;  %v14689_v1 = vld [vmem:[%s18553_s7 + $0x4a0] sm:$0xff]  }
 0x651   :  { %13755 = vmatpush3.bf16.msra.mxu1 %v14649_v14  ;;  %7677 = vmatprep.subr.bf16.mxu0 %v15016_v24 }
 0x652   :  { %13762 = vmatprep.subr.bf16.mxu1 %v14651_v37  ;;  %v14691_v37 = vld [vmem:[%s18553_s7 + $0x258] sm:$0xff]  }
 0x654   :  { %7678 = vmatpush1.bf16.msra.mxu0 %v14650_v12  ;;  %7023 = vmatmul.mubr.bf16.vlgmr.msra.gmra.mxu1 %v17222_v56  ;;  %v14692_v12 = vld [vmem:[%s18553_s7 + $0x518] sm:$0xff]  }
 0x655   :  { %13763 = vmatpush3.bf16.msra.mxu1 %v14652_v63  ;;  %7340 = vmatprep.mubr.bf16.mxu1 %v7131_v30  ;;  %v8075_v63 = vrot.slane %v17230_v7, 2  ;;  %v8078_v30 = vrot.slane %v17039_v51, 2 }
 0x656   :  { %7687 = vmatprep.subr.bf16.mxu0 %v15016_v24  ;;  %13764 = vmatprep.subr.bf16.mxu1 %v14654_v29  ;;  %v14693_v29 = vld [vmem:[%s18553_s7 + $0x250] sm:$0xff]  }
 0x658   :  { %7688 = vmatpush2.bf16.msra.mxu0 %v14653_v25  ;;  %v14694_v25 = vld [vmem:[%s18553_s7 + $0x510] sm:$0xff]  }
 0x659   :  { %v17339_v32 = vpop.f32.mrf.mxu0  ;;  %13765 = vmatpush3.bf16.msra.mxu1 %v14655_v26  ;;  %7689 = vmatprep.subr.bf16.mxu0 %v15016_v24  ;;  %v14695_v26 = vld [vmem:[%s18553_s7 + $0x248] sm:$0xff]  }
 0x65a   :  { %13766 = vmatprep.subr.bf16.mxu1 %v14657_v47  ;;  %v14696_v47 = vld [vmem:[%s18553_s7 + $0x508] sm:$0xff]  }
 0x65b   :  { %v7066_v6 = vpop.f32.mrf.mxu0 }
 0x65c   :  { %7690 = vmatpush2.bf16.msra.mxu0 %v14656_v20  ;;  %v14698_v6 = vld [vmem:[%s18553_s7 + $0x500] sm:$0xff]  }
 0x65d   :  { %v7067_v16 = vpop.f32.mrf.mxu0  ;;  %13767 = vmatpush3.bf16.msra.mxu1 %v14658_v52  ;;  %7691 = vmatprep.subr.bf16.mxu0 %v15016_v24  ;;  %v14697_v52 = vld [vmem:[%s18553_s7 + $0x240] sm:$0xff]  }
 0x65e   :  { %13768 = vmatprep.subr.bf16.mxu1 %v14660_v21  ;;  %v14700_v16 = vld [vmem:[%s18553_s7 + $0x4f8] sm:$0xff]  }
 0x65f   :  { %v7068_v55 = vpop.f32.mrf.mxu0 }
 0x660   :  { %7692 = vmatpush2.bf16.msra.mxu0 %v14659_v17  ;;  %v14699_v17 = vld [vmem:[%s18553_s7 + $0x298] sm:$0xff]   ;;  %v14703_v55 = vld [vmem:[%s18553_s7 + $0x288] sm:$0xff]  }
 0x661   :  { %13769 = vmatpush3.bf16.msra.mxu1 %v14661_v38  ;;  %7693 = vmatprep.subr.bf16.mxu0 %v15016_v24  ;;  %v14701_v38 = vld [vmem:[%s18553_s7 + $0x290] sm:$0xff]  }
 0x662   :  { %13770 = vmatprep.subr.bf16.mxu1 %v14663_v42  ;;  %v14702_v42 = vld [vmem:[%s18553_s7 + $0x4f0] sm:$0xff]  }
 0x664   :  { %7694 = vmatpush2.bf16.msra.mxu0 %v14662_v59  ;;  %v14704_v59 = vld [vmem:[%s18553_s7 + $0x4e8] sm:$0xff]  }
 0x665   :  { %13771 = vmatpush3.bf16.msra.mxu1 %v14664_v31  ;;  %13828 = vmatprep.subr.bf16.mxu0 %v14665_v57  ;;  %v14705_v31 = vld [vmem:[%s18553_s7 + $0x280] sm:$0xff]   ;;  %v14707_v57 = vld [vmem:[%s18553_s7 + $0x3f8] sm:$0xff]  }
 0x666   :  { %13772 = vmatprep.subr.bf16.mxu1 %v14667_v46  ;;  %v14706_v46 = vld [vmem:[%s18553_s7 + $0x4e0] sm:$0xff]  }
 0x667   :  { %7696 = vmatmul.mubr.bf16.vlgmr.msra.gmra.mxu0 %v7447_v13  ;;  %v7132_v13 = vrot.slane %v17034_v35, 1 }
 0x668   :  { %13829 = vmatpush3.bf16.msra.mxu0 %v14666_v49  ;;  %8285 = vmatprep.mubr.bf16.mxu0 %v8076_v61  ;;  %v14708_v49 = vld [vmem:[%s18553_s7 + $0x3b8] sm:$0xff]  }
 0x669   :  { %13773 = vmatpush3.bf16.msra.mxu1 %v14668_v44  ;;  %13830 = vmatprep.subr.bf16.mxu0 %v14669_v60  ;;  %v14710_v44 = vld [vmem:[%s18553_s7 + $0x3f0] sm:$0xff]   ;;  %v7761_v60 = vrot.slane %v17224_v58, 2  ;;  %v14709_v61 = vld [vmem:[%s18553_s7 + $0x538] sm:$0xff]  }
 0x66a   :  { %13774 = vmatprep.subr.bf16.mxu1 %v14671_v10  ;;  %v14711_v10 = vld [vmem:[%s18553_s7 + $0x3b0] sm:$0xff]  }
 0x66c   :  { %13831 = vmatpush3.bf16.msra.mxu0 %v14670_v39  ;;  %v14713_v39 = vld [vmem:[%s18553_s7 + $0x3e8] sm:$0xff]  }
 0x66d   :  { %13775 = vmatpush3.bf16.msra.mxu1 %v14672_v15  ;;  %13832 = vmatprep.subr.bf16.mxu0 %v14673_v8  ;;  %v14712_v15 = vld [vmem:[%s18553_s7 + $0x530] sm:$0xff]   ;;  %v14714_v8 = vld [vmem:[%s18553_s7 + $0x3a8] sm:$0xff]  }
 0x66e   :  { %13776 = vmatprep.subr.bf16.mxu1 %v14675_v23  ;;  %v14716_v23 = vld [vmem:[%s18553_s7 + $0x3e0] sm:$0xff]  }
 0x670   :  { %13833 = vmatpush3.bf16.msra.mxu0 %v14674_v48  ;;  %v14715_v48 = vld [vmem:[%s18553_s7 + $0x528] sm:$0xff]  }
 0x671   :  { %13777 = vmatpush3.bf16.msra.mxu1 %v14676_v28  ;;  %13834 = vmatprep.subr.bf16.mxu0 %v14677_v0  ;;  %v14717_v28 = vld [vmem:[%s18553_s7 + $0x3a0] sm:$0xff]   ;;  %v14719_v0 = vld [vmem:[%s18553_s7 + $0x3d8] sm:$0xff]  }
 0x672   :  { %7348 = vmatprep.subr.bf16.mxu1 %v15016_v24 }
 0x674   :  { %13835 = vmatpush3.bf16.msra.mxu0 %v14678_v54  ;;  %7341 = vmatmul.mubr.bf16.vlgmr.msra.gmra.mxu1 %v7130_v41  ;;  %v14718_v54 = vld [vmem:[%s18553_s7 + $0x520] sm:$0xff]   ;;  %v14721_v41 = vld [vmem:[%s18553_s7 + $0x698] sm:$0xff]  }
 0x675   :  { %7349 = vmatpush1.bf16.msra.mxu1 %v14679_v40  ;;  %12454 = vmatprep.mubr.msk.bf16.mxu1 %vm1314_vm4, %v7133_v36  ;;  %v14720_v40 = vld [vmem:[%s18553_s7 + $0x398] sm:$0xff]  }
 0x676   :  { %13836 = vmatprep.subr.bf16.mxu0 %v14680_v62  ;;  %7350 = vmatprep.subr.bf16.mxu1 %v15016_v24  ;;  %v14723_v62 = vld [vmem:[%s18553_s7 + $0x3d0] sm:$0xff]   ;;  %v14722_v36 = vld [vmem:[%s18553_s7 + $0x658] sm:$0xff]  }
 0x678   :  { %13837 = vmatpush3.bf16.msra.mxu0 %v14681_v5  ;;  %v8077_v5 = vrot.slane %v17045_v11, 2 }
 0x679   :  { %7351 = vmatpush1.bf16.msra.mxu1 %v14682_v27  ;;  %13838 = vmatprep.subr.bf16.mxu0 %v14683_v2  ;;  %v14724_v27 = vld [vmem:[%s18553_s7 + $0x390] sm:$0xff]  }
 0x67a   :  { %7352 = vmatprep.subr.bf16.mxu1 %v15016_v24  ;;  %v14725_v2 = vld [vmem:[%s18553_s7 + $0x690] sm:$0xff]  }
 0x67b   :  { %v5556_v33 = vpop.xlane.xlu1 %5555 }
 0x67c   :  { %13839 = vmatpush3.bf16.msra.mxu0 %v14684_v45  ;;  %v17440_v19 = vsub.f32 %v17200_v22, %v5556_v33  ;;  %v14690_v22 = vld [vmem:[%s18553_s7 + $0x460] sm:$0xff]   ;;  %v8706_v45 = vrot.slane %v17227_v3, 3  ;;  %v14728_v33 = vld [vmem:[%s18553_s7 + $0x388] sm:$0xff]  }
 0x67d   :  { %7353 = vmatpush1.bf16.msra.mxu1 %v14685_v4  ;;  %13840 = vmatprep.subr.bf16.mxu0 %v14686_v18  ;;  %v14727_v4 = vld [vmem:[%s18553_s7 + $0x3c8] sm:$0xff]   ;;  %v14726_v18 = vld [vmem:[%s18553_s7 + $0x650] sm:$0xff]  }
 0x67e   :  { %v5558_v14 = vmul.f32 1.442695, %v17440_v19  ;;  %7354 = vmatprep.subr.bf16.mxu1 %v15016_v24 }
 0x680   :  { %14983 = vpow2.f32 %v5558_v14  ;;  %13841 = vmatpush3.bf16.msra.mxu0 %v14687_v43  ;;  %v14729_v43 = vld [vmem:[%s18553_s7 + $0x688] sm:$0xff]   ;;  %v14732_v14 = vld [vmem:[%s18553_s7 + $0x380] sm:$0xff]  }
 0x681   :  { %7355 = vmatpush1.bf16.msra.mxu1 %v14688_v9  ;;  %13842 = vmatprep.subr.bf16.mxu0 %v14689_v1  ;;  %v14731_v9 = vld [vmem:[%s18553_s7 + $0x3c0] sm:$0xff]   ;;  %v14730_v1 = vld [vmem:[%s18553_s7 + $0x648] sm:$0xff]  }
 0x682   :  { %7356 = vmatprep.subr.bf16.mxu1 %v15016_v24 }
 0x684   :  { %13843 = vmatpush3.bf16.msra.mxu0 %v14690_v22  ;;  %v14733_v22 = vld [vmem:[%s18553_s7 + $0x680] sm:$0xff]  }
 0x685   :  { %7357 = vmatpush1.bf16.msra.mxu1 %v14691_v37  ;;  %8293 = vmatprep.subr.bf16.mxu0 %v15016_v24  ;;  %v14734_v37 = vld [vmem:[%s18553_s7 + $0x640] sm:$0xff]  }
 0x686   :  { %7358 = vmatprep.subr.bf16.mxu1 %v15016_v24 }
 0x687   :  { %8286 = vmatmul.mubr.bf16.vlgmr.msra.gmra.mxu0 %v8075_v63  ;;  %v7760_v63 = vrot.slane %v17222_v56, 2 }
 0x688   :  { %8294 = vmatpush1.bf16.msra.mxu0 %v14692_v12  ;;  %12709 = vmatprep.mubr.msk.bf16.mxu0 %vm1314_vm4, %v8078_v30  ;;  %v14735_v12 = vld [vmem:[%s18553_s7 + $0x438] sm:$0xff]   ;;  %v7763_v30 = vrot.slane %v17036_v34, 2 }
 0x689   :  { %7359 = vmatpush1.bf16.msra.mxu1 %v14693_v29  ;;  %8295 = vmatprep.subr.bf16.mxu0 %v15016_v24  ;;  %v14736_v29 = vld [vmem:[%s18553_s7 + $0x678] sm:$0xff]  }
 0x68a   :  { %7360 = vmatprep.subr.bf16.mxu1 %v15016_v24 }
 0x68c   :  { %8296 = vmatpush1.bf16.msra.mxu0 %v14694_v25  ;;  %v14737_v25 = vld [vmem:[%s18553_s7 + $0x638] sm:$0xff]  }
 0x68d   :  { %v14984_v20 = vpop.eup %14983  ;;  %7361 = vmatpush1.bf16.msra.mxu1 %v14695_v26  ;;  %8297 = vmatprep.subr.bf16.mxu0 %v15016_v24  ;;  %v14738_v26 = vld [vmem:[%s18553_s7 + $0x430] sm:$0xff]  }
 0x68e   :  { %7362 = vmatprep.subr.bf16.mxu1 %v15016_v24  ;;  %v5560_v21 = vsel %vm5553_vm6, %v14984_v20, 0.0  ;;  %v14740_v20 = vld [vmem:[%s18553_s7 + $0x630] sm:$0xff]  }
 0x68f   :  { %5561 = vadd.xlane.f32.xlu1 %v5560_v21  ;;  %v14742_v21 = vld [vmem:[%s18553_s7 + $0x668] sm:$0xff]  }
 0x690   :  { %8298 = vmatpush1.bf16.msra.mxu0 %v14696_v47  ;;  %v14739_v47 = vld [vmem:[%s18553_s7 + $0x670] sm:$0xff]  }
 0x691   :  { %7363 = vmatpush1.bf16.msra.mxu1 %v14697_v52  ;;  %8299 = vmatprep.subr.bf16.mxu0 %v15016_v24  ;;  %v14741_v52 = vld [vmem:[%s18553_s7 + $0x428] sm:$0xff]  }
 0x692   :  { %7372 = vmatprep.subr.bf16.mxu1 %v15016_v24 }
 0x694   :  { %8300 = vmatpush1.bf16.msra.mxu0 %v14698_v6  ;;  %v14743_v6 = vld [vmem:[%s18553_s7 + $0x628] sm:$0xff]  }
 0x695   :  { %7373 = vmatpush2.bf16.msra.mxu1 %v14699_v17  ;;  %8301 = vmatprep.subr.bf16.mxu0 %v15016_v24  ;;  %v14744_v17 = vld [vmem:[%s18553_s7 + $0x420] sm:$0xff]  }
 0x696   :  { %7374 = vmatprep.subr.bf16.mxu1 %v15016_v24 }
 0x698   :  { %8302 = vmatpush1.bf16.msra.mxu0 %v14700_v16  ;;  %v14745_v16 = vld [vmem:[%s18553_s7 + $0x660] sm:$0xff]  }
 0x699   :  { %7375 = vmatpush2.bf16.msra.mxu1 %v14701_v38  ;;  %8303 = vmatprep.subr.bf16.mxu0 %v15016_v24  ;;  %v14746_v38 = vld [vmem:[%s18553_s7 + $0x620] sm:$0xff]  }
 0x69a   :  { %7376 = vmatprep.subr.bf16.mxu1 %v15016_v24 }
 0x69c   :  { %8304 = vmatpush1.bf16.msra.mxu0 %v14702_v42  ;;  %v14747_v42 = vld [vmem:[%s18553_s7 + $0x418] sm:$0xff]  }
 0x69d   :  { %7377 = vmatpush2.bf16.msra.mxu1 %v14703_v55  ;;  %8305 = vmatprep.subr.bf16.mxu0 %v15016_v24  ;;  %v14748_v55 = vld [vmem:[%s18553_s7 + $0x6d8] sm:$0xff]  }
 0x69e   :  { %7378 = vmatprep.subr.bf16.mxu1 %v15016_v24 }
 0x6a0   :  { %8306 = vmatpush1.bf16.msra.mxu0 %v14704_v59  ;;  %v8705_v59 = vrot.slane %v17230_v7, 3 }
 0x6a1   :  { %7379 = vmatpush2.bf16.msra.mxu1 %v14705_v31  ;;  %8307 = vmatprep.subr.bf16.mxu0 %v15016_v24  ;;  %v14749_v31 = vld [vmem:[%s18553_s7 + $0x410] sm:$0xff]  }
 0x6a2   :  { %13806 = vmatprep.subr.bf16.mxu1 %v14707_v57  ;;  %v8708_v57 = vrot.slane %v17039_v51, 3 }
 0x6a4   :  { %8308 = vmatpush1.bf16.msra.mxu0 %v14706_v46  ;;  %7381 = vmatmul.mubr.bf16.vlgmr.msra.gmra.mxu1 %v7132_v13  ;;  %v14750_v46 = vld [vmem:[%s18553_s7 + $0x6d0] sm:$0xff]   ;;  %v14752_v13 = vld [vmem:[%s18553_s7 + $0x6c8] sm:$0xff]  }
 0x6a5   :  { %13807 = vmatpush3.bf16.msra.mxu1 %v14708_v49  ;;  %7970 = vmatprep.mubr.bf16.mxu1 %v7761_v60  ;;  %v14751_v49 = vld [vmem:[%s18553_s7 + $0x408] sm:$0xff]   ;;  %v14754_v60 = vld [vmem:[%s18553_s7 + $0x6c0] sm:$0xff]  }
 0x6a6   :  { %8317 = vmatprep.subr.bf16.mxu0 %v15016_v24  ;;  %13808 = vmatprep.subr.bf16.mxu1 %v14710_v44  ;;  %v14753_v44 = vld [vmem:[%s18553_s7 + $0x400] sm:$0xff]  }
 0x6a8   :  { %8318 = vmatpush2.bf16.msra.mxu0 %v14709_v61  ;;  %v14755_v61 = vld [vmem:[%s18553_s7 + $0x458] sm:$0xff]  }
 0x6a9   :  { %13809 = vmatpush3.bf16.msra.mxu1 %v14711_v10  ;;  %8319 = vmatprep.subr.bf16.mxu0 %v15016_v24  ;;  %v14756_v10 = vld [vmem:[%s18553_s7 + $0x6b8] sm:$0xff]  }
 0x6aa   :  { %13810 = vmatprep.subr.bf16.mxu1 %v14713_v39  ;;  %v14757_v39 = vld [vmem:[%s18553_s7 + $0x450] sm:$0xff]  }
 0x6ac   :  { %8320 = vmatpush2.bf16.msra.mxu0 %v14712_v15  ;;  %v14758_v15 = vld [vmem:[%s18553_s7 + $0x6b0] sm:$0xff]  }
 0x6ad   :  { %13811 = vmatpush3.bf16.msra.mxu1 %v14714_v8  ;;  %8321 = vmatprep.subr.bf16.mxu0 %v15016_v24  ;;  %v14759_v8 = vld [vmem:[%s18553_s7 + $0x448] sm:$0xff]  }
 0x6ae   :  { %13812 = vmatprep.subr.bf16.mxu1 %v14716_v23  ;;  %v14760_v23 = vld [vmem:[%s18553_s7 + $0x6a8] sm:$0xff]  }
 0x6b0   :  { %8322 = vmatpush2.bf16.msra.mxu0 %v14715_v48  ;;  %v14761_v48 = vld [vmem:[%s18553_s7 + $0x440] sm:$0xff]  }
 0x6b1   :  { %13813 = vmatpush3.bf16.msra.mxu1 %v14717_v28  ;;  %8323 = vmatprep.subr.bf16.mxu0 %v15016_v24  ;;  %v14763_v28 = vld [vmem:[%s18553_s7 + $0x5b8] sm:$0xff]  }
 0x6b2   :  { %13814 = vmatprep.subr.bf16.mxu1 %v14719_v0  ;;  %v14762_v0 = vld [vmem:[%s18553_s7 + $0x6a0] sm:$0xff]  }
 0x6b4   :  { %8324 = vmatpush2.bf16.msra.mxu0 %v14718_v54  ;;  %v14764_v54 = vld [vmem:[%s18553_s7 + $0x578] sm:$0xff]  }
 0x6b5   :  { %13815 = vmatpush3.bf16.msra.mxu1 %v14720_v40  ;;  %13872 = vmatprep.subr.bf16.mxu0 %v14721_v41  ;;  %v7762_v40 = vrot.slane %v17034_v35, 2  ;;  %v14766_v41 = vld [vmem:[%s18553_s7 + $0x5b0] sm:$0xff]  }
 0x6b6   :  { %13816 = vmatprep.subr.bf16.mxu1 %v14723_v62  ;;  %v8391_v62 = vrot.slane %v17224_v58, 3 }
 0x6b7   :  { %8326 = vmatmul.mubr.bf16.vlgmr.msra.gmra.mxu0 %v8077_v5  ;;  %v14765_v5 = vld [vmem:[%s18553_s7 + $0x6f8] sm:$0xff]  }
 0x6b8   :  { %13873 = vmatpush3.bf16.msra.mxu0 %v14722_v36  ;;  %8915 = vmatprep.mubr.bf16.mxu0 %v8706_v45  ;;  %v14769_v45 = vld [vmem:[%s18553_s7 + $0x5a8] sm:$0xff]  }
 0x6b9   :  { %13817 = vmatpush3.bf16.msra.mxu1 %v14724_v27  ;;  %13874 = vmatprep.subr.bf16.mxu0 %v14725_v2  ;;  %v14767_v27 = vld [vmem:[%s18553_s7 + $0x570] sm:$0xff]  }
 0x6ba   :  { %13818 = vmatprep.subr.bf16.mxu1 %v14727_v4 }
 0x6bc   :  { %13875 = vmatpush3.bf16.msra.mxu0 %v14726_v18 }
 0x6bd   :  { %13819 = vmatpush3.bf16.msra.mxu1 %v14728_v33  ;;  %13876 = vmatprep.subr.bf16.mxu0 %v14729_v43  ;;  %v14768_v43 = vld [vmem:[%s18553_s7 + $0x6f0] sm:$0xff]  }
 0x6be   :  { %13820 = vmatprep.subr.bf16.mxu1 %v14731_v9 }
 0x6c0   :  { %13877 = vmatpush3.bf16.msra.mxu0 %v14730_v1  ;;  %v14770_v1 = vld [vmem:[%s18553_s7 + $0x568] sm:$0xff]  }
 0x6c1   :  { %13821 = vmatpush3.bf16.msra.mxu1 %v14732_v14  ;;  %13878 = vmatprep.subr.bf16.mxu0 %v14733_v22 }
 0x6c2   :  { %7978 = vmatprep.subr.bf16.mxu1 %v15016_v24 }
 0x6c4   :  { %13879 = vmatpush3.bf16.msra.mxu0 %v14734_v37  ;;  %7971 = vmatmul.mubr.bf16.vlgmr.msra.gmra.mxu1 %v7760_v63  ;;  %v14772_v37 = vld [vmem:[%s18553_s7 + $0x5a0] sm:$0xff]   ;;  %v14771_v63 = vld [vmem:[%s18553_s7 + $0x6e8] sm:$0xff]  }
 0x6c5   :  { %7979 = vmatpush1.bf16.msra.mxu1 %v14735_v12  ;;  %12624 = vmatprep.mubr.msk.bf16.mxu1 %vm1314_vm4, %v7763_v30  ;;  %v14773_v30 = vld [vmem:[%s18553_s7 + $0x560] sm:$0xff]  }
 0x6c6   :  { %13880 = vmatprep.subr.bf16.mxu0 %v14736_v29  ;;  %7980 = vmatprep.subr.bf16.mxu1 %v15016_v24 }
 0x6c8   :  { %13881 = vmatpush3.bf16.msra.mxu0 %v14737_v25  ;;  %v14775_v25 = vld [vmem:[%s18553_s7 + $0x598] sm:$0xff]  }
 0x6c9   :  { %7981 = vmatpush1.bf16.msra.mxu1 %v14738_v26  ;;  %13882 = vmatprep.subr.bf16.mxu0 %v14739_v47  ;;  %v14774_v26 = vld [vmem:[%s18553_s7 + $0x6e0] sm:$0xff]   ;;  %v14776_v47 = vld [vmem:[%s18553_s7 + $0x558] sm:$0xff]  }
 0x6ca   :  { %7982 = vmatprep.subr.bf16.mxu1 %v15016_v24 }
 0x6cc   :  { %13883 = vmatpush3.bf16.msra.mxu0 %v14740_v20  ;;  %v14777_v20 = vld [vmem:[%s18553_s7 + $0x858] sm:$0xff]  }
 0x6cd   :  { %7983 = vmatpush1.bf16.msra.mxu1 %v14741_v52  ;;  %13884 = vmatprep.subr.bf16.mxu0 %v14742_v21  ;;  %v14779_v52 = vld [vmem:[%s18553_s7 + $0x590] sm:$0xff]   ;;  %v14778_v21 = vld [vmem:[%s18553_s7 + $0x818] sm:$0xff]  }
 0x6ce   :  { %7984 = vmatprep.subr.bf16.mxu1 %v15016_v24 }
 0x6d0   :  { %13885 = vmatpush3.bf16.msra.mxu0 %v14743_v6  ;;  %v8707_v6 = vrot.slane %v17045_v11, 3 }
 0x6d1   :  { %7985 = vmatpush1.bf16.msra.mxu1 %v14744_v17  ;;  %13886 = vmatprep.subr.bf16.mxu0 %v14745_v16  ;;  %v14780_v17 = vld [vmem:[%s18553_s7 + $0x550] sm:$0xff]  }
 0x6d2   :  { %7986 = vmatprep.subr.bf16.mxu1 %v15016_v24  ;;  %v14781_v16 = vld [vmem:[%s18553_s7 + $0x850] sm:$0xff]  }
 0x6d4   :  { %13887 = vmatpush3.bf16.msra.mxu0 %v14746_v38  ;;  %v9336_v38 = vrot.slane %v17227_v3, 4 }
 0x6d5   :  { %7987 = vmatpush1.bf16.msra.mxu1 %v14747_v42  ;;  %8923 = vmatprep.subr.bf16.mxu0 %v15016_v24  ;;  %v14783_v42 = vld [vmem:[%s18553_s7 + $0x588] sm:$0xff]  }
 0x6d6   :  { %7988 = vmatprep.subr.bf16.mxu1 %v15016_v24 }
 0x6d7   :  { %8916 = vmatmul.mubr.bf16.vlgmr.msra.gmra.mxu0 %v8705_v59  ;;  %v14784_v59 = vld [vmem:[%s18553_s7 + $0x548] sm:$0xff]  }
 0x6d8   :  { %8924 = vmatpush1.bf16.msra.mxu0 %v14748_v55  ;;  %12879 = vmatprep.mubr.msk.bf16.mxu0 %vm1314_vm4, %v8708_v57  ;;  %v14782_v55 = vld [vmem:[%s18553_s7 + $0x810] sm:$0xff]   ;;  %v14787_v57 = vld [vmem:[%s18553_s7 + $0x580] sm:$0xff]  }
 0x6d9   :  { %7989 = vmatpush1.bf16.msra.mxu1 %v14749_v31  ;;  %8925 = vmatprep.subr.bf16.mxu0 %v15016_v24  ;;  %v14785_v31 = vld [vmem:[%s18553_s7 + $0x848] sm:$0xff]  }
 0x6da   :  { %7990 = vmatprep.subr.bf16.mxu1 %v15016_v24 }
 0x6dc   :  { %8926 = vmatpush1.bf16.msra.mxu0 %v14750_v46  ;;  %v14786_v46 = vld [vmem:[%s18553_s7 + $0x808] sm:$0xff]  }
 0x6dd   :  { %7991 = vmatpush1.bf16.msra.mxu1 %v14751_v49  ;;  %8927 = vmatprep.subr.bf16.mxu0 %v15016_v24  ;;  %v14788_v49 = vld [vmem:[%s18553_s7 + $0x540] sm:$0xff]  }
 0x6de   :  { %7992 = vmatprep.subr.bf16.mxu1 %v15016_v24 }
 0x6e0   :  { %8928 = vmatpush1.bf16.msra.mxu0 %v14752_v13  ;;  %v14789_v13 = vld [vmem:[%s18553_s7 + $0x840] sm:$0xff]  }
 0x6e1   :  { %7993 = vmatpush1.bf16.msra.mxu1 %v14753_v44  ;;  %8929 = vmatprep.subr.bf16.mxu0 %v15016_v24  ;;  %v14790_v44 = vld [vmem:[%s18553_s7 + $0x800] sm:$0xff]  }
 0x6e2   :  { %8002 = vmatprep.subr.bf16.mxu1 %v15016_v24 }
 0x6e4   :  { %8930 = vmatpush1.bf16.msra.mxu0 %v14754_v60  ;;  %v14791_v60 = vld [vmem:[%s18553_s7 + $0x5f8] sm:$0xff]  }
 0x6e5   :  { %8003 = vmatpush2.bf16.msra.mxu1 %v14755_v61  ;;  %8931 = vmatprep.subr.bf16.mxu0 %v15016_v24  ;;  %v8390_v61 = vrot.slane %v17222_v56, 3 }
 0x6e6   :  { %8004 = vmatprep.subr.bf16.mxu1 %v15016_v24 }
 0x6e8   :  { %8932 = vmatpush1.bf16.msra.mxu0 %v14756_v10  ;;  %v14792_v10 = vld [vmem:[%s18553_s7 + $0x838] sm:$0xff]  }
 0x6e9   :  { %8005 = vmatpush2.bf16.msra.mxu1 %v14757_v39  ;;  %8933 = vmatprep.subr.bf16.mxu0 %v15016_v24  ;;  %v8393_v39 = vrot.slane %v17036_v34, 3 }
 0x6ea   :  { %8006 = vmatprep.subr.bf16.mxu1 %v15016_v24 }
 0x6ec   :  { %8934 = vmatpush1.bf16.msra.mxu0 %v14758_v15 }
 0x6ed   :  { %8007 = vmatpush2.bf16.msra.mxu1 %v14759_v8  ;;  %8935 = vmatprep.subr.bf16.mxu0 %v15016_v24  ;;  %v14793_v8 = vld [vmem:[%s18553_s7 + $0x7f8] sm:$0xff]  }
 0x6ee   :  { %8008 = vmatprep.subr.bf16.mxu1 %v15016_v24 }
 0x6f0   :  { %8936 = vmatpush1.bf16.msra.mxu0 %v14760_v23  ;;  %v14794_v23 = vld [vmem:[%s18553_s7 + $0x5f0] sm:$0xff]  }
 0x6f1   :  { %8009 = vmatpush2.bf16.msra.mxu1 %v14761_v48  ;;  %8937 = vmatprep.subr.bf16.mxu0 %v15016_v24  ;;  %v14795_v48 = vld [vmem:[%s18553_s7 + $0x830] sm:$0xff]  }
 0x6f2   :  { %13850 = vmatprep.subr.bf16.mxu1 %v14763_v28 }
 0x6f4   :  { %8938 = vmatpush1.bf16.msra.mxu0 %v14762_v0  ;;  %8011 = vmatmul.mubr.bf16.vlgmr.msra.gmra.mxu1 %v7762_v40  ;;  %v13734_v36 = vpop.f32.mrf.mxu1 }
 0x6f5   :  { %13851 = vmatpush3.bf16.msra.mxu1 %v14764_v54  ;;  %8600 = vmatprep.mubr.bf16.mxu1 %v8391_v62  ;;  %v14796_v62 = vld [vmem:[%s18553_s7 + $0x7f0] sm:$0xff]  }
 0x6f6   :  { %8947 = vmatprep.subr.bf16.mxu0 %v15016_v24  ;;  %v13735_v2 = vpop.f32.mrf.mxu1  ;;  %13852 = vmatprep.subr.bf16.mxu1 %v14766_v41 }
 0x6f7   :  { %v17747_v4 = vadd.f32 %v13735_v2, %v13734_v36  ;;  %v13800_v18 = vpop.f32.mrf.mxu0  ;;  %v14799_v2 = vld [vmem:[%s18553_s7 + $0x7e8] sm:$0xff]  }
 0x6f8   :  { %8948 = vmatpush2.bf16.msra.mxu0 %v14765_v5  ;;  %v13737_v33 = vpop.f32.mrf.mxu1  ;;  %v14797_v5 = vld [vmem:[%s18553_s7 + $0x5e8] sm:$0xff]  }
 0x6f9   :  { %v13801_v9 = vpop.f32.mrf.mxu0  ;;  %13853 = vmatpush3.bf16.msra.mxu1 %v14767_v27  ;;  %8949 = vmatprep.subr.bf16.mxu0 %v15016_v24  ;;  %v6815_v0 = vadd.f32 %v17747_v4, %v17217_v50  ;;  %v14798_v50 = vld [vmem:[%s18553_s7 + $0x828] sm:$0xff]   ;;  %v14801_v4 = vld [vmem:[%s18553_s7 + $0x820] sm:$0xff]   ;;  %v14803_v33 = vld [vmem:[%s18553_s7 + $0x5d8] sm:$0xff]  }
 0x6fa   :  { %v17756_v14 = vadd.f32 %v13801_v9, %v13800_v18  ;;  %v13738_v22 = vpop.f32.mrf.mxu1  ;;  %13854 = vmatprep.subr.bf16.mxu1 %v14769_v45  ;;  %v14800_v45 = vld [vmem:[%s18553_s7 + $0x5e0] sm:$0xff]   ;;  %v9335_v9 = vrot.slane %v17230_v7, 4 }
 0x6fb   :  { %v13803_v12 = vpop.f32.mrf.mxu0  ;;  %v14802_v18 = vld [vmem:[%s18553_s7 + $0x7e0] sm:$0xff]  }
 0x6fc   :  { %8950 = vmatpush2.bf16.msra.mxu0 %v14768_v43  ;;  %v14804_v43 = vld [vmem:[%s18553_s7 + $0x898] sm:$0xff]  }
 0x6fd   :  { %v13804_v29 = vpop.f32.mrf.mxu0  ;;  %13855 = vmatpush3.bf16.msra.mxu1 %v14770_v1  ;;  %8951 = vmatprep.subr.bf16.mxu0 %v15016_v24  ;;  %v14805_v1 = vld [vmem:[%s18553_s7 + $0x5d0] sm:$0xff]  }
 0x6fe   :  { %13856 = vmatprep.subr.bf16.mxu1 %v14772_v37  ;;  %v9338_v37 = vrot.slane %v17039_v51, 4 }
 0x700   :  { %8952 = vmatpush2.bf16.msra.mxu0 %v14771_v63 }
 0x701   :  { %13857 = vmatpush3.bf16.msra.mxu1 %v14773_v30  ;;  %8953 = vmatprep.subr.bf16.mxu0 %v15016_v24  ;;  %v14806_v30 = vld [vmem:[%s18553_s7 + $0x890] sm:$0xff]  }
 0x702   :  { %13858 = vmatprep.subr.bf16.mxu1 %v14775_v25 }
 0x704   :  { %8954 = vmatpush2.bf16.msra.mxu0 %v14774_v26 }
 0x705   :  { %13859 = vmatpush3.bf16.msra.mxu1 %v14776_v47  ;;  %13916 = vmatprep.subr.bf16.mxu0 %v14777_v20  ;;  %v14807_v47 = vld [vmem:[%s18553_s7 + $0x5c8] sm:$0xff]  }
 0x706   :  { %13860 = vmatprep.subr.bf16.mxu1 %v14779_v52  ;;  %v14808_v20 = vld [vmem:[%s18553_s7 + $0x888] sm:$0xff]  }
 0x707   :  { %8956 = vmatmul.mubr.bf16.vlgmr.msra.gmra.mxu0 %v8707_v6  ;;  %v14811_v6 = vld [vmem:[%s18553_s7 + $0x618] sm:$0xff]  }
 0x708   :  { %13917 = vmatpush3.bf16.msra.mxu0 %v14778_v21  ;;  %9545 = vmatprep.mubr.bf16.mxu0 %v9336_v38  ;;  %v14810_v21 = vld [vmem:[%s18553_s7 + $0x880] sm:$0xff]   ;;  %v14813_v38 = vld [vmem:[%s18553_s7 + $0x610] sm:$0xff]  }
 0x709   :  { %13861 = vmatpush3.bf16.msra.mxu1 %v14780_v17  ;;  %13918 = vmatprep.subr.bf16.mxu0 %v14781_v16  ;;  %v14812_v16 = vld [vmem:[%s18553_s7 + $0x878] sm:$0xff]  }
 0x70a   :  { %13862 = vmatprep.subr.bf16.mxu1 %v14783_v42 }
 0x70c   :  { %13919 = vmatpush3.bf16.msra.mxu0 %v14782_v55 }
 0x70d   :  { %13863 = vmatpush3.bf16.msra.mxu1 %v14784_v59  ;;  %13920 = vmatprep.subr.bf16.mxu0 %v14785_v31  ;;  %v14814_v31 = vld [vmem:[%s18553_s7 + $0x870] sm:$0xff]  }
 0x70e   :  { %13864 = vmatprep.subr.bf16.mxu1 %v14787_v57  ;;  %v14815_v57 = vld [vmem:[%s18553_s7 + $0x608] sm:$0xff]  }
 0x710   :  { %13921 = vmatpush3.bf16.msra.mxu0 %v14786_v46 }
 0x711   :  { %13865 = vmatpush3.bf16.msra.mxu1 %v14788_v49  ;;  %13922 = vmatprep.subr.bf16.mxu0 %v14789_v13  ;;  %v14816_v49 = vld [vmem:[%s18553_s7 + $0x868] sm:$0xff]   ;;  %v14817_v13 = vld [vmem:[%s18553_s7 + $0x600] sm:$0xff]  }
 0x712   :  { %8608 = vmatprep.subr.bf16.mxu1 %v15016_v24 }
 0x714   :  { %13923 = vmatpush3.bf16.msra.mxu0 %v14790_v44  ;;  %v13756_v15 = vpop.f32.mrf.mxu1  ;;  %8601 = vmatmul.mubr.bf16.vlgmr.msra.gmra.mxu1 %v8390_v61  ;;  %v14819_v44 = vld [vmem:[%s18553_s7 + $0x778] sm:$0xff]  }
 0x715   :  { %8609 = vmatpush1.bf16.msra.mxu1 %v14791_v60  ;;  %12794 = vmatprep.mubr.msk.bf16.mxu1 %vm1314_vm4, %v8393_v39  ;;  %v14818_v60 = vld [vmem:[%s18553_s7 + $0x860] sm:$0xff]   ;;  %v14820_v61 = vld [vmem:[%s18553_s7 + $0x738] sm:$0xff]   ;;  %v14822_v39 = vld [vmem:[%s18553_s7 + $0x770] sm:$0xff]  }
 0x716   :  { %v13757_v28 = vpop.f32.mrf.mxu1  ;;  %13924 = vmatprep.subr.bf16.mxu0 %v14792_v10  ;;  %8610 = vmatprep.subr.bf16.mxu1 %v15016_v24  ;;  %v8392_v10 = vrot.slane %v17034_v35, 3 }
 0x717   :  { %v13758_v54 = vadd.f32 %v13757_v28, %v13756_v15  ;;  %v9021_v15 = vrot.slane %v17224_v58, 4 }
 0x718   :  { %13925 = vmatpush3.bf16.msra.mxu0 %v14793_v8  ;;  %v13759_v40 = vpop.f32.mrf.mxu1  ;;  %v5562_v41 = vpop.xlane.xlu1 %5561  ;;  %v14821_v8 = vld [vmem:[%s18553_s7 + $0x8b8] sm:$0xff]  }
 0x719   :  { %v17847_v36 = vadd.f32 %v13758_v54, %v6815_v0  ;;  %8611 = vmatpush1.bf16.msra.mxu1 %v14794_v23  ;;  %14985 = vlog2.f32 %v5562_v41  ;;  %13926 = vmatprep.subr.bf16.mxu0 %v14795_v48  ;;  %v14823_v23 = vld [vmem:[%s18553_s7 + $0x730] sm:$0xff]   ;;  %v14825_v48 = vld [vmem:[%s18553_s7 + $0x768] sm:$0xff]  }
 0x71a   :  { %v13760_v27 = vpop.f32.mrf.mxu1  ;;  %8612 = vmatprep.subr.bf16.mxu1 %v15016_v24  ;;  %v14824_v0 = vld [vmem:[%s18553_s7 + $0x8b0] sm:$0xff]   ;;  %v14826_v40 = vld [vmem:[%s18553_s7 + $0x728] sm:$0xff]  }
 0x71c   :  { %13927 = vmatpush3.bf16.msra.mxu0 %v14796_v62  ;;  %v14828_v62 = vld [vmem:[%s18553_s7 + $0x760] sm:$0xff]  }
 0x71d   :  { %8613 = vmatpush1.bf16.msra.mxu1 %v14797_v5  ;;  %13928 = vmatprep.subr.bf16.mxu0 %v14798_v50  ;;  %v14827_v50 = vld [vmem:[%s18553_s7 + $0x8a8] sm:$0xff]  }
 0x71e   :  { %8614 = vmatprep.subr.bf16.mxu1 %v15016_v24 }
 0x720   :  { %13929 = vmatpush3.bf16.msra.mxu0 %v14799_v2  ;;  %v14829_v2 = vld [vmem:[%s18553_s7 + $0x720] sm:$0xff]  }
 0x721   :  { %8615 = vmatpush1.bf16.msra.mxu1 %v14800_v45  ;;  %13930 = vmatprep.subr.bf16.mxu0 %v14801_v4  ;;  %v14831_v45 = vld [vmem:[%s18553_s7 + $0x758] sm:$0xff]   ;;  %v14830_v4 = vld [vmem:[%s18553_s7 + $0x8a0] sm:$0xff]  }
 0x722   :  { %8616 = vmatprep.subr.bf16.mxu1 %v15016_v24 }
 0x724   :  { %13931 = vmatpush3.bf16.msra.mxu0 %v14802_v18  ;;  %v14832_v18 = vld [vmem:[%s18553_s7 + $0x718] sm:$0xff]  }
 0x725   :  { %8617 = vmatpush1.bf16.msra.mxu1 %v14803_v33  ;;  %9553 = vmatprep.subr.bf16.mxu0 %v15016_v24  ;;  %v14833_v33 = vld [vmem:[%s18553_s7 + $0xa18] sm:$0xff]  }
 0x726   :  { %v14986_v22 = vpop.eup %14985  ;;  %8618 = vmatprep.subr.bf16.mxu1 %v15016_v24 }
 0x727   :  { %v5564_v12 = vmul.f32 0.6931472, %v14986_v22  ;;  %v7697_v63 = vpop.f32.mrf.mxu0  ;;  %9546 = vmatmul.mubr.bf16.vlgmr.msra.gmra.mxu0 %v9335_v9  ;;  %v14834_v9 = vld [vmem:[%s18553_s7 + $0x9d8] sm:$0xff]   ;;  %v14836_v22 = vld [vmem:[%s18553_s7 + $0x710] sm:$0xff]  }
 0x728   :  { %v17884_v29 = vadd.f32 %v17756_v14, %v7697_v63  ;;  %9554 = vmatpush1.bf16.msra.mxu0 %v14804_v43  ;;  %13049 = vmatprep.mubr.msk.bf16.mxu0 %vm1314_vm4, %v9338_v37  ;;  %v14835_v43 = vld [vmem:[%s18553_s7 + $0x750] sm:$0xff]   ;;  %v14839_v63 = vld [vmem:[%s18553_s7 + $0x748] sm:$0xff]  }
 0x729   :  { %v5565_v25 = vsub.f32 %v17440_v19, %v5564_v12  ;;  %v7699_v26 = vpop.f32.mrf.mxu0  ;;  %8619 = vmatpush1.bf16.msra.mxu1 %v14805_v1  ;;  %9555 = vmatprep.subr.bf16.mxu0 %v15016_v24  ;;  %v14809_v19 = vld [vmem:[%s18553_s7 + $0x5c0] sm:$0xff]   ;;  %v9337_v1 = vrot.slane %v17045_v11, 4  ;;  %v14837_v37 = vld [vmem:[%s18553_s7 + $0xa10] sm:$0xff]   ;;  %v9966_v12 = vrot.slane %v17227_v3, 5 }
 0x72a   :  { %8620 = vmatprep.subr.bf16.mxu1 %v15016_v24  ;;  %v14841_v26 = vld [vmem:[%s18553_s7 + $0xa08] sm:$0xff]  }
 0x72b   :  { %5566 = vst.msk [vmem:[#allocation2] sm:$0x1] %vm5553_vm6, %v5565_v25  ;;  %v7700_v14 = vpop.f32.mrf.mxu0  ;;  %v14840_v25 = vld [vmem:[%s18553_s7 + $0x708] sm:$0xff]  }
 0x72c   :  { %9556 = vmatpush1.bf16.msra.mxu0 %v14806_v30  ;;  %v14838_v30 = vld [vmem:[%s18553_s7 + $0x9d0] sm:$0xff]   ;;  %v14842_v14 = vld [vmem:[%s18553_s7 + $0x9c8] sm:$0xff]  }
 0x72d   :  { %v7701_v52 = vpop.f32.mrf.mxu0  ;;  %8621 = vmatpush1.bf16.msra.mxu1 %v14807_v47  ;;  %9557 = vmatprep.subr.bf16.mxu0 %v15016_v24  ;;  %v14843_v47 = vld [vmem:[%s18553_s7 + $0x740] sm:$0xff]  }
 0x72e   :  { %8622 = vmatprep.subr.bf16.mxu1 %v15016_v24  ;;  %v14845_v52 = vld [vmem:[%s18553_s7 + $0xa00] sm:$0xff]  }
 0x730   :  { %9558 = vmatpush1.bf16.msra.mxu0 %v14808_v20  ;;  %v14844_v20 = vld [vmem:[%s18553_s7 + $0x700] sm:$0xff]  }
 0x731   :  { %8623 = vmatpush1.bf16.msra.mxu1 %v14809_v19  ;;  %9559 = vmatprep.subr.bf16.mxu0 %v15016_v24  ;;  %v14846_v19 = vld [vmem:[%s18553_s7 + $0x9c0] sm:$0xff]  }
 0x732   :  { %8632 = vmatprep.subr.bf16.mxu1 %v15016_v24 }
 0x734   :  { %9560 = vmatpush1.bf16.msra.mxu0 %v14810_v21  ;;  %v13778_v17 = vpop.f32.mrf.mxu1  ;;  %v14847_v21 = vld [vmem:[%s18553_s7 + $0x7b8] sm:$0xff]  }
 0x735   :  { %8633 = vmatpush2.bf16.msra.mxu1 %v14811_v6  ;;  %9561 = vmatprep.subr.bf16.mxu0 %v15016_v24  ;;  %v9020_v6 = vrot.slane %v17222_v56, 4 }
 0x736   :  { %v13779_v42 = vpop.f32.mrf.mxu1  ;;  %8634 = vmatprep.subr.bf16.mxu1 %v15016_v24 }
 0x737   :  { %v17921_v55 = vadd.f32 %v13779_v42, %v13778_v17  ;;  %v14848_v17 = vld [vmem:[%s18553_s7 + $0x9f8] sm:$0xff]  }
 0x738   :  { %9562 = vmatpush1.bf16.msra.mxu0 %v14812_v16  ;;  %v13781_v59 = vpop.f32.mrf.mxu1  ;;  %v9023_v16 = vrot.slane %v17036_v34, 4  ;;  %v14849_v42 = vld [vmem:[%s18553_s7 + $0x9b8] sm:$0xff]  }
 0x739   :  { %8635 = vmatpush2.bf16.msra.mxu1 %v14813_v38  ;;  %9563 = vmatprep.subr.bf16.mxu0 %v15016_v24  ;;  %v7065_v59 = vadd.f32 %v17339_v32, %v17847_v36  ;;  %v14852_v36 = vld [vmem:[%s18553_s7 + $0x9b0] sm:$0xff]  }
 0x73a   :  { %v13782_v46 = vpop.f32.mrf.mxu1  ;;  %8636 = vmatprep.subr.bf16.mxu1 %v15016_v24 }
 0x73b   :  { %v14851_v46 = vld [vmem:[%s18553_s7 + $0x9f0] sm:$0xff]  }
 0x73c   :  { %9564 = vmatpush1.bf16.msra.mxu0 %v14814_v31 }
 0x73d   :  { %8637 = vmatpush2.bf16.msra.mxu1 %v14815_v57  ;;  %9565 = vmatprep.subr.bf16.mxu0 %v15016_v24  ;;  %v14850_v57 = vld [vmem:[%s18553_s7 + $0x7b0] sm:$0xff]  }
 0x73e   :  { %8638 = vmatprep.subr.bf16.mxu1 %v15016_v24 }
 0x740   :  { %9566 = vmatpush1.bf16.msra.mxu0 %v14816_v49 }
 0x741   :  { %8639 = vmatpush2.bf16.msra.mxu1 %v14817_v13  ;;  %9567 = vmatprep.subr.bf16.mxu0 %v15016_v24 }
 0x742   :  { %13894 = vmatprep.subr.bf16.mxu1 %v14819_v44  ;;  %v14854_v44 = vld [vmem:[%s18553_s7 + $0x9e8] sm:$0xff]  }
 0x744   :  { %9568 = vmatpush1.bf16.msra.mxu0 %v14818_v60  ;;  %8641 = vmatmul.mubr.bf16.vlgmr.msra.gmra.mxu1 %v8392_v10  ;;  %v14855_v10 = vld [vmem:[%s18553_s7 + $0x9a8] sm:$0xff]  }
 0x745   :  { %13895 = vmatpush3.bf16.msra.mxu1 %v14820_v61  ;;  %9230 = vmatprep.mubr.bf16.mxu1 %v9021_v15  ;;  %v14857_v15 = vld [vmem:[%s18553_s7 + $0x9e0] sm:$0xff]  }
 0x746   :  { %9577 = vmatprep.subr.bf16.mxu0 %v15016_v24  ;;  %13896 = vmatprep.subr.bf16.mxu1 %v14822_v39  ;;  %v14856_v39 = vld [vmem:[%s18553_s7 + $0x7a0] sm:$0xff]  }
 0x747   :  { %v13844_v28 = vpop.f32.mrf.mxu0 }
 0x748   :  { %9578 = vmatpush2.bf16.msra.mxu0 %v14821_v8  ;;  %v14859_v8 = vld [vmem:[%s18553_s7 + $0x798] sm:$0xff]  }
 0x749   :  { %v13845_v54 = vpop.f32.mrf.mxu0  ;;  %13897 = vmatpush3.bf16.msra.mxu1 %v14823_v23  ;;  %9579 = vmatprep.subr.bf16.mxu0 %v15016_v24  ;;  %v14860_v23 = vld [vmem:[%s18553_s7 + $0xa58] sm:$0xff]  }
 0x74a   :  { %v17971_v41 = vadd.f32 %v13845_v54, %v13844_v28  ;;  %13898 = vmatprep.subr.bf16.mxu1 %v14825_v48  ;;  %v9965_v48 = vrot.slane %v17230_v7, 5  ;;  %v14861_v28 = vld [vmem:[%s18553_s7 + $0x790] sm:$0xff]  }
 0x74b   :  { %v13847_v5 = vpop.f32.mrf.mxu0 }
 0x74c   :  { %9580 = vmatpush2.bf16.msra.mxu0 %v14824_v0  ;;  %v9968_v0 = vrot.slane %v17039_v51, 5 }
 0x74d   :  { %v13848_v27 = vpop.f32.mrf.mxu0  ;;  %13899 = vmatpush3.bf16.msra.mxu1 %v14826_v40  ;;  %9581 = vmatprep.subr.bf16.mxu0 %v15016_v24 }
 0x74e   :  { %13900 = vmatprep.subr.bf16.mxu1 %v14828_v62  ;;  %v14862_v62 = vld [vmem:[%s18553_s7 + $0xa50] sm:$0xff]  }
 0x750   :  { %9582 = vmatpush2.bf16.msra.mxu0 %v14827_v50  ;;  %v14863_v50 = vld [vmem:[%s18553_s7 + $0x788] sm:$0xff]  }
 0x751   :  { %13901 = vmatpush3.bf16.msra.mxu1 %v14829_v2  ;;  %9583 = vmatprep.subr.bf16.mxu0 %v15016_v24 }
 0x752   :  { %13902 = vmatprep.subr.bf16.mxu1 %v14831_v45  ;;  %v14865_v45 = vld [vmem:[%s18553_s7 + $0x780] sm:$0xff]  }
 0x754   :  { %9584 = vmatpush2.bf16.msra.mxu0 %v14830_v4  ;;  %v14866_v4 = vld [vmem:[%s18553_s7 + $0xa40] sm:$0xff]  }
 0x755   :  { %13903 = vmatpush3.bf16.msra.mxu1 %v14832_v18  ;;  %13960 = vmatprep.subr.bf16.mxu0 %v14833_v33  ;;  %v14867_v18 = vld [vmem:[%s18553_s7 + $0x7d8] sm:$0xff]  }
 0x756   :  { %13904 = vmatprep.subr.bf16.mxu1 %v14835_v43  ;;  %v14868_v43 = vld [vmem:[%s18553_s7 + $0xa38] sm:$0xff]  }
 0x757   :  { %9586 = vmatmul.mubr.bf16.vlgmr.msra.gmra.mxu0 %v9337_v1 }
 0x758   :  { %13961 = vmatpush3.bf16.msra.mxu0 %v14834_v9  ;;  %10175 = vmatprep.mubr.bf16.mxu0 %v9966_v12  ;;  %v14869_v9 = vld [vmem:[%s18553_s7 + $0x7d0] sm:$0xff]  }
 0x759   :  { %13905 = vmatpush3.bf16.msra.mxu1 %v14836_v22  ;;  %13962 = vmatprep.subr.bf16.mxu0 %v14837_v37  ;;  %v14870_v12 = vld [vmem:[%s18553_s7 + $0xa30] sm:$0xff]  }
 0x75a   :  { %13906 = vmatprep.subr.bf16.mxu1 %v14839_v63  ;;  %v14871_v63 = vld [vmem:[%s18553_s7 + $0x7c8] sm:$0xff]  }
 0x75c   :  { %13963 = vmatpush3.bf16.msra.mxu0 %v14838_v30 }
 0x75d   :  { %13907 = vmatpush3.bf16.msra.mxu1 %v14840_v25  ;;  %13964 = vmatprep.subr.bf16.mxu0 %v14841_v26  ;;  %v14872_v25 = vld [vmem:[%s18553_s7 + $0xa28] sm:$0xff]   ;;  %v14873_v26 = vld [vmem:[%s18553_s7 + $0x7c0] sm:$0xff]  }
 0x75e   :  { %13908 = vmatprep.subr.bf16.mxu1 %v14843_v47  ;;  %v14875_v47 = vld [vmem:[%s18553_s7 + $0x938] sm:$0xff]  }
 0x760   :  { %13965 = vmatpush3.bf16.msra.mxu0 %v14842_v14  ;;  %v14874_v14 = vld [vmem:[%s18553_s7 + $0xa20] sm:$0xff]  }
 0x761   :  { %13909 = vmatpush3.bf16.msra.mxu1 %v14844_v20  ;;  %13966 = vmatprep.subr.bf16.mxu0 %v14845_v52  ;;  %v14876_v20 = vld [vmem:[%s18553_s7 + $0x8f8] sm:$0xff]   ;;  %v9022_v52 = vrot.slane %v17034_v35, 4 }
 0x762   :  { %9238 = vmatprep.subr.bf16.mxu1 %v15016_v24 }
 0x764   :  { %13967 = vmatpush3.bf16.msra.mxu0 %v14846_v19  ;;  %v7382_v38 = vpop.f32.mrf.mxu1  ;;  %9231 = vmatmul.mubr.bf16.vlgmr.msra.gmra.mxu1 %v9020_v6  ;;  %v14878_v19 = vld [vmem:[%s18553_s7 + $0x930] sm:$0xff]   ;;  %v14877_v6 = vld [vmem:[%s18553_s7 + $0xa78] sm:$0xff]  }
 0x765   :  { %v7383_v31 = vadd.f32 %v17921_v55, %v7382_v38  ;;  %9239 = vmatpush1.bf16.msra.mxu1 %v14847_v21  ;;  %12964 = vmatprep.mubr.msk.bf16.mxu1 %vm1314_vm4, %v9023_v16  ;;  %v14853_v55 = vld [vmem:[%s18553_s7 + $0x7a8] sm:$0xff]   ;;  %v9651_v21 = vrot.slane %v17224_v58, 5 }
 0x766   :  { %v7384_v49 = vpop.f32.mrf.mxu1  ;;  %13968 = vmatprep.subr.bf16.mxu0 %v14848_v17  ;;  %9240 = vmatprep.subr.bf16.mxu1 %v15016_v24  ;;  %v14879_v17 = vld [vmem:[%s18553_s7 + $0x8f0] sm:$0xff]   ;;  %v14881_v16 = vld [vmem:[%s18553_s7 + $0x928] sm:$0xff]  }
 0x767   :  { %v7388_v13 = vadd.f32 %v7383_v31, %v7065_v59  ;;  %v14882_v31 = vld [vmem:[%s18553_s7 + $0x8e8] sm:$0xff]  }
 0x768   :  { %13969 = vmatpush3.bf16.msra.mxu0 %v14849_v42  ;;  %v7385_v32 = vpop.f32.mrf.mxu1  ;;  %v14880_v42 = vld [vmem:[%s18553_s7 + $0xa70] sm:$0xff]  }
 0x769   :  { %9241 = vmatpush1.bf16.msra.mxu1 %v14850_v57  ;;  %13970 = vmatprep.subr.bf16.mxu0 %v14851_v46  ;;  %v18070_v60 = vadd.f32 %v17884_v29, %v7388_v13  ;;  %v14858_v29 = vld [vmem:[%s18553_s7 + $0x9a0] sm:$0xff]   ;;  %v14883_v13 = vld [vmem:[%s18553_s7 + $0xa68] sm:$0xff]  }
 0x76a   :  { %v7386_v61 = vpop.f32.mrf.mxu1  ;;  %9242 = vmatprep.subr.bf16.mxu1 %v15016_v24  ;;  %v14884_v46 = vld [vmem:[%s18553_s7 + $0x920] sm:$0xff]  }
 0x76b   :  { %v14888_v61 = vld [vmem:[%s18553_s7 + $0x8d8] sm:$0xff]  }
 0x76c   :  { %13971 = vmatpush3.bf16.msra.mxu0 %v14852_v36  ;;  %v14885_v36 = vld [vmem:[%s18553_s7 + $0x8e0] sm:$0xff]  }
 0x76d   :  { %9243 = vmatpush1.bf16.msra.mxu1 %v14853_v55  ;;  %13972 = vmatprep.subr.bf16.mxu0 %v14854_v44  ;;  %v14887_v55 = vld [vmem:[%s18553_s7 + $0x918] sm:$0xff]   ;;  %v14886_v44 = vld [vmem:[%s18553_s7 + $0xa60] sm:$0xff]  }
 0x76e   :  { %9244 = vmatprep.subr.bf16.mxu1 %v15016_v24 }
 0x770   :  { %13973 = vmatpush3.bf16.msra.mxu0 %v14855_v10  ;;  %v14889_v10 = vld [vmem:[%s18553_s7 + $0xbd8] sm:$0xff]  }
 0x771   :  { %9245 = vmatpush1.bf16.msra.mxu1 %v14856_v39  ;;  %13974 = vmatprep.subr.bf16.mxu0 %v14857_v15  ;;  %v14891_v39 = vld [vmem:[%s18553_s7 + $0x910] sm:$0xff]   ;;  %v14890_v15 = vld [vmem:[%s18553_s7 + $0xb98] sm:$0xff]  }
 0x772   :  { %9246 = vmatprep.subr.bf16.mxu1 %v15016_v24 }
 0x774   :  { %13975 = vmatpush3.bf16.msra.mxu0 %v14858_v29  ;;  %v9967_v29 = vrot.slane %v17045_v11, 5 }
 0x775   :  { %9247 = vmatpush1.bf16.msra.mxu1 %v14859_v8  ;;  %10183 = vmatprep.subr.bf16.mxu0 %v15016_v24  ;;  %v14892_v8 = vld [vmem:[%s18553_s7 + $0x8d0] sm:$0xff]  }
 0x776   :  { %9248 = vmatprep.subr.bf16.mxu1 %v15016_v24 }
 0x777   :  { %v8327_v54 = vpop.f32.mrf.mxu0  ;;  %10176 = vmatmul.mubr.bf16.vlgmr.msra.gmra.mxu0 %v9965_v48  ;;  %v10596_v48 = vrot.slane %v17227_v3, 6  ;;  %v14897_v3 = vld [vmem:[%s18553_s7 + $0xbc8] sm:$0xff]  }
 0x778   :  { %v18101_v40 = vadd.f32 %v17971_v41, %v8327_v54  ;;  %10184 = vmatpush1.bf16.msra.mxu0 %v14860_v23  ;;  %13219 = vmatprep.mubr.msk.bf16.mxu0 %vm1314_vm4, %v9968_v0  ;;  %v14864_v41 = vld [vmem:[%s18553_s7 + $0xa48] sm:$0xff]   ;;  %v14893_v23 = vld [vmem:[%s18553_s7 + $0xbd0] sm:$0xff]  }
 0x779   :  { %v8329_v5 = vpop.f32.mrf.mxu0  ;;  %9249 = vmatpush1.bf16.msra.mxu1 %v14861_v28  ;;  %10185 = vmatprep.subr.bf16.mxu0 %v15016_v24  ;;  %v14895_v28 = vld [vmem:[%s18553_s7 + $0x908] sm:$0xff]   ;;  %v14894_v0 = vld [vmem:[%s18553_s7 + $0xb90] sm:$0xff]  }
 0x77a   :  { %9250 = vmatprep.subr.bf16.mxu1 %v15016_v24  ;;  %v14896_v54 = vld [vmem:[%s18553_s7 + $0x8c8] sm:$0xff]  }
 0x77b   :  { %v8330_v27 = vpop.f32.mrf.mxu0  ;;  %v14898_v5 = vld [vmem:[%s18553_s7 + $0xb88] sm:$0xff]  }
 0x77c   :  { %10186 = vmatpush1.bf16.msra.mxu0 %v14862_v62  ;;  %v14899_v62 = vld [vmem:[%s18553_s7 + $0x900] sm:$0xff]  }
 0x77d   :  { %v8331_v2 = vpop.f32.mrf.mxu0  ;;  %9251 = vmatpush1.bf16.msra.mxu1 %v14863_v50  ;;  %10187 = vmatprep.subr.bf16.mxu0 %v15016_v24  ;;  %v14900_v50 = vld [vmem:[%s18553_s7 + $0x8c0] sm:$0xff]  }
 0x77e   :  { %9252 = vmatprep.subr.bf16.mxu1 %v15016_v24  ;;  %v14901_v27 = vld [vmem:[%s18553_s7 + $0xbc0] sm:$0xff]   ;;  %v14903_v2 = vld [vmem:[%s18553_s7 + $0x978] sm:$0xff]  }
 0x780   :  { %10188 = vmatpush1.bf16.msra.mxu0 %v14864_v41  ;;  %v14902_v41 = vld [vmem:[%s18553_s7 + $0xb80] sm:$0xff]  }
 0x781   :  { %9253 = vmatpush1.bf16.msra.mxu1 %v14865_v45  ;;  %10189 = vmatprep.subr.bf16.mxu0 %v15016_v24  ;;  %v9650_v45 = vrot.slane %v17222_v56, 5 }
 0x782   :  { %9262 = vmatprep.subr.bf16.mxu1 %v15016_v24 }
 0x784   :  { %10190 = vmatpush1.bf16.msra.mxu0 %v14866_v4  ;;  %v13822_v33 = vpop.f32.mrf.mxu1  ;;  %v14904_v4 = vld [vmem:[%s18553_s7 + $0xbb8] sm:$0xff]  }
 0x785   :  { %9263 = vmatpush2.bf16.msra.mxu1 %v14867_v18  ;;  %10191 = vmatprep.subr.bf16.mxu0 %v15016_v24  ;;  %v9653_v18 = vrot.slane %v17036_v34, 5 }
 0x786   :  { %v13823_v1 = vpop.f32.mrf.mxu1  ;;  %9264 = vmatprep.subr.bf16.mxu1 %v15016_v24 }
 0x787   :  { %v18136_v22 = vadd.f32 %v13823_v1, %v13822_v33  ;;  %v14906_v1 = vld [vmem:[%s18553_s7 + $0x970] sm:$0xff]  }
 0x788   :  { %10192 = vmatpush1.bf16.msra.mxu0 %v14868_v43  ;;  %v13825_v37 = vpop.f32.mrf.mxu1  ;;  %v14905_v43 = vld [vmem:[%s18553_s7 + $0xb78] sm:$0xff]  }
 0x789   :  { %9265 = vmatpush2.bf16.msra.mxu1 %v14869_v9  ;;  %10193 = vmatprep.subr.bf16.mxu0 %v15016_v24  ;;  %v14907_v37 = vld [vmem:[%s18553_s7 + $0xbb0] sm:$0xff]  }
 0x78a   :  { %v13826_v30 = vpop.f32.mrf.mxu1  ;;  %9266 = vmatprep.subr.bf16.mxu1 %v15016_v24 }
 0x78c   :  { %10194 = vmatpush1.bf16.msra.mxu0 %v14870_v12 }
 0x78d   :  { %9267 = vmatpush2.bf16.msra.mxu1 %v14871_v63  ;;  %10195 = vmatprep.subr.bf16.mxu0 %v15016_v24 }
 0x78e   :  { %9268 = vmatprep.subr.bf16.mxu1 %v15016_v24 }
 0x790   :  { %10196 = vmatpush1.bf16.msra.mxu0 %v14872_v25  ;;  %v14909_v25 = vld [vmem:[%s18553_s7 + $0x968] sm:$0xff]  }
 0x791   :  { %9269 = vmatpush2.bf16.msra.mxu1 %v14873_v26  ;;  %10197 = vmatprep.subr.bf16.mxu0 %v15016_v24  ;;  %v14910_v26 = vld [vmem:[%s18553_s7 + $0xba8] sm:$0xff]  }
 0x792   :  { %13938 = vmatprep.subr.bf16.mxu1 %v14875_v47 }
 0x794   :  { %10198 = vmatpush1.bf16.msra.mxu0 %v14874_v14  ;;  %9271 = vmatmul.mubr.bf16.vlgmr.msra.gmra.mxu1 %v9022_v52  ;;  %v14911_v14 = vld [vmem:[%s18553_s7 + $0xb68] sm:$0xff]   ;;  %v14913_v52 = vld [vmem:[%s18553_s7 + $0xba0] sm:$0xff]  }
 0x795   :  { %13939 = vmatpush3.bf16.msra.mxu1 %v14876_v20  ;;  %9860 = vmatprep.mubr.bf16.mxu1 %v9651_v21  ;;  %v14912_v20 = vld [vmem:[%s18553_s7 + $0x960] sm:$0xff]   ;;  %v14916_v21 = vld [vmem:[%s18553_s7 + $0xc18] sm:$0xff]  }
 0x796   :  { %10207 = vmatprep.subr.bf16.mxu0 %v15016_v24  ;;  %13940 = vmatprep.subr.bf16.mxu1 %v14878_v19  ;;  %v14915_v19 = vld [vmem:[%s18553_s7 + $0x958] sm:$0xff]  }
 0x797   :  { %v13888_v38 = vpop.f32.mrf.mxu0 }
 0x798   :  { %10208 = vmatpush2.bf16.msra.mxu0 %v14877_v6  ;;  %v10595_v6 = vrot.slane %v17230_v7, 6  ;;  %v14918_v7 = vld [vmem:[%s18553_s7 + $0xc10] sm:$0xff]  }
 0x799   :  { %v13889_v59 = vpop.f32.mrf.mxu0  ;;  %13941 = vmatpush3.bf16.msra.mxu1 %v14879_v17  ;;  %10209 = vmatprep.subr.bf16.mxu0 %v15016_v24  ;;  %v14917_v17 = vld [vmem:[%s18553_s7 + $0x950] sm:$0xff]  }
 0x79a   :  { %v18186_v57 = vadd.f32 %v13889_v59, %v13888_v38  ;;  %13942 = vmatprep.subr.bf16.mxu1 %v14881_v16  ;;  %v10598_v16 = vrot.slane %v17039_v51, 6  ;;  %v14919_v51 = vld [vmem:[%s18553_s7 + $0x948] sm:$0xff]  }
 0x79b   :  { %v13891_v49 = vpop.f32.mrf.mxu0 }
 0x79c   :  { %10210 = vmatpush2.bf16.msra.mxu0 %v14880_v42  ;;  %v14921_v49 = vld [vmem:[%s18553_s7 + $0x940] sm:$0xff]  }
 0x79d   :  { %v13892_v32 = vpop.f32.mrf.mxu0  ;;  %13943 = vmatpush3.bf16.msra.mxu1 %v14882_v31  ;;  %10211 = vmatprep.subr.bf16.mxu0 %v15016_v24 }
 0x79e   :  { %13944 = vmatprep.subr.bf16.mxu1 %v14884_v46  ;;  %v14923_v32 = vld [vmem:[%s18553_s7 + $0x998] sm:$0xff]  }
 0x7a0   :  { %10212 = vmatpush2.bf16.msra.mxu0 %v14883_v13  ;;  %v14922_v13 = vld [vmem:[%s18553_s7 + $0xc00] sm:$0xff]  }
 0x7a1   :  { %13945 = vmatpush3.bf16.msra.mxu1 %v14885_v36  ;;  %10213 = vmatprep.subr.bf16.mxu0 %v15016_v24 }
 0x7a2   :  { %13946 = vmatprep.subr.bf16.mxu1 %v14887_v55  ;;  %v14924_v55 = vld [vmem:[%s18553_s7 + $0xbf8] sm:$0xff]  }
 0x7a4   :  { %10214 = vmatpush2.bf16.msra.mxu0 %v14886_v44  ;;  %v14925_v44 = vld [vmem:[%s18553_s7 + $0x990] sm:$0xff]  }
 0x7a5   :  { %13947 = vmatpush3.bf16.msra.mxu1 %v14888_v61  ;;  %14004 = vmatprep.subr.bf16.mxu0 %v14889_v10 }
 0x7a6   :  { %13948 = vmatprep.subr.bf16.mxu1 %v14891_v39 }
 0x7a7   :  { %10216 = vmatmul.mubr.bf16.vlgmr.msra.gmra.mxu0 %v9967_v29  ;;  %v14927_v29 = vld [vmem:[%s18553_s7 + $0x988] sm:$0xff]  }
 0x7a8   :  { %14005 = vmatpush3.bf16.msra.mxu0 %v14890_v15  ;;  %10805 = vmatprep.mubr.bf16.mxu0 %v10596_v48  ;;  %v14926_v15 = vld [vmem:[%s18553_s7 + $0xbf0] sm:$0xff]   ;;  %v14929_v48 = vld [vmem:[%s18553_s7 + $0x980] sm:$0xff]  }
 0x7a9   :  { %13949 = vmatpush3.bf16.msra.mxu1 %v14892_v8  ;;  %14006 = vmatprep.subr.bf16.mxu0 %v14893_v23  ;;  %v14928_v23 = vld [vmem:[%s18553_s7 + $0xbe8] sm:$0xff]  }
 0x7aa   :  { %13950 = vmatprep.subr.bf16.mxu1 %v14895_v28  ;;  %v14931_v28 = vld [vmem:[%s18553_s7 + $0xaf8] sm:$0xff]  }
 0x7ac   :  { %14007 = vmatpush3.bf16.msra.mxu0 %v14894_v0  ;;  %v14930_v0 = vld [vmem:[%s18553_s7 + $0xbe0] sm:$0xff]  }
 0x7ad   :  { %13951 = vmatpush3.bf16.msra.mxu1 %v14896_v54  ;;  %14008 = vmatprep.subr.bf16.mxu0 %v14897_v3  ;;  %v14932_v54 = vld [vmem:[%s18553_s7 + $0xab8] sm:$0xff]   ;;  %v9652_v3 = vrot.slane %v17034_v35, 5 }
 0x7ae   :  { %13952 = vmatprep.subr.bf16.mxu1 %v14899_v62  ;;  %v14934_v62 = vld [vmem:[%s18553_s7 + $0xaf0] sm:$0xff]  }
 0x7b0   :  { %14009 = vmatpush3.bf16.msra.mxu0 %v14898_v5  ;;  %v10281_v5 = vrot.slane %v17224_v58, 6 }
 0x7b1   :  { %13953 = vmatpush3.bf16.msra.mxu1 %v14900_v50  ;;  %14010 = vmatprep.subr.bf16.mxu0 %v14901_v27  ;;  %v14933_v50 = vld [vmem:[%s18553_s7 + $0xc38] sm:$0xff]   ;;  %v14935_v27 = vld [vmem:[%s18553_s7 + $0xab0] sm:$0xff]  }
 0x7b2   :  { %9868 = vmatprep.subr.bf16.mxu1 %v15016_v24 }
 0x7b4   :  { %14011 = vmatpush3.bf16.msra.mxu0 %v14902_v41  ;;  %v8012_v33 = vpop.f32.mrf.mxu1  ;;  %9861 = vmatmul.mubr.bf16.vlgmr.msra.gmra.mxu1 %v9650_v45  ;;  %v14937_v41 = vld [vmem:[%s18553_s7 + $0xae8] sm:$0xff]  }
 0x7b5   :  { %v8013_v9 = vadd.f32 %v18136_v22, %v8012_v33  ;;  %9869 = vmatpush1.bf16.msra.mxu1 %v14903_v2  ;;  %13134 = vmatprep.mubr.msk.bf16.mxu1 %vm1314_vm4, %v9653_v18  ;;  %v14908_v22 = vld [vmem:[%s18553_s7 + $0xb70] sm:$0xff]   ;;  %v14940_v33 = vld [vmem:[%s18553_s7 + $0xae0] sm:$0xff]  }
 0x7b6   :  { %v8014_v12 = vpop.f32.mrf.mxu1  ;;  %14012 = vmatprep.subr.bf16.mxu0 %v14904_v4  ;;  %9870 = vmatprep.subr.bf16.mxu1 %v15016_v24  ;;  %v14936_v2 = vld [vmem:[%s18553_s7 + $0xc30] sm:$0xff]   ;;  %v14938_v4 = vld [vmem:[%s18553_s7 + $0xaa8] sm:$0xff]  }
 0x7b7   :  { %v8018_v63 = vadd.f32 %v8013_v9, %v18070_v60  ;;  %v14939_v9 = vld [vmem:[%s18553_s7 + $0xc28] sm:$0xff]   ;;  %v14943_v12 = vld [vmem:[%s18553_s7 + $0xad8] sm:$0xff]  }
 0x7b8   :  { %14013 = vmatpush3.bf16.msra.mxu0 %v14905_v43  ;;  %v8015_v30 = vpop.f32.mrf.mxu1 }
 0x7b9   :  { %9871 = vmatpush1.bf16.msra.mxu1 %v14906_v1  ;;  %14014 = vmatprep.subr.bf16.mxu0 %v14907_v37  ;;  %v18284_v47 = vadd.f32 %v18101_v40, %v8018_v63  ;;  %v14914_v40 = vld [vmem:[%s18553_s7 + $0xb60] sm:$0xff]   ;;  %v14944_v30 = vld [vmem:[%s18553_s7 + $0xa98] sm:$0xff]  }
 0x7ba   :  { %v8016_v60 = vpop.f32.mrf.mxu1  ;;  %9872 = vmatprep.subr.bf16.mxu1 %v15016_v24  ;;  %v14941_v37 = vld [vmem:[%s18553_s7 + $0xaa0] sm:$0xff]  }
 0x7bb   :  { %v14942_v63 = vld [vmem:[%s18553_s7 + $0xc20] sm:$0xff]   ;;  %v14947_v60 = vld [vmem:[%s18553_s7 + $0xac8] sm:$0xff]  }
 0x7bc   :  { %14015 = vmatpush3.bf16.msra.mxu0 %v14908_v22  ;;  %v14945_v22 = vld [vmem:[%s18553_s7 + $0xad0] sm:$0xff]  }
 0x7bd   :  { %9873 = vmatpush1.bf16.msra.mxu1 %v14909_v25  ;;  %14016 = vmatprep.subr.bf16.mxu0 %v14910_v26  ;;  %v10597_v25 = vrot.slane %v17045_v11, 6  ;;  %v14946_v26 = vld [vmem:[%s18553_s7 + $0xa90] sm:$0xff]   ;;  %v14949_v11 = vld [vmem:[%s18553_s7 + $0xac0] sm:$0xff]  }
 0x7be   :  { %9874 = vmatprep.subr.bf16.mxu1 %v15016_v24 }
 0x7c0   :  { %14017 = vmatpush3.bf16.msra.mxu0 %v14911_v14  ;;  %v14948_v14 = vld [vmem:[%s18553_s7 + $0xa88] sm:$0xff]  }
 0x7c1   :  { %9875 = vmatpush1.bf16.msra.mxu1 %v14912_v20  ;;  %14018 = vmatprep.subr.bf16.mxu0 %v14913_v52  ;;  %v14950_v20 = vld [vmem:[%s18553_s7 + $0xa80] sm:$0xff]   ;;  %v14951_v52 = vld [vmem:[%s18553_s7 + $0xb38] sm:$0xff]  }
 0x7c2   :  { %9876 = vmatprep.subr.bf16.mxu1 %v15016_v24 }
 0x7c4   :  { %14019 = vmatpush3.bf16.msra.mxu0 %v14914_v40  ;;  %v10280_v40 = vrot.slane %v17222_v56, 6 }
 0x7c5   :  { %9877 = vmatpush1.bf16.msra.mxu1 %v14915_v19  ;;  %10813 = vmatprep.subr.bf16.mxu0 %v15016_v24  ;;  %v10283_v19 = vrot.slane %v17036_v34, 6  ;;  %v14953_v34 = vld [vmem:[%s18553_s7 + $0xb28] sm:$0xff]  }
 0x7c6   :  { %9878 = vmatprep.subr.bf16.mxu1 %v15016_v24 }
 0x7c7   :  { %v8957_v38 = vpop.f32.mrf.mxu0  ;;  %10806 = vmatmul.mubr.bf16.vlgmr.msra.gmra.mxu0 %v10595_v6 }
 0x7c8   :  { %v18315_v42 = vadd.f32 %v18186_v57, %v8957_v38  ;;  %10814 = vmatpush1.bf16.msra.mxu0 %v14916_v21  ;;  %13389 = vmatprep.mubr.msk.bf16.mxu0 %vm1314_vm4, %v10598_v16  ;;  %v14920_v57 = vld [vmem:[%s18553_s7 + $0xc08] sm:$0xff]  }
 0x7c9   :  { %v8959_v59 = vpop.f32.mrf.mxu0  ;;  %9879 = vmatpush1.bf16.msra.mxu1 %v14917_v17  ;;  %10815 = vmatprep.subr.bf16.mxu0 %v15016_v24  ;;  %v14952_v17 = vld [vmem:[%s18553_s7 + $0xb30] sm:$0xff]  }
 0x7ca   :  { %9880 = vmatprep.subr.bf16.mxu1 %v15016_v24 }
 0x7cb   :  { %v8960_v31 = vpop.f32.mrf.mxu0 }
 0x7cc   :  { %10816 = vmatpush1.bf16.msra.mxu0 %v14918_v7 }
 0x7cd   :  { %v8961_v46 = vpop.f32.mrf.mxu0  ;;  %9881 = vmatpush1.bf16.msra.mxu1 %v14919_v51  ;;  %10817 = vmatprep.subr.bf16.mxu0 %v15016_v24  ;;  %v14954_v51 = vld [vmem:[%s18553_s7 + $0xb20] sm:$0xff]  }
 0x7ce   :  { %9882 = vmatprep.subr.bf16.mxu1 %v15016_v24 }
 0x7d0   :  { %10818 = vmatpush1.bf16.msra.mxu0 %v14920_v57 }
 0x7d1   :  { %9883 = vmatpush1.bf16.msra.mxu1 %v14921_v49  ;;  %10819 = vmatprep.subr.bf16.mxu0 %v15016_v24  ;;  %v14957_v49 = vld [vmem:[%s18553_s7 + $0xb08] sm:$0xff]  }
 0x7d2   :  { %9892 = vmatprep.subr.bf16.mxu1 %v15016_v24 }
 0x7d4   :  { %10820 = vmatpush1.bf16.msra.mxu0 %v14922_v13  ;;  %v13866_v36 = vpop.f32.mrf.mxu1 }
 0x7d5   :  { %9893 = vmatpush2.bf16.msra.mxu1 %v14923_v32  ;;  %10821 = vmatprep.subr.bf16.mxu0 %v15016_v24 }
 0x7d6   :  { %v13867_v61 = vpop.f32.mrf.mxu1  ;;  %9894 = vmatprep.subr.bf16.mxu1 %v15016_v24 }
 0x7d7   :  { %v18350_v10 = vadd.f32 %v13867_v61, %v13866_v36  ;;  %v14958_v36 = vld [vmem:[%s18553_s7 + $0xb00] sm:$0xff]   ;;  %v14960_v61 = vld [vmem:[%s18553_s7 + $0xb50] sm:$0xff]  }
 0x7d8   :  { %10822 = vmatpush1.bf16.msra.mxu0 %v14924_v55  ;;  %v13869_v39 = vpop.f32.mrf.mxu1  ;;  %v14959_v55 = vld [vmem:[%s18553_s7 + $0xb58] sm:$0xff]  }
 0x7d9   :  { %9895 = vmatpush2.bf16.msra.mxu1 %v14925_v44  ;;  %10823 = vmatprep.subr.bf16.mxu0 %v15016_v24 }
 0x7da   :  { %v13870_v8 = vpop.f32.mrf.mxu1  ;;  %9896 = vmatprep.subr.bf16.mxu1 %v15016_v24 }
 0x7dc   :  { %10824 = vmatpush1.bf16.msra.mxu0 %v14926_v15 }
 0x7dd   :  { %9897 = vmatpush2.bf16.msra.mxu1 %v14927_v29  ;;  %10825 = vmatprep.subr.bf16.mxu0 %v15016_v24  ;;  %v14961_v29 = vld [vmem:[%s18553_s7 + $0xb48] sm:$0xff]  }
 0x7de   :  { %9898 = vmatprep.subr.bf16.mxu1 %v15016_v24 }
 0x7e0   :  { %10826 = vmatpush1.bf16.msra.mxu0 %v14928_v23  ;;  %v14962_v23 = vld [vmem:[%s18553_s7 + $0xb40] sm:$0xff]  }
 0x7e1   :  { %9899 = vmatpush2.bf16.msra.mxu1 %v14929_v48  ;;  %10827 = vmatprep.subr.bf16.mxu0 %v15016_v24  ;;  %v10282_v48 = vrot.slane %v17034_v35, 6  ;;  %v14965_v35 = vld [vmem:[%s18555_s9 + $0x28] sm:$0xff]  }
 0x7e2   :  { %13982 = vmatprep.subr.bf16.mxu1 %v14931_v28 }
 0x7e4   :  { %10828 = vmatpush1.bf16.msra.mxu0 %v14930_v0  ;;  %9901 = vmatmul.mubr.bf16.vlgmr.msra.gmra.mxu1 %v9652_v3 }
 0x7e5   :  { %13983 = vmatpush3.bf16.msra.mxu1 %v14932_v54  ;;  %10490 = vmatprep.mubr.bf16.mxu1 %v10281_v5  ;;  %v14963_v5 = vld [vmem:[%s18555_s9 + $0x38] sm:$0xff]  }
 0x7e6   :  { %10837 = vmatprep.subr.bf16.mxu0 %v15016_v24  ;;  %13984 = vmatprep.subr.bf16.mxu1 %v14934_v62 }
 0x7e7   :  { %v13932_v58 = vpop.f32.mrf.mxu0 }
 0x7e8   :  { %10838 = vmatpush2.bf16.msra.mxu0 %v14933_v50 }
 0x7e9   :  { %v13933_v45 = vpop.f32.mrf.mxu0  ;;  %13985 = vmatpush3.bf16.msra.mxu1 %v14935_v27  ;;  %10839 = vmatprep.subr.bf16.mxu0 %v15016_v24  ;;  %v14966_v27 = vld [vmem:[%s18555_s9 + $0x20] sm:$0xff]  }
 0x7ea   :  { %v18400_v18 = vadd.f32 %v13933_v45, %v13932_v58  ;;  %13986 = vmatprep.subr.bf16.mxu1 %v14937_v41 }
 0x7eb   :  { %v13935_v43 = vpop.f32.mrf.mxu0 }
 0x7ec   :  { %10840 = vmatpush2.bf16.msra.mxu0 %v14936_v2 }
 0x7ed   :  { %v13936_v1 = vpop.f32.mrf.mxu0  ;;  %13987 = vmatpush3.bf16.msra.mxu1 %v14938_v4  ;;  %10841 = vmatprep.subr.bf16.mxu0 %v15016_v24  ;;  %v14967_v4 = vld [vmem:[%s18555_s9 + $0x18] sm:$0xff]  }
 0x7ee   :  { %13988 = vmatprep.subr.bf16.mxu1 %v14940_v33 }
 0x7f0   :  { %10842 = vmatpush2.bf16.msra.mxu0 %v14939_v9 }
 0x7f1   :  { %13989 = vmatpush3.bf16.msra.mxu1 %v14941_v37  ;;  %10843 = vmatprep.subr.bf16.mxu0 %v15016_v24 }
 0x7f2   :  { %13990 = vmatprep.subr.bf16.mxu1 %v14943_v12 }
 0x7f4   :  { %10844 = vmatpush2.bf16.msra.mxu0 %v14942_v63 }
 0x7f5   :  { %13991 = vmatpush3.bf16.msra.mxu1 %v14944_v30 }
 0x7f6   :  { %13992 = vmatprep.subr.bf16.mxu1 %v14945_v22 }
 0x7f7   :  { %10846 = vmatmul.mubr.bf16.vlgmr.msra.gmra.mxu0 %v10597_v25 }
 0x7f9   :  { %13993 = vmatpush3.bf16.msra.mxu1 %v14946_v26 }
 0x7fa   :  { %13994 = vmatprep.subr.bf16.mxu1 %v14947_v60  ;;  %v14968_v60 = vld [vmem:[%s18555_s9 + $0x10] sm:$0xff]  }
 0x7fd   :  { %13995 = vmatpush3.bf16.msra.mxu1 %v14948_v14  ;;  %v14969_v14 = vld [vmem:[%s18555_s9 + $0x8] sm:$0xff]  }
 0x7fe   :  { %13996 = vmatprep.subr.bf16.mxu1 %v14949_v11  ;;  %v14970_v11 = vld [vmem:[%s18555_s9] sm:$0xff]  }
 0x801   :  { %13997 = vmatpush3.bf16.msra.mxu1 %v14950_v20 }
 0x802   :  { %10498 = vmatprep.subr.bf16.mxu1 %v15016_v24 }
 0x804   :  { %v8642_v21 = vpop.f32.mrf.mxu1  ;;  %10491 = vmatmul.mubr.bf16.vlgmr.msra.gmra.mxu1 %v10280_v40 }
 0x805   :  { %v8643_v6 = vadd.f32 %v18350_v10, %v8642_v21  ;;  %10499 = vmatpush1.bf16.msra.mxu1 %v14951_v52  ;;  %13304 = vmatprep.mubr.msk.bf16.mxu1 %vm1314_vm4, %v10283_v19 }
 0x806   :  { %v8644_v16 = vpop.f32.mrf.mxu1  ;;  %10500 = vmatprep.subr.bf16.mxu1 %v15016_v24 }
 0x807   :  { %v8648_v56 = vadd.f32 %v8643_v6, %v18284_v47  ;;  %v14955_v47 = vld [vmem:[%s18553_s7 + $0xb18] sm:$0xff]  }
 0x808   :  { %v8645_v38 = vpop.f32.mrf.mxu1 }
 0x809   :  { %10501 = vmatpush1.bf16.msra.mxu1 %v14952_v17  ;;  %v18458_v7 = vadd.f32 %v18315_v42, %v8648_v56  ;;  %v14956_v42 = vld [vmem:[%s18553_s7 + $0xb10] sm:$0xff]  }
 0x80a   :  { %v8646_v59 = vpop.f32.mrf.mxu1  ;;  %10502 = vmatprep.subr.bf16.mxu1 %v15016_v24 }
 0x80d   :  { %10503 = vmatpush1.bf16.msra.mxu1 %v14953_v34 }
 0x80e   :  { %10504 = vmatprep.subr.bf16.mxu1 %v15016_v24 }
 0x811   :  { %10505 = vmatpush1.bf16.msra.mxu1 %v14954_v51 }
 0x812   :  { %10506 = vmatprep.subr.bf16.mxu1 %v15016_v24 }
 0x815   :  { %10507 = vmatpush1.bf16.msra.mxu1 %v14955_v47 }
 0x816   :  { %10508 = vmatprep.subr.bf16.mxu1 %v15016_v24 }
 0x817   :  { %v9587_v31 = vpop.f32.mrf.mxu0 }
 0x818   :  { %v9588_v57 = vadd.f32 %v18400_v18, %v9587_v31 }
 0x819   :  { %v9589_v46 = vpop.f32.mrf.mxu0  ;;  %10509 = vmatpush1.bf16.msra.mxu1 %v14956_v42 }
 0x81a   :  { %10510 = vmatprep.subr.bf16.mxu1 %v15016_v24 }
 0x81b   :  { %v9590_v13 = vpop.f32.mrf.mxu0 }
 0x81d   :  { %v9591_v32 = vpop.f32.mrf.mxu0  ;;  %10511 = vmatpush1.bf16.msra.mxu1 %v14957_v49 }
 0x81e   :  { %10512 = vmatprep.subr.bf16.mxu1 %v15016_v24 }
 0x821   :  { %10513 = vmatpush1.bf16.msra.mxu1 %v14958_v36 }
 0x822   :  { %10522 = vmatprep.subr.bf16.mxu1 %v15016_v24 }
 0x824   :  { %v13910_v44 = vpop.f32.mrf.mxu1 }
 0x825   :  { %10523 = vmatpush2.bf16.msra.mxu1 %v14959_v55 }
 0x826   :  { %v13911_v10 = vpop.f32.mrf.mxu1  ;;  %10524 = vmatprep.subr.bf16.mxu1 %v15016_v24 }
 0x827   :  { %v13912_v39 = vadd.f32 %v13911_v10, %v13910_v44 }
 0x828   :  { %v13913_v15 = vpop.f32.mrf.mxu1 }
 0x829   :  { %10525 = vmatpush2.bf16.msra.mxu1 %v14960_v61  ;;  %v10854_v61 = vld [vmem:[%s18554_s8] sm:$0x1]  ;;  %s15020_s8 = smov [#allocation2]  }
 0x82a   :  { %v13914_v8 = vpop.f32.mrf.mxu1  ;;  %10526 = vmatprep.subr.bf16.mxu1 %v15016_v24 }
 0x82d   :  { %10527 = vmatpush2.bf16.msra.mxu1 %v14961_v29 }
 0x82e   :  { %10528 = vmatprep.subr.bf16.mxu1 %v15016_v24  ;;  %v14964_v24 = vld [vmem:[%s18555_s9 + $0x30] sm:$0xff]  }
 0x831   :  { %10529 = vmatpush2.bf16.msra.mxu1 %v14962_v23 }
 0x832   :  { %14061 = vmatprep.subr.bf16.mxu1 %v15018_v53 }
 0x834   :  { %10531 = vmatmul.mubr.bf16.vlgmr.msra.gmra.mxu1 %v10282_v48  ;;  %v10874_v48 = vld [vmem:[%s18556_s10] sm:$0x1]  ;;  %s10982_s10 = sshll.u32 %s15020_s8, 4  ;;  %s10983_s10 = int_to_ptr.vmem [resolvable:$true] %s10982_s10 }
 0x835   :  { %14077 = vmatprep.mubr.msk.bf16.mxu1 %vm15019_vm5, %v15018_v53  ;;  %14062 = vmatpush3.bf16.msra.mxu1 %v14963_v5  ;;  %s14992_s5 = scalar_lea.vmem %s10983_s10, 32  ;;  %p14997_p1 = scmp.lt.s32.totalorder %s10983_s10, %s10983_s10 }
 0x836   :  { %14063 = vmatprep.subr.bf16.mxu1 %v15018_v53  ;;  %p14993_p0 = scmp.ne.s32.totalorder %s10983_s10, %s14992_s5  ;;  %p14998_p2 = scmp.lt.s32.totalorder %s14992_s5, %s14992_s5 }
 0x837   :  { %v13976_v28 = vpop.f32.mrf.mxu0 }
 0x838   :  { %p14999_p3 = por %p14998_p2, %p14997_p1 }
 0x839   :  { %v13977_v0 = vpop.f32.mrf.mxu0  ;;  %14064 = vmatpush3.bf16.msra.mxu1 %v14964_v24 }
 0x83a   :  { %v13978_v54 = vadd.f32 %v13977_v0, %v13976_v28  ;;  %14065 = vmatprep.subr.bf16.mxu1 %v15018_v53  ;;  %p15000_p4 = pnand %p14999_p3, %p14993_p0 }
 0x83b   :  { %v13979_v3 = vpop.f32.mrf.mxu0 }
 0x83d   :  { %v13980_v62 = vpop.f32.mrf.mxu0  ;;  %14066 = vmatpush3.bf16.msra.mxu1 %v14965_v35 }
 0x83e   :  { %14067 = vmatprep.subr.bf16.mxu1 %v15018_v53 }
 0x841   :  { %14068 = vmatpush3.bf16.msra.mxu1 %v14966_v27 }
 0x842   :  { %14069 = vmatprep.subr.bf16.mxu1 %v15018_v53 }
 0x845   :  { %14070 = vmatpush3.bf16.msra.mxu1 %v14967_v4 }
 0x846   :  { %14071 = vmatprep.subr.bf16.mxu1 %v15018_v53 }
 0x849   :  { %14072 = vmatpush3.bf16.msra.mxu1 %v14968_v60 }
 0x84a   :  { %14073 = vmatprep.subr.bf16.mxu1 %v15018_v53 }
 0x84d   :  { %14074 = vmatpush3.bf16.msra.mxu1 %v14969_v14 }
 0x84e   :  { %14075 = vmatprep.subr.bf16.mxu1 %v15018_v53 }
 0x851   :  { %14076 = vmatpush3.bf16.msra.mxu1 %v14970_v11 }
 0x854   :  { %v9272_v50 = vpop.f32.mrf.mxu1 }
 0x855   :  { %v9273_v41 = vadd.f32 %v13912_v39, %v9272_v50 }
 0x856   :  { %v9274_v58 = vpop.f32.mrf.mxu1 }
 0x857   :  { %v9278_v2 = vadd.f32 %v9273_v41, %v18458_v7 }
 0x858   :  { %v9275_v45 = vpop.f32.mrf.mxu1 }
 0x859   :  { %v9593_v18 = vadd.f32 %v9588_v57, %v9278_v2 }
 0x85a   :  { %v9276_v33 = vpop.f32.mrf.mxu1 }
 0x867   :  { %v10217_v43 = vpop.f32.mrf.mxu0 }
 0x868   :  { %v10218_v9 = vadd.f32 %v13978_v54, %v10217_v43 }
 0x869   :  { %v10219_v1 = vpop.f32.mrf.mxu0 }
 0x86b   :  { %v10220_v37 = vpop.f32.mrf.mxu0 }
 0x86d   :  { %v10221_v12 = vpop.f32.mrf.mxu0 }
 0x874   :  { %v13954_v63 = vpop.f32.mrf.mxu1 }
 0x876   :  { %v13955_v30 = vpop.f32.mrf.mxu1 }
 0x877   :  { %v13956_v22 = vadd.f32 %v13955_v30, %v13954_v63 }
 0x878   :  { %v13957_v25 = vpop.f32.mrf.mxu1 }
 0x87a   :  { %v13958_v26 = vpop.f32.mrf.mxu1 }
 0x887   :  { %v14020_v20 = vpop.f32.mrf.mxu0 }
 0x889   :  { %v14021_v52 = vpop.f32.mrf.mxu0 }
 0x88a   :  { %v14022_v40 = vadd.f32 %v14021_v52, %v14020_v20 }
 0x88b   :  { %v14023_v19 = vpop.f32.mrf.mxu0 }
 0x88d   :  { %v14024_v21 = vpop.f32.mrf.mxu0 }
 0x8a4   :  { %v9902_v6 = vpop.f32.mrf.mxu1 }
 0x8a5   :  { %v9903_v17 = vadd.f32 %v13956_v22, %v9902_v6 }
 0x8a6   :  { %v9904_v16 = vpop.f32.mrf.mxu1 }
 0x8a7   :  { %v9908_v56 = vadd.f32 %v9903_v17, %v9593_v18 }
 0x8a8   :  { %v9905_v38 = vpop.f32.mrf.mxu1 }
 0x8a9   :  { %v10223_v34 = vadd.f32 %v10218_v9, %v9908_v56 }
 0x8aa   :  { %v9906_v7 = vpop.f32.mrf.mxu1 }
 0x8b7   :  { %v10847_v59 = vpop.f32.mrf.mxu0 }
 0x8b8   :  { %v10848_v55 = vadd.f32 %v14022_v40, %v10847_v59 }
 0x8b9   :  { %v10849_v51 = vpop.f32.mrf.mxu0 }
 0x8bb   :  { %v10850_v47 = vpop.f32.mrf.mxu0 }
 0x8bd   :  { %v10851_v42 = vpop.f32.mrf.mxu0 }
 0x8c4   :  { %v13998_v31 = vpop.f32.mrf.mxu1 }
 0x8c6   :  { %v13999_v57 = vpop.f32.mrf.mxu1 }
 0x8c7   :  { %v14000_v49 = vadd.f32 %v13999_v57, %v13998_v31 }
 0x8c8   :  { %v14001_v53 = vpop.f32.mrf.mxu1 }
 0x8ca   :  { %v14002_v46 = vpop.f32.mrf.mxu1 }
 0x8f4   :  { %v10532_v13 = vpop.f32.mrf.mxu1 }
 0x8f5   :  { %v10533_v32 = vadd.f32 %v14000_v49, %v10532_v13 }
 0x8f6   :  { %v10534_v36 = vpop.f32.mrf.mxu1 }
 0x8f7   :  { %v10538_v44 = vadd.f32 %v10533_v32, %v10223_v34 }
 0x8f8   :  { %v10535_v10 = vpop.f32.mrf.mxu1 }
 0x8f9   :  { %v10853_v39 = vadd.f32 %v10848_v55, %v10538_v44 }
 0x8fa   :  { %v10536_v15 = vpop.f32.mrf.mxu1 }
 0x8fb   :  { %v10855_v29 = vadd.f32 %v10854_v61, %v10853_v39 }
 0x8fd   :  { %v10856_v8 = vmax.f32 %v10855_v29, 0.0 }
 0x8ff   :  { %v10857_v23 = vpack.c.bf16 %v10856_v8, %v10856_v8 }
 0x901   :  { %14078 = vmatmul.mubr.bf16.vlgmr.msra.gmra.mxu1 %v10857_v23 }
 0x9c1   :  { %v10957_v28 = vpop.f32.mrf.mxu1 }
 0x9c2   :  { %v10958_v0 = vadd.f32 %v10957_v28, %v10874_v48 }
 0x9c3   :  { %v14079_v54 = vpop.f32.mrf.mxu1 }
 0x9c4   :  { %v10963_v3 = vsel %vm5553_vm6, %v10958_v0, -inf }
 0x9c5   :  { %10964 = vmax.xlane.f32.xlu0 %v10963_v3  ;;  %v10960_v62 = vpop.f32.mrf.mxu1 }
 0x9c7   :  { %v14080_v5 = vpop.f32.mrf.mxu1 }
 0xa4e   :  { %v10965_v24 = vpop.xlane.xlu0 %10964 }
 0xa4f   :  { %v10966_v35 = vsub.f32 %v10958_v0, %v10965_v24 }
 0xa51   :  { %v10967_v50 = vmul.f32 1.442695, %v10966_v35 }
 0xa53   :  { %14987 = vpow2.f32 %v10967_v50 }
 0xa60   :  { %v14988_v27 = vpop.eup %14987 }
 0xa61   :  { %v10969_v41 = vsel %vm5553_vm6, %v14988_v27, 0.0 }
 0xa62   :  { %10970 = vadd.xlane.f32.xlu0 %v10969_v41 }
 0xaeb   :  { %v10971_v58 = vpop.xlane.xlu0 %10970 }
 0xaec   :  { %14989 = vlog2.f32 %v10971_v58 }
 0xaf9   :  { %v14990_v2 = vpop.eup %14989 }
 0xafa   :  { %v10973_v45 = vmul.f32 0.6931472, %v14990_v2 }
 0xafc   :  { %v10974_v4 = vsub.f32 %v10966_v35, %v10973_v45 }
 0xafe   :  { %10975 = vst.msk [vmem:[#allocation2 + $0x1] sm:$0x1] %vm5553_vm6, %v10974_v4 }
 0xaff   :  { %15003 = shalt.err (!%p15000_p4)
}
 0xb00   :  { %10985 = dma.vmem_to_hbm [thread:$0]  %s10983_s10, 32, %s18557_s11, [#allocation3]  }
 0xb01   :  { %15012 = dma.done.wait [#allocation3], 32  }
 0xb02   :  { %15013 = vsyncadd [#allocation3], 4294967264 }
 0xb03   :  { %10989 = vsyncpa [#allocation3], 1 }

</bundles_post_ra>
